<compile_context>
chip_gen: v7x
topology: tpu7x:2x2x1
jax: 0.10.0
libtpu: 0.0.40
codegen_flags: <defaults>
</compile_context>

<pallas_src>
import functools
import math

import numpy as np
import jax
import jax.numpy as jnp
from jax.experimental import pallas as pl
from jax.experimental.pallas import tpu as pltpu


# ----------------------------- fused decoder-layer kernel -----------------------------

def _decoder_layer_kernel(dec_ref, word_ref, turn_ref,
                          emb_w_ref, timing_ref,
                          ln_g_ref, ln_b_ref,
                          wq_ref, wk_ref, wv_ref, wo_ref,
                          w1_ref, b1_ref, w2_ref, b2_ref,
                          fin_g_ref, fin_b_ref,
                          o_ref,
                          x_ref, ctx_ref, cat1_ref, cat2_ref,
                          *, num_heads, dk, dv, eps):
    l = pl.program_id(1)
    num_layers = pl.num_programs(1)
    Ld = x_ref.shape[0]

    f32 = jnp.float32
    bf16 = jnp.bfloat16

    # ---- constants: built once per grid step (cheap VPU work) ----
    r = jax.lax.broadcasted_iota(jnp.int32, (Ld, Ld), 0)
    c = jax.lax.broadcasted_iota(jnp.int32, (Ld, Ld), 1)
    causal_bias = jnp.where(c > r, jnp.float32(-1e30), jnp.float32(0.0))
    row1 = jax.lax.broadcasted_iota(jnp.int32, (Ld, 1), 0)
    m1 = (row1 >= 1).astype(f32)      # conv wrap masks, hoisted out of causal_conv
    m2 = (row1 >= 2).astype(f32)

    # ---- l == 0: embedding projection + timing signal into the residual carry ----
    @pl.when(l == 0)
    def _():
        x_ref[...] = jnp.dot(dec_ref[0].astype(bf16), emb_w_ref[...],
                             preferred_element_type=f32) + timing_ref[...]

    x = x_ref[...]
    word = word_ref[0]
    turn = turn_ref[0]

    def layer_norm(h, g, b):
        # gamma*(x-mean)/(std+eps)+beta with torch's unbiased std (ddof=1)
        mean = jnp.mean(h, axis=-1, keepdims=True)
        d = h - mean
        var = jnp.sum(d * d, axis=-1, keepdims=True) * (1.0 / (h.shape[-1] - 1))
        inv = pl.reciprocal(jnp.sqrt(var) + eps, approx=True)
        return g * (d * inv) + b

    def attention(xq, xkv, a, bias):
        # Full-width bf16 projections (all heads fused -> wide MXU matmuls).
        # 1/sqrt(dk) is folded into wq at pack time.
        wq = wq_ref[0, a]
        wk = wk_ref[0, a]
        wv = wv_ref[0, a]
        wo = wo_ref[0, a]
        xq16 = xq.astype(bf16)
        xkv16 = xq16 if xkv is xq else xkv.astype(bf16)
        q = jnp.dot(xq16, wq, preferred_element_type=f32).astype(bf16)
        k = jnp.dot(xkv16, wk, preferred_element_type=f32).astype(bf16)
        v = jnp.dot(xkv16, wv, preferred_element_type=f32).astype(bf16)
        for h in range(num_heads):            # per-head softmax, static unroll
            qh = q[:, h * dk:(h + 1) * dk]
            kh = k[:, h * dk:(h + 1) * dk]
            vh = v[:, h * dv:(h + 1) * dv]
            logits = jax.lax.dot_general(qh, kh, (((1,), (1,)), ((), ())),
                                         preferred_element_type=f32)
            if bias is not None:
                logits = logits + bias
            mx = jnp.max(logits, axis=-1, keepdims=True)
            e = jnp.exp(logits - mx)
            p = e * pl.reciprocal(jnp.sum(e, axis=-1, keepdims=True), approx=True)
            ctx_ref[:, h * dv:(h + 1) * dv] = jnp.dot(p.astype(bf16), vh,
                                                      preferred_element_type=f32)
        # One wide output projection (contraction H*dv) instead of H narrow ones.
        return jnp.dot(ctx_ref[...].astype(bf16), wo, preferred_element_type=f32)

    def causal_conv(h, w_cat, bias, cat_ref):
        # Conv1d(kernel=3, left pad 2): out[t] = sum_j w[j] . h[t - 2 + j]
        # The three taps are fused into one matmul with contraction 3*C_in:
        # operand columns [h | roll(h,1)*m1 | roll(h,2)*m2], weight rows
        # [w[2]; w[1]; w[0]] (packed at pack_params time).
        n = h.shape[-1]
        cat_ref[:, 0:n] = h
        cat_ref[:, n:2 * n] = pltpu.roll(h, shift=1, axis=0) * m1
        cat_ref[:, 2 * n:3 * n] = pltpu.roll(h, shift=2, axis=0) * m2
        return jnp.dot(cat_ref[...].astype(bf16), w_cat,
                       preferred_element_type=f32) + bias

    # ---- one decoder layer (eval-mode dropouts are identity) ----
    # self attention (causal)
    xn = layer_norm(x, ln_g_ref[0, 0], ln_b_ref[0, 0])
    x = x + attention(xn, xn, 0, causal_bias)
    # word-encoder cross attention
    xn = layer_norm(x, ln_g_ref[0, 1], ln_b_ref[0, 1])
    x = x + attention(xn, word, 1, None)
    # turn-encoder cross attention
    xn = layer_norm(x, ln_g_ref[0, 2], ln_b_ref[0, 2])
    x = x + attention(xn, turn, 2, None)
    # positionwise FFN ('cc', left padding, ReLU after each conv layer)
    xn = layer_norm(x, ln_g_ref[0, 3], ln_b_ref[0, 3])
    h1 = jnp.maximum(causal_conv(xn, w1_ref[0], b1_ref[0], cat1_ref), 0.0)
    h2 = jnp.maximum(causal_conv(h1, w2_ref[0], b2_ref[0], cat2_ref), 0.0)
    x = x + h2

    x_ref[...] = x

    # ---- last layer: final LayerNorm -> output ----
    @pl.when(l == num_layers - 1)
    def _():
        o_ref[0] = layer_norm(x, fin_g_ref[...], fin_b_ref[...])


# ----------------------------- wrapper -----------------------------

def decoder_forward(packed, decoder_inputs, word_encoder_outputs, turn_encoder_outputs):
    B, Ld, E = decoder_inputs.shape
    Lw = word_encoder_outputs.shape[1]
    Lt = turn_encoder_outputs.shape[1]
    D = packed["emb_w"].shape[1]
    NL = packed["num_layers"]
    H = packed["num_heads"]
    HK = packed["wq"].shape[-1]
    HV = packed["wv"].shape[-1]
    F = packed["b1"].shape[-1]
    dk = HK // H
    dv = HV // H

    timing = packed["timing"][:Ld]

    def const(shape):
        nd = len(shape)
        return pl.BlockSpec(shape, lambda b, l, nd=nd: (0,) * nd)

    def per_layer(shape_tail):
        nd = len(shape_tail)
        return pl.BlockSpec((1,) + shape_tail, lambda b, l, nd=nd: (l,) + (0,) * nd)

    kernel = functools.partial(_decoder_layer_kernel,
                               num_heads=H, dk=dk, dv=dv, eps=1e-6)

    grid_spec = pltpu.PrefetchScalarGridSpec(
        num_scalar_prefetch=0,
        grid=(B, NL),                                        # layers streamed (inner axis)
        in_specs=[
            pl.BlockSpec((1, Ld, E), lambda b, l: (b, 0, 0)),   # decoder inputs
            pl.BlockSpec((1, Lw, D), lambda b, l: (b, 0, 0)),   # word encoder outs
            pl.BlockSpec((1, Lt, D), lambda b, l: (b, 0, 0)),   # turn encoder outs
            const((E, D)),                                      # embedding proj (bf16)
            const((Ld, D)),                                     # timing signal
            per_layer((4, 1, D)),                               # LN gammas
            per_layer((4, 1, D)),                               # LN betas
            per_layer((3, D, HK)),                              # Wq (heads fused, scaled, bf16)
            per_layer((3, D, HK)),                              # Wk (bf16)
            per_layer((3, D, HV)),                              # Wv (bf16)
            per_layer((3, HV, D)),                              # Wo (heads fused, bf16)
            per_layer((3 * D, F)),                              # FFN conv1 (taps fused, bf16)
            per_layer((1, F)),                                  # FFN conv1 bias
            per_layer((3 * F, D)),                              # FFN conv2 (taps fused, bf16)
            per_layer((1, D)),                                  # FFN conv2 bias
            const((1, D)),                                      # final LN gamma
            const((1, D)),                                      # final LN beta
        ],
        out_specs=pl.BlockSpec((1, Ld, D), lambda b, l: (b, 0, 0)),
        scratch_shapes=[
            pltpu.VMEM((Ld, D), jnp.float32),        # residual-stream carry x
            pltpu.VMEM((Ld, HV), jnp.float32),       # per-head context assembly
            pltpu.VMEM((Ld, 3 * D), jnp.float32),    # conv1 tap-concat operand
            pltpu.VMEM((Ld, 3 * F), jnp.float32),    # conv2 tap-concat operand
        ],
    )

    return pl.pallas_call(
        kernel,
        out_shape=jax.ShapeDtypeStruct((B, Ld, D), jnp.float32),
        grid_spec=grid_spec,
        compiler_params=pltpu.CompilerParams(
            dimension_semantics=("parallel", "arbitrary"),
            vmem_limit_bytes=48 * 1024 * 1024),
    )(decoder_inputs, word_encoder_outputs, turn_encoder_outputs,
      packed["emb_w"], timing,
      packed["ln_g"], packed["ln_b"],
      packed["wq"], packed["wk"], packed["wv"], packed["wo"],
      packed["w1"], packed["b1"], packed["w2"], packed["b2"],
      packed["fin_g"], packed["fin_b"])


# ----------------------------- parameter setup -----------------------------

def gen_timing_signal(length, channels, min_timescale=1.0, max_timescale=1e4):
    position = np.arange(length, dtype=np.float64)
    num_timescales = channels // 2
    log_inc = math.log(float(max_timescale) / float(min_timescale)) / (num_timescales - 1)
    inv = min_timescale * np.exp(np.arange(num_timescales, dtype=np.float64) * -log_inc)
    scaled = position[:, None] * inv[None, :]
    signal = np.concatenate([np.sin(scaled), np.cos(scaled)], axis=1)
    signal = np.pad(signal, [[0, 0], [0, channels % 2]], "constant")
    return jnp.asarray(signal, dtype=jnp.float32)           # [length, channels]


def init_params(key, *, embedding_size, hidden_size, num_layers, num_heads,
                total_key_depth, total_value_depth, filter_size, max_length):
    dk = total_key_depth // num_heads
    dv = total_value_depth // num_heads
    kit = iter(jax.random.split(key, 4 + num_layers * 32))

    def nrm(shape, scale=0.05):
        return (scale * jax.random.normal(next(kit), shape)).astype(jnp.float32)

    def attn_weights():
        return (nrm((num_heads, hidden_size, dk)),
                nrm((num_heads, hidden_size, dk)),
                nrm((num_heads, hidden_size, dv)),
                nrm((num_heads, dv, hidden_size)))

    def ln_weights():
        return (1.0 + nrm((1, hidden_size), 0.1), nrm((1, hidden_size), 0.1))

    layers = []
    for _ in range(num_layers):
        layers.append({
            "ln1": ln_weights(), "ln2": ln_weights(),
            "ln3": ln_weights(), "ln4": ln_weights(),
            "self_attn": attn_weights(),
            "word_attn": attn_weights(),
            "turn_attn": attn_weights(),
            "ffn": (nrm((3, hidden_size, filter_size)), nrm((1, filter_size)),
                    nrm((3, filter_size, hidden_size)), nrm((1, hidden_size))),
        })

    return {
        "emb_w": nrm((embedding_size, hidden_size), 0.1),
        "timing": gen_timing_signal(max_length, hidden_size),
        "layers": layers,
        "final_ln": ln_weights(),
        "num_heads": num_heads,
    }


def pack_params(params):
    """Stack per-layer weights into the fused-kernel layout.

    Heads merged into wide [D, H*dk] / [H*dv, D] matrices, 1/sqrt(dk) folded
    into Wq, conv taps stacked along the contraction dim, all matmul weights
    cast to bf16 (MXU-native, half the DMA/VMEM bytes)."""
    layers = params["layers"]
    H = params["num_heads"]
    attn_names = ("self_attn", "word_attn", "turn_attn")
    ln_names = ("ln1", "ln2", "ln3", "ln4")
    bf16 = jnp.bfloat16

    dk = layers[0]["self_attn"][0].shape[-1]
    q_scale = float(dk) ** -0.5

    def fuse_qkv(w, s=1.0):    # [H, D, d] -> [D, H*d], column block h == head h
        Hh, D, d = w.shape
        return (jnp.transpose(w, (1, 0, 2)).reshape(D, Hh * d) * s).astype(bf16)

    def fuse_o(w):             # [H, dv, D] -> [H*dv, D], row block h == head h
        Hh, dvv, D = w.shape
        return w.reshape(Hh * dvv, D).astype(bf16)

    def fuse_taps(w):          # [3, Cin, Cout] -> [3*Cin, Cout], rows [w2; w1; w0]
        return jnp.concatenate([w[2], w[1], w[0]], axis=0).astype(bf16)

    def stack(fn):
        return jnp.stack([fn(lp) for lp in layers])

    return {
        "emb_w": params["emb_w"].astype(bf16),
        "timing": params["timing"],
        "ln_g": stack(lambda lp: jnp.stack([lp[k][0] for k in ln_names])),
        "ln_b": stack(lambda lp: jnp.stack([lp[k][1] for k in ln_names])),
        "wq": stack(lambda lp: jnp.stack([fuse_qkv(lp[a][0], q_scale) for a in attn_names])),
        "wk": stack(lambda lp: jnp.stack([fuse_qkv(lp[a][1]) for a in attn_names])),
        "wv": stack(lambda lp: jnp.stack([fuse_qkv(lp[a][2]) for a in attn_names])),
        "wo": stack(lambda lp: jnp.stack([fuse_o(lp[a][3]) for a in attn_names])),
        "w1": stack(lambda lp: fuse_taps(lp["ffn"][0])),
        "b1": stack(lambda lp: lp["ffn"][1]),
        "w2": stack(lambda lp: fuse_taps(lp["ffn"][2])),
        "b2": stack(lambda lp: lp["ffn"][3]),
        "fin_g": params["final_ln"][0],
        "fin_b": params["final_ln"][1],
        "num_layers": len(layers),
        "num_heads": H,
    }


# ----------------------------- pure-JAX reference -----------------------------

def _ref_layernorm(x, g, b, eps=1e-6):
    mean = jnp.mean(x, -1, keepdims=True)
    d = x - mean
    var = jnp.sum(d * d, -1, keepdims=True) / (x.shape[-1] - 1)
    return g * d / (jnp.sqrt(var) + eps) + b


def _ref_mha(xq, xkv, wq, wk, wv, wo, causal):
    scale = float(wq.shape[2]) ** -0.5
    q = jnp.einsum("bld,hdk->bhlk", xq, wq) * scale
    k = jnp.einsum("bld,hdk->bhlk", xkv, wk)
    v = jnp.einsum("bld,hdk->bhlk", xkv, wv)
    logits = jnp.einsum("bhqk,bhmk->bhqm", q, k)
    if causal:
        Lq, Lk = logits.shape[-2:]
        logits = logits + jnp.asarray(np.triu(np.full((Lq, Lk), -np.inf), 1),
                                      dtype=logits.dtype)
    w = jax.nn.softmax(logits, axis=-1)
    ctx = jnp.einsum("bhqm,bhmv->bhqv", w, v)
    return jnp.einsum("bhqv,hvd->bqd", ctx, wo)


def _ref_causal_conv(x, w, b):
    L = x.shape[1]
    xp = jnp.pad(x, ((0, 0), (2, 0), (0, 0)))
    return sum(jnp.einsum("blc,cf->blf", xp[:, j:j + L], w[j]) for j in range(3)) + b


def _ref_ffn(x, w1, b1, w2, b2):
    h = jax.nn.relu(_ref_causal_conv(x, w1, b1))
    return jax.nn.relu(_ref_causal_conv(h, w2, b2))


def ref_decoder(params, dec_in, word_enc, turn_enc):
    L = dec_in.shape[1]
    x = jnp.einsum("ble,ed->bld", dec_in, params["emb_w"]) + params["timing"][None, :L]
    for lp in params["layers"]:
        xn = _ref_layernorm(x, *lp["ln1"])
        x = x + _ref_mha(xn, xn, *lp["self_attn"], causal=True)
        xn = _ref_layernorm(x, *lp["ln2"])
        x = x + _ref_mha(xn, word_enc, *lp["word_attn"], causal=False)
        xn = _ref_layernorm(x, *lp["ln3"])
        x = x + _ref_mha(xn, turn_enc, *lp["turn_attn"], causal=False)
        xn = _ref_layernorm(x, *lp["ln4"])
        x = x + _ref_ffn(xn, *lp["ffn"])
    return _ref_layernorm(x, *params["final_ln"])


# ----------------------------- main -----------------------------

if __name__ == "__main__":
    B, L_dec, L_word, L_turn = 2, 8, 12, 6
    E, D, H, F = 48, 64, 4, 128
    num_layers = 2
    max_length = 100

    key = jax.random.PRNGKey(0)
    k1, k2, k3, kp = jax.random.split(key, 4)
    dec_in = jax.random.normal(k1, (B, L_dec, E), dtype=jnp.float32)
    word_enc = jax.random.normal(k2, (B, L_word, D), dtype=jnp.float32)
    turn_enc = jax.random.normal(k3, (B, L_turn, D), dtype=jnp.float32)

    params = init_params(kp, embedding_size=E, hidden_size=D, num_layers=num_layers,
                         num_heads=H, total_key_depth=D, total_value_depth=D,
                         filter_size=F, max_length=max_length)
    packed = pack_params(params)

    out = decoder_forward(packed, dec_in, word_enc, turn_enc)
    out = jax.block_until_ready(out)

    ref = ref_decoder(params, dec_in, word_enc, turn_enc)
    # Kernel uses bf16 MXU operands (f32 accumulation) + approx EUP reciprocals,
    # so compare at a bf16-appropriate tolerance.
    np.testing.assert_allclose(np.asarray(out), np.asarray(ref), rtol=3e-2, atol=3e-2)

    print("KERNEL_OK")
</pallas_src>

<mosaic_0001>
module attributes {stable_mosaic.version = 11 : i64} {
  func.func @_decoder_layer_kernel(%arg0: i32, %arg1: i32, %arg2: memref<1x8x48xf32, #tpu.memory_space<vmem>>, %arg3: memref<1x12x64xf32, #tpu.memory_space<vmem>>, %arg4: memref<1x6x64xf32, #tpu.memory_space<vmem>>, %arg5: memref<48x64xbf16, #tpu.memory_space<vmem>>, %arg6: memref<8x64xf32, #tpu.memory_space<vmem>>, %arg7: memref<1x4x1x64xf32, #tpu.memory_space<vmem>>, %arg8: memref<1x4x1x64xf32, #tpu.memory_space<vmem>>, %arg9: memref<1x3x64x64xbf16, #tpu.memory_space<vmem>>, %arg10: memref<1x3x64x64xbf16, #tpu.memory_space<vmem>>, %arg11: memref<1x3x64x64xbf16, #tpu.memory_space<vmem>>, %arg12: memref<1x3x64x64xbf16, #tpu.memory_space<vmem>>, %arg13: memref<1x192x128xbf16, #tpu.memory_space<vmem>>, %arg14: memref<1x1x128xf32, #tpu.memory_space<vmem>>, %arg15: memref<1x384x64xbf16, #tpu.memory_space<vmem>>, %arg16: memref<1x1x64xf32, #tpu.memory_space<vmem>>, %arg17: memref<1x64xf32, #tpu.memory_space<vmem>>, %arg18: memref<1x64xf32, #tpu.memory_space<vmem>>, %arg19: memref<1x8x64xf32, #tpu.memory_space<vmem>>, %arg20: memref<8x64xf32, #tpu.memory_space<vmem>>, %arg21: memref<8x64xf32, #tpu.memory_space<vmem>>, %arg22: memref<8x192xf32, #tpu.memory_space<vmem>>, %arg23: memref<8x384xf32, #tpu.memory_space<vmem>>) attributes {dimension_semantics = [#tpu.dimension_semantics<parallel>, #tpu.dimension_semantics<arbitrary>], iteration_bounds = array<i64: 2, 2>, scalar_prefetch = 0 : i64, scratch_operands = 4 : i64, tpu.core_type = #tpu.core_type<tc>, window_params = [{transform_indices = @transform_0, window_bounds = array<i64: 1, 8, 48>}, {transform_indices = @transform_1, window_bounds = array<i64: 1, 12, 64>}, {transform_indices = @transform_2, window_bounds = array<i64: 1, 6, 64>}, {pipeline_mode = #tpu.pipeline_mode<synchronous>, transform_indices = @transform_3, window_bounds = array<i64: 48, 64>}, {pipeline_mode = #tpu.pipeline_mode<synchronous>, transform_indices = @transform_4, window_bounds = array<i64: 8, 64>}, {transform_indices = @transform_5, window_bounds = array<i64: 1, 4, 1, 64>}, {transform_indices = @transform_6, window_bounds = array<i64: 1, 4, 1, 64>}, {transform_indices = @transform_7, window_bounds = array<i64: 1, 3, 64, 64>}, {transform_indices = @transform_8, window_bounds = array<i64: 1, 3, 64, 64>}, {transform_indices = @transform_9, window_bounds = array<i64: 1, 3, 64, 64>}, {transform_indices = @transform_10, window_bounds = array<i64: 1, 3, 64, 64>}, {transform_indices = @transform_11, window_bounds = array<i64: 1, 192, 128>}, {transform_indices = @transform_12, window_bounds = array<i64: 1, 1, 128>}, {transform_indices = @transform_13, window_bounds = array<i64: 1, 384, 64>}, {transform_indices = @transform_14, window_bounds = array<i64: 1, 1, 64>}, {pipeline_mode = #tpu.pipeline_mode<synchronous>, transform_indices = @transform_15, window_bounds = array<i64: 1, 64>}, {pipeline_mode = #tpu.pipeline_mode<synchronous>, transform_indices = @transform_16, window_bounds = array<i64: 1, 64>}, {transform_indices = @transform_17, window_bounds = array<i64: 1, 8, 64>}]} {
    %0 = tpu.iota {dimensions = array<i32: 0>} : vector<8x8xi32>
    %1 = tpu.iota {dimensions = array<i32: 1>} : vector<8x8xi32>
    %2 = arith.cmpi sgt, %1, %0 : vector<8x8xi32>
    %cst = arith.constant -1.000000e+30 : f32
    %cst_0 = arith.constant 0.000000e+00 : f32
    %3 = vector.broadcast %cst : f32 to vector<8x8xf32>
    %4 = vector.broadcast %cst_0 : f32 to vector<8x8xf32>
    %5 = arith.select %2, %3, %4 : vector<8x8xi1>, vector<8x8xf32>
    %6 = tpu.iota {dimensions = array<i32: 0>} : vector<8x1xi32>
    %c1_i32 = arith.constant 1 : i32
    %7 = vector.broadcast %c1_i32 : i32 to vector<8x1xi32>
    %8 = arith.cmpi sge, %6, %7 : vector<8x1xi32>
    %9 = arith.extui %8 : vector<8x1xi1> to vector<8x1xi32>
    %10 = arith.sitofp %9 : vector<8x1xi32> to vector<8x1xf32>
    %c2_i32 = arith.constant 2 : i32
    %11 = vector.broadcast %c2_i32 : i32 to vector<8x1xi32>
    %12 = arith.cmpi sge, %6, %11 : vector<8x1xi32>
    %13 = arith.extui %12 : vector<8x1xi1> to vector<8x1xi32>
    %14 = arith.sitofp %13 : vector<8x1xi32> to vector<8x1xf32>
    %c0_i32 = arith.constant 0 : i32
    %15 = arith.cmpi eq, %arg1, %c0_i32 : i32
    %16 = arith.extui %15 : i1 to i32
    %c0_i32_1 = arith.constant 0 : i32
    %17 = arith.cmpi ne, %16, %c0_i32_1 : i32
    scf.if %17 {
      %c0_230 = arith.constant 0 : index
      %c0_231 = arith.constant 0 : index
      %c0_232 = arith.constant 0 : index
      %435 = vector.load %arg2[%c0_230, %c0_231, %c0_232] : memref<1x8x48xf32, #tpu.memory_space<vmem>>, vector<1x8x48xf32>
      %436 = vector.shape_cast %435 : vector<1x8x48xf32> to vector<8x48xf32>
      %437 = arith.truncf %436 : vector<8x48xf32> to vector<8x48xbf16>
      %c0_233 = arith.constant 0 : index
      %c0_234 = arith.constant 0 : index
      %438 = vector.load %arg5[%c0_233, %c0_234] : memref<48x64xbf16, #tpu.memory_space<vmem>>, vector<48x64xbf16>
      %cst_235 = arith.constant dense<0.000000e+00> : vector<8x64xf32>
      %439 = tpu.matmul %437, %438, %cst_235 {dimension_numbers = #tpu.dot_dimension_numbers<[1], [0], [0], [1], [0, 0, 1, 1], [], []>} : vector<8x48xbf16>, vector<48x64xbf16>, vector<8x64xf32> -> vector<8x64xf32>
      %c0_236 = arith.constant 0 : index
      %c0_237 = arith.constant 0 : index
      %440 = vector.load %arg6[%c0_236, %c0_237] : memref<8x64xf32, #tpu.memory_space<vmem>>, vector<8x64xf32>
      %441 = arith.addf %439, %440 : vector<8x64xf32>
      %c0_238 = arith.constant 0 : index
      %c0_239 = arith.constant 0 : index
      %442 = vector.load %arg20[%c0_238, %c0_239] : memref<8x64xf32, #tpu.memory_space<vmem>>, vector<8x64xf32>
      tpu.vector_store %arg20[%c0_238, %c0_239], %441 {strides = array<i32>} : memref<8x64xf32, #tpu.memory_space<vmem>>, vector<8x64xf32>,
    } else {
    }
    %c0 = arith.constant 0 : index
    %c0_2 = arith.constant 0 : index
    %18 = vector.load %arg20[%c0, %c0_2] : memref<8x64xf32, #tpu.memory_space<vmem>>, vector<8x64xf32>
    %c0_3 = arith.constant 0 : index
    %c0_4 = arith.constant 0 : index
    %c0_5 = arith.constant 0 : index
    %19 = vector.load %arg3[%c0_3, %c0_4, %c0_5] : memref<1x12x64xf32, #tpu.memory_space<vmem>>, vector<1x12x64xf32>
    %20 = vector.shape_cast %19 : vector<1x12x64xf32> to vector<12x64xf32>
    %c0_6 = arith.constant 0 : index
    %c0_7 = arith.constant 0 : index
    %c0_8 = arith.constant 0 : index
    %21 = vector.load %arg4[%c0_6, %c0_7, %c0_8] : memref<1x6x64xf32, #tpu.memory_space<vmem>>, vector<1x6x64xf32>
    %22 = vector.shape_cast %21 : vector<1x6x64xf32> to vector<6x64xf32>
    %c0_9 = arith.constant 0 : index
    %c0_10 = arith.constant 0 : index
    %c0_11 = arith.constant 0 : index
    %c0_12 = arith.constant 0 : index
    %23 = vector.load %arg7[%c0_9, %c0_10, %c0_11, %c0_12] : memref<1x4x1x64xf32, #tpu.memory_space<vmem>>, vector<1x1x1x64xf32>
    %24 = vector.shape_cast %23 : vector<1x1x1x64xf32> to vector<1x64xf32>
    %c0_13 = arith.constant 0 : index
    %c0_14 = arith.constant 0 : index
    %c0_15 = arith.constant 0 : index
    %c0_16 = arith.constant 0 : index
    %25 = vector.load %arg8[%c0_13, %c0_14, %c0_15, %c0_16] : memref<1x4x1x64xf32, #tpu.memory_space<vmem>>, vector<1x1x1x64xf32>
    %26 = vector.shape_cast %25 : vector<1x1x1x64xf32> to vector<1x64xf32>
    %cst_17 = arith.constant dense<0.000000e+00> : vector<8xf32>
    %27 = vector.multi_reduction <add>, %18, %cst_17 [1] : vector<8x64xf32> to vector<8xf32>
    %28 = vector.shape_cast %27 : vector<8xf32> to vector<8x1xf32>
    %cst_18 = arith.constant 6.400000e+01 : f32
    %29 = vector.broadcast %cst_18 : f32 to vector<8x1xf32>
    %30 = arith.divf %28, %29 : vector<8x1xf32>
    %31 = vector.broadcast %30 : vector<8x1xf32> to vector<8x64xf32>
    %32 = arith.subf %18, %31 : vector<8x64xf32>
    %33 = arith.mulf %32, %32 : vector<8x64xf32>
    %cst_19 = arith.constant dense<0.000000e+00> : vector<8xf32>
    %34 = vector.multi_reduction <add>, %33, %cst_19 [1] : vector<8x64xf32> to vector<8xf32>
    %35 = vector.shape_cast %34 : vector<8xf32> to vector<8x1xf32>
    %cst_20 = arith.constant 0.0158730168 : f32
    %36 = vector.broadcast %cst_20 : f32 to vector<8x1xf32>
    %37 = arith.mulf %35, %36 : vector<8x1xf32>
    %38 = math.sqrt %37 : vector<8x1xf32>
    %cst_21 = arith.constant 9.99999997E-7 : f32
    %39 = vector.broadcast %cst_21 : f32 to vector<8x1xf32>
    %40 = arith.addf %38, %39 : vector<8x1xf32>
    %41 = tpu.reciprocal %40 {approx = true} : vector<8x1xf32> -> vector<8x1xf32>
    %42 = vector.broadcast %41 : vector<8x1xf32> to vector<8x64xf32>
    %43 = arith.mulf %32, %42 : vector<8x64xf32>
    %44 = vector.broadcast %24 : vector<1x64xf32> to vector<8x64xf32>
    %45 = arith.mulf %44, %43 : vector<8x64xf32>
    %46 = vector.broadcast %26 : vector<1x64xf32> to vector<8x64xf32>
    %47 = arith.addf %45, %46 : vector<8x64xf32>
    %c0_22 = arith.constant 0 : index
    %c0_23 = arith.constant 0 : index
    %c0_24 = arith.constant 0 : index
    %c0_25 = arith.constant 0 : index
    %48 = vector.load %arg9[%c0_22, %c0_23, %c0_24, %c0_25] : memref<1x3x64x64xbf16, #tpu.memory_space<vmem>>, vector<1x1x64x64xbf16>
    %49 = vector.shape_cast %48 : vector<1x1x64x64xbf16> to vector<64x64xbf16>
    %c0_26 = arith.constant 0 : index
    %c0_27 = arith.constant 0 : index
    %c0_28 = arith.constant 0 : index
    %c0_29 = arith.constant 0 : index
    %50 = vector.load %arg10[%c0_26, %c0_27, %c0_28, %c0_29] : memref<1x3x64x64xbf16, #tpu.memory_space<vmem>>, vector<1x1x64x64xbf16>
    %51 = vector.shape_cast %50 : vector<1x1x64x64xbf16> to vector<64x64xbf16>
    %c0_30 = arith.constant 0 : index
    %c0_31 = arith.constant 0 : index
    %c0_32 = arith.constant 0 : index
    %c0_33 = arith.constant 0 : index
    %52 = vector.load %arg11[%c0_30, %c0_31, %c0_32, %c0_33] : memref<1x3x64x64xbf16, #tpu.memory_space<vmem>>, vector<1x1x64x64xbf16>
    %53 = vector.shape_cast %52 : vector<1x1x64x64xbf16> to vector<64x64xbf16>
    %c0_34 = arith.constant 0 : index
    %c0_35 = arith.constant 0 : index
    %c0_36 = arith.constant 0 : index
    %c0_37 = arith.constant 0 : index
    %54 = vector.load %arg12[%c0_34, %c0_35, %c0_36, %c0_37] : memref<1x3x64x64xbf16, #tpu.memory_space<vmem>>, vector<1x1x64x64xbf16>
    %55 = vector.shape_cast %54 : vector<1x1x64x64xbf16> to vector<64x64xbf16>
    %56 = arith.truncf %47 : vector<8x64xf32> to vector<8x64xbf16>
    %cst_38 = arith.constant dense<0.000000e+00> : vector<8x64xf32>
    %57 = tpu.matmul %56, %49, %cst_38 {dimension_numbers = #tpu.dot_dimension_numbers<[1], [0], [0], [1], [0, 0, 1, 1], [], []>} : vector<8x64xbf16>, vector<64x64xbf16>, vector<8x64xf32> -> vector<8x64xf32>
    %58 = arith.truncf %57 : vector<8x64xf32> to vector<8x64xbf16>
    %cst_39 = arith.constant dense<0.000000e+00> : vector<8x64xf32>
    %59 = tpu.matmul %56, %51, %cst_39 {dimension_numbers = #tpu.dot_dimension_numbers<[1], [0], [0], [1], [0, 0, 1, 1], [], []>} : vector<8x64xbf16>, vector<64x64xbf16>, vector<8x64xf32> -> vector<8x64xf32>
    %60 = arith.truncf %59 : vector<8x64xf32> to vector<8x64xbf16>
    %cst_40 = arith.constant dense<0.000000e+00> : vector<8x64xf32>
    %61 = tpu.matmul %56, %53, %cst_40 {dimension_numbers = #tpu.dot_dimension_numbers<[1], [0], [0], [1], [0, 0, 1, 1], [], []>} : vector<8x64xbf16>, vector<64x64xbf16>, vector<8x64xf32> -> vector<8x64xf32>
    %62 = arith.truncf %61 : vector<8x64xf32> to vector<8x64xbf16>
    %63 = vector.extract_strided_slice %58 {offsets = [0, 0], sizes = [8, 16], strides = [1, 1]} : vector<8x64xbf16> to vector<8x16xbf16>
    %64 = vector.extract_strided_slice %60 {offsets = [0, 0], sizes = [8, 16], strides = [1, 1]} : vector<8x64xbf16> to vector<8x16xbf16>
    %65 = vector.extract_strided_slice %62 {offsets = [0, 0], sizes = [8, 16], strides = [1, 1]} : vector<8x64xbf16> to vector<8x16xbf16>
    %cst_41 = arith.constant dense<0.000000e+00> : vector<8x8xf32>
    %66 = tpu.matmul %63, %64, %cst_41 {dimension_numbers = #tpu.dot_dimension_numbers<[1], [1], [0], [0], [0, 0, 1, 0], [], []>} : vector<8x16xbf16>, vector<8x16xbf16>, vector<8x8xf32> -> vector<8x8xf32>
    %67 = arith.addf %66, %5 : vector<8x8xf32>
    %cst_42 = arith.constant dense<0xFF800000> : vector<8xf32>
    %68 = vector.multi_reduction <maximumf>, %67, %cst_42 [1] : vector<8x8xf32> to vector<8xf32>
    %69 = vector.shape_cast %68 : vector<8xf32> to vector<8x1xf32>
    %70 = vector.broadcast %69 : vector<8x1xf32> to vector<8x8xf32>
    %71 = arith.subf %67, %70 : vector<8x8xf32>
    %72 = math.exp %71 : vector<8x8xf32>
    %cst_43 = arith.constant dense<0.000000e+00> : vector<8xf32>
    %73 = vector.multi_reduction <add>, %72, %cst_43 [1] : vector<8x8xf32> to vector<8xf32>
    %74 = vector.shape_cast %73 : vector<8xf32> to vector<8x1xf32>
    %75 = tpu.reciprocal %74 {approx = true} : vector<8x1xf32> -> vector<8x1xf32>
    %76 = vector.broadcast %75 : vector<8x1xf32> to vector<8x8xf32>
    %77 = arith.mulf %72, %76 : vector<8x8xf32>
    %78 = arith.truncf %77 : vector<8x8xf32> to vector<8x8xbf16>
    %cst_44 = arith.constant dense<0.000000e+00> : vector<8x16xf32>
    %79 = tpu.matmul %78, %65, %cst_44 {dimension_numbers = #tpu.dot_dimension_numbers<[1], [0], [0], [1], [0, 0, 1, 1], [], []>} : vector<8x8xbf16>, vector<8x16xbf16>, vector<8x16xf32> -> vector<8x16xf32>
    %c0_45 = arith.constant 0 : index
    %c0_46 = arith.constant 0 : index
    %80 = vector.load %arg21[%c0_45, %c0_46] : memref<8x64xf32, #tpu.memory_space<vmem>>, vector<8x16xf32>
    tpu.vector_store %arg21[%c0_45, %c0_46], %79 {strides = array<i32>} : memref<8x64xf32, #tpu.memory_space<vmem>>, vector<8x16xf32>,
    %81 = vector.extract_strided_slice %58 {offsets = [0, 16], sizes = [8, 16], strides = [1, 1]} : vector<8x64xbf16> to vector<8x16xbf16>
    %82 = vector.extract_strided_slice %60 {offsets = [0, 16], sizes = [8, 16], strides = [1, 1]} : vector<8x64xbf16> to vector<8x16xbf16>
    %83 = vector.extract_strided_slice %62 {offsets = [0, 16], sizes = [8, 16], strides = [1, 1]} : vector<8x64xbf16> to vector<8x16xbf16>
    %cst_47 = arith.constant dense<0.000000e+00> : vector<8x8xf32>
    %84 = tpu.matmul %81, %82, %cst_47 {dimension_numbers = #tpu.dot_dimension_numbers<[1], [1], [0], [0], [0, 0, 1, 0], [], []>} : vector<8x16xbf16>, vector<8x16xbf16>, vector<8x8xf32> -> vector<8x8xf32>
    %85 = arith.addf %84, %5 : vector<8x8xf32>
    %cst_48 = arith.constant dense<0xFF800000> : vector<8xf32>
    %86 = vector.multi_reduction <maximumf>, %85, %cst_48 [1] : vector<8x8xf32> to vector<8xf32>
    %87 = vector.shape_cast %86 : vector<8xf32> to vector<8x1xf32>
    %88 = vector.broadcast %87 : vector<8x1xf32> to vector<8x8xf32>
    %89 = arith.subf %85, %88 : vector<8x8xf32>
    %90 = math.exp %89 : vector<8x8xf32>
    %cst_49 = arith.constant dense<0.000000e+00> : vector<8xf32>
    %91 = vector.multi_reduction <add>, %90, %cst_49 [1] : vector<8x8xf32> to vector<8xf32>
    %92 = vector.shape_cast %91 : vector<8xf32> to vector<8x1xf32>
    %93 = tpu.reciprocal %92 {approx = true} : vector<8x1xf32> -> vector<8x1xf32>
    %94 = vector.broadcast %93 : vector<8x1xf32> to vector<8x8xf32>
    %95 = arith.mulf %90, %94 : vector<8x8xf32>
    %96 = arith.truncf %95 : vector<8x8xf32> to vector<8x8xbf16>
    %cst_50 = arith.constant dense<0.000000e+00> : vector<8x16xf32>
    %97 = tpu.matmul %96, %83, %cst_50 {dimension_numbers = #tpu.dot_dimension_numbers<[1], [0], [0], [1], [0, 0, 1, 1], [], []>} : vector<8x8xbf16>, vector<8x16xbf16>, vector<8x16xf32> -> vector<8x16xf32>
    %c0_51 = arith.constant 0 : index
    %c16 = arith.constant 16 : index
    %98 = vector.load %arg21[%c0_51, %c16] : memref<8x64xf32, #tpu.memory_space<vmem>>, vector<8x16xf32>
    tpu.vector_store %arg21[%c0_51, %c16], %97 {strides = array<i32>} : memref<8x64xf32, #tpu.memory_space<vmem>>, vector<8x16xf32>,
    %99 = vector.extract_strided_slice %58 {offsets = [0, 32], sizes = [8, 16], strides = [1, 1]} : vector<8x64xbf16> to vector<8x16xbf16>
    %100 = vector.extract_strided_slice %60 {offsets = [0, 32], sizes = [8, 16], strides = [1, 1]} : vector<8x64xbf16> to vector<8x16xbf16>
    %101 = vector.extract_strided_slice %62 {offsets = [0, 32], sizes = [8, 16], strides = [1, 1]} : vector<8x64xbf16> to vector<8x16xbf16>
    %cst_52 = arith.constant dense<0.000000e+00> : vector<8x8xf32>
    %102 = tpu.matmul %99, %100, %cst_52 {dimension_numbers = #tpu.dot_dimension_numbers<[1], [1], [0], [0], [0, 0, 1, 0], [], []>} : vector<8x16xbf16>, vector<8x16xbf16>, vector<8x8xf32> -> vector<8x8xf32>
    %103 = arith.addf %102, %5 : vector<8x8xf32>
    %cst_53 = arith.constant dense<0xFF800000> : vector<8xf32>
    %104 = vector.multi_reduction <maximumf>, %103, %cst_53 [1] : vector<8x8xf32> to vector<8xf32>
    %105 = vector.shape_cast %104 : vector<8xf32> to vector<8x1xf32>
    %106 = vector.broadcast %105 : vector<8x1xf32> to vector<8x8xf32>
    %107 = arith.subf %103, %106 : vector<8x8xf32>
    %108 = math.exp %107 : vector<8x8xf32>
    %cst_54 = arith.constant dense<0.000000e+00> : vector<8xf32>
    %109 = vector.multi_reduction <add>, %108, %cst_54 [1] : vector<8x8xf32> to vector<8xf32>
    %110 = vector.shape_cast %109 : vector<8xf32> to vector<8x1xf32>
    %111 = tpu.reciprocal %110 {approx = true} : vector<8x1xf32> -> vector<8x1xf32>
    %112 = vector.broadcast %111 : vector<8x1xf32> to vector<8x8xf32>
    %113 = arith.mulf %108, %112 : vector<8x8xf32>
    %114 = arith.truncf %113 : vector<8x8xf32> to vector<8x8xbf16>
    %cst_55 = arith.constant dense<0.000000e+00> : vector<8x16xf32>
    %115 = tpu.matmul %114, %101, %cst_55 {dimension_numbers = #tpu.dot_dimension_numbers<[1], [0], [0], [1], [0, 0, 1, 1], [], []>} : vector<8x8xbf16>, vector<8x16xbf16>, vector<8x16xf32> -> vector<8x16xf32>
    %c0_56 = arith.constant 0 : index
    %c32 = arith.constant 32 : index
    %116 = vector.load %arg21[%c0_56, %c32] : memref<8x64xf32, #tpu.memory_space<vmem>>, vector<8x16xf32>
    tpu.vector_store %arg21[%c0_56, %c32], %115 {strides = array<i32>} : memref<8x64xf32, #tpu.memory_space<vmem>>, vector<8x16xf32>,
    %117 = vector.extract_strided_slice %58 {offsets = [0, 48], sizes = [8, 16], strides = [1, 1]} : vector<8x64xbf16> to vector<8x16xbf16>
    %118 = vector.extract_strided_slice %60 {offsets = [0, 48], sizes = [8, 16], strides = [1, 1]} : vector<8x64xbf16> to vector<8x16xbf16>
    %119 = vector.extract_strided_slice %62 {offsets = [0, 48], sizes = [8, 16], strides = [1, 1]} : vector<8x64xbf16> to vector<8x16xbf16>
    %cst_57 = arith.constant dense<0.000000e+00> : vector<8x8xf32>
    %120 = tpu.matmul %117, %118, %cst_57 {dimension_numbers = #tpu.dot_dimension_numbers<[1], [1], [0], [0], [0, 0, 1, 0], [], []>} : vector<8x16xbf16>, vector<8x16xbf16>, vector<8x8xf32> -> vector<8x8xf32>
    %121 = arith.addf %120, %5 : vector<8x8xf32>
    %cst_58 = arith.constant dense<0xFF800000> : vector<8xf32>
    %122 = vector.multi_reduction <maximumf>, %121, %cst_58 [1] : vector<8x8xf32> to vector<8xf32>
    %123 = vector.shape_cast %122 : vector<8xf32> to vector<8x1xf32>
    %124 = vector.broadcast %123 : vector<8x1xf32> to vector<8x8xf32>
    %125 = arith.subf %121, %124 : vector<8x8xf32>
    %126 = math.exp %125 : vector<8x8xf32>
    %cst_59 = arith.constant dense<0.000000e+00> : vector<8xf32>
    %127 = vector.multi_reduction <add>, %126, %cst_59 [1] : vector<8x8xf32> to vector<8xf32>
    %128 = vector.shape_cast %127 : vector<8xf32> to vector<8x1xf32>
    %129 = tpu.reciprocal %128 {approx = true} : vector<8x1xf32> -> vector<8x1xf32>
    %130 = vector.broadcast %129 : vector<8x1xf32> to vector<8x8xf32>
    %131 = arith.mulf %126, %130 : vector<8x8xf32>
    %132 = arith.truncf %131 : vector<8x8xf32> to vector<8x8xbf16>
    %cst_60 = arith.constant dense<0.000000e+00> : vector<8x16xf32>
    %133 = tpu.matmul %132, %119, %cst_60 {dimension_numbers = #tpu.dot_dimension_numbers<[1], [0], [0], [1], [0, 0, 1, 1], [], []>} : vector<8x8xbf16>, vector<8x16xbf16>, vector<8x16xf32> -> vector<8x16xf32>
    %c0_61 = arith.constant 0 : index
    %c48 = arith.constant 48 : index
    %134 = vector.load %arg21[%c0_61, %c48] : memref<8x64xf32, #tpu.memory_space<vmem>>, vector<8x16xf32>
    tpu.vector_store %arg21[%c0_61, %c48], %133 {strides = array<i32>} : memref<8x64xf32, #tpu.memory_space<vmem>>, vector<8x16xf32>,
    %c0_62 = arith.constant 0 : index
    %c0_63 = arith.constant 0 : index
    %135 = vector.load %arg21[%c0_62, %c0_63] : memref<8x64xf32, #tpu.memory_space<vmem>>, vector<8x64xf32>
    %136 = arith.truncf %135 : vector<8x64xf32> to vector<8x64xbf16>
    %cst_64 = arith.constant dense<0.000000e+00> : vector<8x64xf32>
    %137 = tpu.matmul %136, %55, %cst_64 {dimension_numbers = #tpu.dot_dimension_numbers<[1], [0], [0], [1], [0, 0, 1, 1], [], []>} : vector<8x64xbf16>, vector<64x64xbf16>, vector<8x64xf32> -> vector<8x64xf32>
    %138 = arith.addf %18, %137 : vector<8x64xf32>
    %c0_65 = arith.constant 0 : index
    %c1 = arith.constant 1 : index
    %c0_66 = arith.constant 0 : index
    %c0_67 = arith.constant 0 : index
    %139 = vector.load %arg7[%c0_65, %c1, %c0_66, %c0_67] : memref<1x4x1x64xf32, #tpu.memory_space<vmem>>, vector<1x1x1x64xf32>
    %140 = vector.shape_cast %139 : vector<1x1x1x64xf32> to vector<1x64xf32>
    %c0_68 = arith.constant 0 : index
    %c1_69 = arith.constant 1 : index
    %c0_70 = arith.constant 0 : index
    %c0_71 = arith.constant 0 : index
    %141 = vector.load %arg8[%c0_68, %c1_69, %c0_70, %c0_71] : memref<1x4x1x64xf32, #tpu.memory_space<vmem>>, vector<1x1x1x64xf32>
    %142 = vector.shape_cast %141 : vector<1x1x1x64xf32> to vector<1x64xf32>
    %cst_72 = arith.constant dense<0.000000e+00> : vector<8xf32>
    %143 = vector.multi_reduction <add>, %138, %cst_72 [1] : vector<8x64xf32> to vector<8xf32>
    %144 = vector.shape_cast %143 : vector<8xf32> to vector<8x1xf32>
    %cst_73 = arith.constant 6.400000e+01 : f32
    %145 = vector.broadcast %cst_73 : f32 to vector<8x1xf32>
    %146 = arith.divf %144, %145 : vector<8x1xf32>
    %147 = vector.broadcast %146 : vector<8x1xf32> to vector<8x64xf32>
    %148 = arith.subf %138, %147 : vector<8x64xf32>
    %149 = arith.mulf %148, %148 : vector<8x64xf32>
    %cst_74 = arith.constant dense<0.000000e+00> : vector<8xf32>
    %150 = vector.multi_reduction <add>, %149, %cst_74 [1] : vector<8x64xf32> to vector<8xf32>
    %151 = vector.shape_cast %150 : vector<8xf32> to vector<8x1xf32>
    %cst_75 = arith.constant 0.0158730168 : f32
    %152 = vector.broadcast %cst_75 : f32 to vector<8x1xf32>
    %153 = arith.mulf %151, %152 : vector<8x1xf32>
    %154 = math.sqrt %153 : vector<8x1xf32>
    %cst_76 = arith.constant 9.99999997E-7 : f32
    %155 = vector.broadcast %cst_76 : f32 to vector<8x1xf32>
    %156 = arith.addf %154, %155 : vector<8x1xf32>
    %157 = tpu.reciprocal %156 {approx = true} : vector<8x1xf32> -> vector<8x1xf32>
    %158 = vector.broadcast %157 : vector<8x1xf32> to vector<8x64xf32>
    %159 = arith.mulf %148, %158 : vector<8x64xf32>
    %160 = vector.broadcast %140 : vector<1x64xf32> to vector<8x64xf32>
    %161 = arith.mulf %160, %159 : vector<8x64xf32>
    %162 = vector.broadcast %142 : vector<1x64xf32> to vector<8x64xf32>
    %163 = arith.addf %161, %162 : vector<8x64xf32>
    %c0_77 = arith.constant 0 : index
    %c1_78 = arith.constant 1 : index
    %c0_79 = arith.constant 0 : index
    %c0_80 = arith.constant 0 : index
    %164 = vector.load %arg9[%c0_77, %c1_78, %c0_79, %c0_80] : memref<1x3x64x64xbf16, #tpu.memory_space<vmem>>, vector<1x1x64x64xbf16>
    %165 = vector.shape_cast %164 : vector<1x1x64x64xbf16> to vector<64x64xbf16>
    %c0_81 = arith.constant 0 : index
    %c1_82 = arith.constant 1 : index
    %c0_83 = arith.constant 0 : index
    %c0_84 = arith.constant 0 : index
    %166 = vector.load %arg10[%c0_81, %c1_82, %c0_83, %c0_84] : memref<1x3x64x64xbf16, #tpu.memory_space<vmem>>, vector<1x1x64x64xbf16>
    %167 = vector.shape_cast %166 : vector<1x1x64x64xbf16> to vector<64x64xbf16>
    %c0_85 = arith.constant 0 : index
    %c1_86 = arith.constant 1 : index
    %c0_87 = arith.constant 0 : index
    %c0_88 = arith.constant 0 : index
    %168 = vector.load %arg11[%c0_85, %c1_86, %c0_87, %c0_88] : memref<1x3x64x64xbf16, #tpu.memory_space<vmem>>, vector<1x1x64x64xbf16>
    %169 = vector.shape_cast %168 : vector<1x1x64x64xbf16> to vector<64x64xbf16>
    %c0_89 = arith.constant 0 : index
    %c1_90 = arith.constant 1 : index
    %c0_91 = arith.constant 0 : index
    %c0_92 = arith.constant 0 : index
    %170 = vector.load %arg12[%c0_89, %c1_90, %c0_91, %c0_92] : memref<1x3x64x64xbf16, #tpu.memory_space<vmem>>, vector<1x1x64x64xbf16>
    %171 = vector.shape_cast %170 : vector<1x1x64x64xbf16> to vector<64x64xbf16>
    %172 = arith.truncf %163 : vector<8x64xf32> to vector<8x64xbf16>
    %173 = arith.truncf %20 : vector<12x64xf32> to vector<12x64xbf16>
    %cst_93 = arith.constant dense<0.000000e+00> : vector<8x64xf32>
    %174 = tpu.matmul %172, %165, %cst_93 {dimension_numbers = #tpu.dot_dimension_numbers<[1], [0], [0], [1], [0, 0, 1, 1], [], []>} : vector<8x64xbf16>, vector<64x64xbf16>, vector<8x64xf32> -> vector<8x64xf32>
    %175 = arith.truncf %174 : vector<8x64xf32> to vector<8x64xbf16>
    %cst_94 = arith.constant dense<0.000000e+00> : vector<12x64xf32>
    %176 = tpu.matmul %173, %167, %cst_94 {dimension_numbers = #tpu.dot_dimension_numbers<[1], [0], [0], [1], [0, 0, 1, 1], [], []>} : vector<12x64xbf16>, vector<64x64xbf16>, vector<12x64xf32> -> vector<12x64xf32>
    %177 = arith.truncf %176 : vector<12x64xf32> to vector<12x64xbf16>
    %cst_95 = arith.constant dense<0.000000e+00> : vector<12x64xf32>
    %178 = tpu.matmul %173, %169, %cst_95 {dimension_numbers = #tpu.dot_dimension_numbers<[1], [0], [0], [1], [0, 0, 1, 1], [], []>} : vector<12x64xbf16>, vector<64x64xbf16>, vector<12x64xf32> -> vector<12x64xf32>
    %179 = arith.truncf %178 : vector<12x64xf32> to vector<12x64xbf16>
    %180 = vector.extract_strided_slice %175 {offsets = [0, 0], sizes = [8, 16], strides = [1, 1]} : vector<8x64xbf16> to vector<8x16xbf16>
    %181 = vector.extract_strided_slice %177 {offsets = [0, 0], sizes = [12, 16], strides = [1, 1]} : vector<12x64xbf16> to vector<12x16xbf16>
    %182 = vector.extract_strided_slice %179 {offsets = [0, 0], sizes = [12, 16], strides = [1, 1]} : vector<12x64xbf16> to vector<12x16xbf16>
    %cst_96 = arith.constant dense<0.000000e+00> : vector<8x12xf32>
    %183 = tpu.matmul %180, %181, %cst_96 {dimension_numbers = #tpu.dot_dimension_numbers<[1], [1], [0], [0], [0, 0, 1, 0], [], []>} : vector<8x16xbf16>, vector<12x16xbf16>, vector<8x12xf32> -> vector<8x12xf32>
    %cst_97 = arith.constant dense<0xFF800000> : vector<8xf32>
    %184 = vector.multi_reduction <maximumf>, %183, %cst_97 [1] : vector<8x12xf32> to vector<8xf32>
    %185 = vector.shape_cast %184 : vector<8xf32> to vector<8x1xf32>
    %186 = vector.broadcast %185 : vector<8x1xf32> to vector<8x12xf32>
    %187 = arith.subf %183, %186 : vector<8x12xf32>
    %188 = math.exp %187 : vector<8x12xf32>
    %cst_98 = arith.constant dense<0.000000e+00> : vector<8xf32>
    %189 = vector.multi_reduction <add>, %188, %cst_98 [1] : vector<8x12xf32> to vector<8xf32>
    %190 = vector.shape_cast %189 : vector<8xf32> to vector<8x1xf32>
    %191 = tpu.reciprocal %190 {approx = true} : vector<8x1xf32> -> vector<8x1xf32>
    %192 = vector.broadcast %191 : vector<8x1xf32> to vector<8x12xf32>
    %193 = arith.mulf %188, %192 : vector<8x12xf32>
    %194 = arith.truncf %193 : vector<8x12xf32> to vector<8x12xbf16>
    %cst_99 = arith.constant dense<0.000000e+00> : vector<8x16xf32>
    %195 = tpu.matmul %194, %182, %cst_99 {dimension_numbers = #tpu.dot_dimension_numbers<[1], [0], [0], [1], [0, 0, 1, 1], [], []>} : vector<8x12xbf16>, vector<12x16xbf16>, vector<8x16xf32> -> vector<8x16xf32>
    %c0_100 = arith.constant 0 : index
    %c0_101 = arith.constant 0 : index
    %196 = vector.load %arg21[%c0_100, %c0_101] : memref<8x64xf32, #tpu.memory_space<vmem>>, vector<8x16xf32>
    tpu.vector_store %arg21[%c0_100, %c0_101], %195 {strides = array<i32>} : memref<8x64xf32, #tpu.memory_space<vmem>>, vector<8x16xf32>,
    %197 = vector.extract_strided_slice %175 {offsets = [0, 16], sizes = [8, 16], strides = [1, 1]} : vector<8x64xbf16> to vector<8x16xbf16>
    %198 = vector.extract_strided_slice %177 {offsets = [0, 16], sizes = [12, 16], strides = [1, 1]} : vector<12x64xbf16> to vector<12x16xbf16>
    %199 = vector.extract_strided_slice %179 {offsets = [0, 16], sizes = [12, 16], strides = [1, 1]} : vector<12x64xbf16> to vector<12x16xbf16>
    %cst_102 = arith.constant dense<0.000000e+00> : vector<8x12xf32>
    %200 = tpu.matmul %197, %198, %cst_102 {dimension_numbers = #tpu.dot_dimension_numbers<[1], [1], [0], [0], [0, 0, 1, 0], [], []>} : vector<8x16xbf16>, vector<12x16xbf16>, vector<8x12xf32> -> vector<8x12xf32>
    %cst_103 = arith.constant dense<0xFF800000> : vector<8xf32>
    %201 = vector.multi_reduction <maximumf>, %200, %cst_103 [1] : vector<8x12xf32> to vector<8xf32>
    %202 = vector.shape_cast %201 : vector<8xf32> to vector<8x1xf32>
    %203 = vector.broadcast %202 : vector<8x1xf32> to vector<8x12xf32>
    %204 = arith.subf %200, %203 : vector<8x12xf32>
    %205 = math.exp %204 : vector<8x12xf32>
    %cst_104 = arith.constant dense<0.000000e+00> : vector<8xf32>
    %206 = vector.multi_reduction <add>, %205, %cst_104 [1] : vector<8x12xf32> to vector<8xf32>
    %207 = vector.shape_cast %206 : vector<8xf32> to vector<8x1xf32>
    %208 = tpu.reciprocal %207 {approx = true} : vector<8x1xf32> -> vector<8x1xf32>
    %209 = vector.broadcast %208 : vector<8x1xf32> to vector<8x12xf32>
    %210 = arith.mulf %205, %209 : vector<8x12xf32>
    %211 = arith.truncf %210 : vector<8x12xf32> to vector<8x12xbf16>
    %cst_105 = arith.constant dense<0.000000e+00> : vector<8x16xf32>
    %212 = tpu.matmul %211, %199, %cst_105 {dimension_numbers = #tpu.dot_dimension_numbers<[1], [0], [0], [1], [0, 0, 1, 1], [], []>} : vector<8x12xbf16>, vector<12x16xbf16>, vector<8x16xf32> -> vector<8x16xf32>
    %c0_106 = arith.constant 0 : index
    %c16_107 = arith.constant 16 : index
    %213 = vector.load %arg21[%c0_106, %c16_107] : memref<8x64xf32, #tpu.memory_space<vmem>>, vector<8x16xf32>
    tpu.vector_store %arg21[%c0_106, %c16_107], %212 {strides = array<i32>} : memref<8x64xf32, #tpu.memory_space<vmem>>, vector<8x16xf32>,
    %214 = vector.extract_strided_slice %175 {offsets = [0, 32], sizes = [8, 16], strides = [1, 1]} : vector<8x64xbf16> to vector<8x16xbf16>
    %215 = vector.extract_strided_slice %177 {offsets = [0, 32], sizes = [12, 16], strides = [1, 1]} : vector<12x64xbf16> to vector<12x16xbf16>
    %216 = vector.extract_strided_slice %179 {offsets = [0, 32], sizes = [12, 16], strides = [1, 1]} : vector<12x64xbf16> to vector<12x16xbf16>
    %cst_108 = arith.constant dense<0.000000e+00> : vector<8x12xf32>
    %217 = tpu.matmul %214, %215, %cst_108 {dimension_numbers = #tpu.dot_dimension_numbers<[1], [1], [0], [0], [0, 0, 1, 0], [], []>} : vector<8x16xbf16>, vector<12x16xbf16>, vector<8x12xf32> -> vector<8x12xf32>
    %cst_109 = arith.constant dense<0xFF800000> : vector<8xf32>
    %218 = vector.multi_reduction <maximumf>, %217, %cst_109 [1] : vector<8x12xf32> to vector<8xf32>
    %219 = vector.shape_cast %218 : vector<8xf32> to vector<8x1xf32>
    %220 = vector.broadcast %219 : vector<8x1xf32> to vector<8x12xf32>
    %221 = arith.subf %217, %220 : vector<8x12xf32>
    %222 = math.exp %221 : vector<8x12xf32>
    %cst_110 = arith.constant dense<0.000000e+00> : vector<8xf32>
    %223 = vector.multi_reduction <add>, %222, %cst_110 [1] : vector<8x12xf32> to vector<8xf32>
    %224 = vector.shape_cast %223 : vector<8xf32> to vector<8x1xf32>
    %225 = tpu.reciprocal %224 {approx = true} : vector<8x1xf32> -> vector<8x1xf32>
    %226 = vector.broadcast %225 : vector<8x1xf32> to vector<8x12xf32>
    %227 = arith.mulf %222, %226 : vector<8x12xf32>
    %228 = arith.truncf %227 : vector<8x12xf32> to vector<8x12xbf16>
    %cst_111 = arith.constant dense<0.000000e+00> : vector<8x16xf32>
    %229 = tpu.matmul %228, %216, %cst_111 {dimension_numbers = #tpu.dot_dimension_numbers<[1], [0], [0], [1], [0, 0, 1, 1], [], []>} : vector<8x12xbf16>, vector<12x16xbf16>, vector<8x16xf32> -> vector<8x16xf32>
    %c0_112 = arith.constant 0 : index
    %c32_113 = arith.constant 32 : index
    %230 = vector.load %arg21[%c0_112, %c32_113] : memref<8x64xf32, #tpu.memory_space<vmem>>, vector<8x16xf32>
    tpu.vector_store %arg21[%c0_112, %c32_113], %229 {strides = array<i32>} : memref<8x64xf32, #tpu.memory_space<vmem>>, vector<8x16xf32>,
    %231 = vector.extract_strided_slice %175 {offsets = [0, 48], sizes = [8, 16], strides = [1, 1]} : vector<8x64xbf16> to vector<8x16xbf16>
    %232 = vector.extract_strided_slice %177 {offsets = [0, 48], sizes = [12, 16], strides = [1, 1]} : vector<12x64xbf16> to vector<12x16xbf16>
    %233 = vector.extract_strided_slice %179 {offsets = [0, 48], sizes = [12, 16], strides = [1, 1]} : vector<12x64xbf16> to vector<12x16xbf16>
    %cst_114 = arith.constant dense<0.000000e+00> : vector<8x12xf32>
    %234 = tpu.matmul %231, %232, %cst_114 {dimension_numbers = #tpu.dot_dimension_numbers<[1], [1], [0], [0], [0, 0, 1, 0], [], []>} : vector<8x16xbf16>, vector<12x16xbf16>, vector<8x12xf32> -> vector<8x12xf32>
    %cst_115 = arith.constant dense<0xFF800000> : vector<8xf32>
    %235 = vector.multi_reduction <maximumf>, %234, %cst_115 [1] : vector<8x12xf32> to vector<8xf32>
    %236 = vector.shape_cast %235 : vector<8xf32> to vector<8x1xf32>
    %237 = vector.broadcast %236 : vector<8x1xf32> to vector<8x12xf32>
    %238 = arith.subf %234, %237 : vector<8x12xf32>
    %239 = math.exp %238 : vector<8x12xf32>
    %cst_116 = arith.constant dense<0.000000e+00> : vector<8xf32>
    %240 = vector.multi_reduction <add>, %239, %cst_116 [1] : vector<8x12xf32> to vector<8xf32>
    %241 = vector.shape_cast %240 : vector<8xf32> to vector<8x1xf32>
    %242 = tpu.reciprocal %241 {approx = true} : vector<8x1xf32> -> vector<8x1xf32>
    %243 = vector.broadcast %242 : vector<8x1xf32> to vector<8x12xf32>
    %244 = arith.mulf %239, %243 : vector<8x12xf32>
    %245 = arith.truncf %244 : vector<8x12xf32> to vector<8x12xbf16>
    %cst_117 = arith.constant dense<0.000000e+00> : vector<8x16xf32>
    %246 = tpu.matmul %245, %233, %cst_117 {dimension_numbers = #tpu.dot_dimension_numbers<[1], [0], [0], [1], [0, 0, 1, 1], [], []>} : vector<8x12xbf16>, vector<12x16xbf16>, vector<8x16xf32> -> vector<8x16xf32>
    %c0_118 = arith.constant 0 : index
    %c48_119 = arith.constant 48 : index
    %247 = vector.load %arg21[%c0_118, %c48_119] : memref<8x64xf32, #tpu.memory_space<vmem>>, vector<8x16xf32>
    tpu.vector_store %arg21[%c0_118, %c48_119], %246 {strides = array<i32>} : memref<8x64xf32, #tpu.memory_space<vmem>>, vector<8x16xf32>,
    %c0_120 = arith.constant 0 : index
    %c0_121 = arith.constant 0 : index
    %248 = vector.load %arg21[%c0_120, %c0_121] : memref<8x64xf32, #tpu.memory_space<vmem>>, vector<8x64xf32>
    %249 = arith.truncf %248 : vector<8x64xf32> to vector<8x64xbf16>
    %cst_122 = arith.constant dense<0.000000e+00> : vector<8x64xf32>
    %250 = tpu.matmul %249, %171, %cst_122 {dimension_numbers = #tpu.dot_dimension_numbers<[1], [0], [0], [1], [0, 0, 1, 1], [], []>} : vector<8x64xbf16>, vector<64x64xbf16>, vector<8x64xf32> -> vector<8x64xf32>
    %251 = arith.addf %138, %250 : vector<8x64xf32>
    %c0_123 = arith.constant 0 : index
    %c2 = arith.constant 2 : index
    %c0_124 = arith.constant 0 : index
    %c0_125 = arith.constant 0 : index
    %252 = vector.load %arg7[%c0_123, %c2, %c0_124, %c0_125] : memref<1x4x1x64xf32, #tpu.memory_space<vmem>>, vector<1x1x1x64xf32>
    %253 = vector.shape_cast %252 : vector<1x1x1x64xf32> to vector<1x64xf32>
    %c0_126 = arith.constant 0 : index
    %c2_127 = arith.constant 2 : index
    %c0_128 = arith.constant 0 : index
    %c0_129 = arith.constant 0 : index
    %254 = vector.load %arg8[%c0_126, %c2_127, %c0_128, %c0_129] : memref<1x4x1x64xf32, #tpu.memory_space<vmem>>, vector<1x1x1x64xf32>
    %255 = vector.shape_cast %254 : vector<1x1x1x64xf32> to vector<1x64xf32>
    %cst_130 = arith.constant dense<0.000000e+00> : vector<8xf32>
    %256 = vector.multi_reduction <add>, %251, %cst_130 [1] : vector<8x64xf32> to vector<8xf32>
    %257 = vector.shape_cast %256 : vector<8xf32> to vector<8x1xf32>
    %cst_131 = arith.constant 6.400000e+01 : f32
    %258 = vector.broadcast %cst_131 : f32 to vector<8x1xf32>
    %259 = arith.divf %257, %258 : vector<8x1xf32>
    %260 = vector.broadcast %259 : vector<8x1xf32> to vector<8x64xf32>
    %261 = arith.subf %251, %260 : vector<8x64xf32>
    %262 = arith.mulf %261, %261 : vector<8x64xf32>
    %cst_132 = arith.constant dense<0.000000e+00> : vector<8xf32>
    %263 = vector.multi_reduction <add>, %262, %cst_132 [1] : vector<8x64xf32> to vector<8xf32>
    %264 = vector.shape_cast %263 : vector<8xf32> to vector<8x1xf32>
    %cst_133 = arith.constant 0.0158730168 : f32
    %265 = vector.broadcast %cst_133 : f32 to vector<8x1xf32>
    %266 = arith.mulf %264, %265 : vector<8x1xf32>
    %267 = math.sqrt %266 : vector<8x1xf32>
    %cst_134 = arith.constant 9.99999997E-7 : f32
    %268 = vector.broadcast %cst_134 : f32 to vector<8x1xf32>
    %269 = arith.addf %267, %268 : vector<8x1xf32>
    %270 = tpu.reciprocal %269 {approx = true} : vector<8x1xf32> -> vector<8x1xf32>
    %271 = vector.broadcast %270 : vector<8x1xf32> to vector<8x64xf32>
    %272 = arith.mulf %261, %271 : vector<8x64xf32>
    %273 = vector.broadcast %253 : vector<1x64xf32> to vector<8x64xf32>
    %274 = arith.mulf %273, %272 : vector<8x64xf32>
    %275 = vector.broadcast %255 : vector<1x64xf32> to vector<8x64xf32>
    %276 = arith.addf %274, %275 : vector<8x64xf32>
    %c0_135 = arith.constant 0 : index
    %c2_136 = arith.constant 2 : index
    %c0_137 = arith.constant 0 : index
    %c0_138 = arith.constant 0 : index
    %277 = vector.load %arg9[%c0_135, %c2_136, %c0_137, %c0_138] : memref<1x3x64x64xbf16, #tpu.memory_space<vmem>>, vector<1x1x64x64xbf16>
    %278 = vector.shape_cast %277 : vector<1x1x64x64xbf16> to vector<64x64xbf16>
    %c0_139 = arith.constant 0 : index
    %c2_140 = arith.constant 2 : index
    %c0_141 = arith.constant 0 : index
    %c0_142 = arith.constant 0 : index
    %279 = vector.load %arg10[%c0_139, %c2_140, %c0_141, %c0_142] : memref<1x3x64x64xbf16, #tpu.memory_space<vmem>>, vector<1x1x64x64xbf16>
    %280 = vector.shape_cast %279 : vector<1x1x64x64xbf16> to vector<64x64xbf16>
    %c0_143 = arith.constant 0 : index
    %c2_144 = arith.constant 2 : index
    %c0_145 = arith.constant 0 : index
    %c0_146 = arith.constant 0 : index
    %281 = vector.load %arg11[%c0_143, %c2_144, %c0_145, %c0_146] : memref<1x3x64x64xbf16, #tpu.memory_space<vmem>>, vector<1x1x64x64xbf16>
    %282 = vector.shape_cast %281 : vector<1x1x64x64xbf16> to vector<64x64xbf16>
    %c0_147 = arith.constant 0 : index
    %c2_148 = arith.constant 2 : index
    %c0_149 = arith.constant 0 : index
    %c0_150 = arith.constant 0 : index
    %283 = vector.load %arg12[%c0_147, %c2_148, %c0_149, %c0_150] : memref<1x3x64x64xbf16, #tpu.memory_space<vmem>>, vector<1x1x64x64xbf16>
    %284 = vector.shape_cast %283 : vector<1x1x64x64xbf16> to vector<64x64xbf16>
    %285 = arith.truncf %276 : vector<8x64xf32> to vector<8x64xbf16>
    %286 = arith.truncf %22 : vector<6x64xf32> to vector<6x64xbf16>
    %cst_151 = arith.constant dense<0.000000e+00> : vector<8x64xf32>
    %287 = tpu.matmul %285, %278, %cst_151 {dimension_numbers = #tpu.dot_dimension_numbers<[1], [0], [0], [1], [0, 0, 1, 1], [], []>} : vector<8x64xbf16>, vector<64x64xbf16>, vector<8x64xf32> -> vector<8x64xf32>
    %288 = arith.truncf %287 : vector<8x64xf32> to vector<8x64xbf16>
    %cst_152 = arith.constant dense<0.000000e+00> : vector<6x64xf32>
    %289 = tpu.matmul %286, %280, %cst_152 {dimension_numbers = #tpu.dot_dimension_numbers<[1], [0], [0], [1], [0, 0, 1, 1], [], []>} : vector<6x64xbf16>, vector<64x64xbf16>, vector<6x64xf32> -> vector<6x64xf32>
    %290 = arith.truncf %289 : vector<6x64xf32> to vector<6x64xbf16>
    %cst_153 = arith.constant dense<0.000000e+00> : vector<6x64xf32>
    %291 = tpu.matmul %286, %282, %cst_153 {dimension_numbers = #tpu.dot_dimension_numbers<[1], [0], [0], [1], [0, 0, 1, 1], [], []>} : vector<6x64xbf16>, vector<64x64xbf16>, vector<6x64xf32> -> vector<6x64xf32>
    %292 = arith.truncf %291 : vector<6x64xf32> to vector<6x64xbf16>
    %293 = vector.extract_strided_slice %288 {offsets = [0, 0], sizes = [8, 16], strides = [1, 1]} : vector<8x64xbf16> to vector<8x16xbf16>
    %294 = vector.extract_strided_slice %290 {offsets = [0, 0], sizes = [6, 16], strides = [1, 1]} : vector<6x64xbf16> to vector<6x16xbf16>
    %295 = vector.extract_strided_slice %292 {offsets = [0, 0], sizes = [6, 16], strides = [1, 1]} : vector<6x64xbf16> to vector<6x16xbf16>
    %cst_154 = arith.constant dense<0.000000e+00> : vector<8x6xf32>
    %296 = tpu.matmul %293, %294, %cst_154 {dimension_numbers = #tpu.dot_dimension_numbers<[1], [1], [0], [0], [0, 0, 1, 0], [], []>} : vector<8x16xbf16>, vector<6x16xbf16>, vector<8x6xf32> -> vector<8x6xf32>
    %cst_155 = arith.constant dense<0xFF800000> : vector<8xf32>
    %297 = vector.multi_reduction <maximumf>, %296, %cst_155 [1] : vector<8x6xf32> to vector<8xf32>
    %298 = vector.shape_cast %297 : vector<8xf32> to vector<8x1xf32>
    %299 = vector.broadcast %298 : vector<8x1xf32> to vector<8x6xf32>
    %300 = arith.subf %296, %299 : vector<8x6xf32>
    %301 = math.exp %300 : vector<8x6xf32>
    %cst_156 = arith.constant dense<0.000000e+00> : vector<8xf32>
    %302 = vector.multi_reduction <add>, %301, %cst_156 [1] : vector<8x6xf32> to vector<8xf32>
    %303 = vector.shape_cast %302 : vector<8xf32> to vector<8x1xf32>
    %304 = tpu.reciprocal %303 {approx = true} : vector<8x1xf32> -> vector<8x1xf32>
    %305 = vector.broadcast %304 : vector<8x1xf32> to vector<8x6xf32>
    %306 = arith.mulf %301, %305 : vector<8x6xf32>
    %307 = arith.truncf %306 : vector<8x6xf32> to vector<8x6xbf16>
    %cst_157 = arith.constant dense<0.000000e+00> : vector<8x16xf32>
    %308 = tpu.matmul %307, %295, %cst_157 {dimension_numbers = #tpu.dot_dimension_numbers<[1], [0], [0], [1], [0, 0, 1, 1], [], []>} : vector<8x6xbf16>, vector<6x16xbf16>, vector<8x16xf32> -> vector<8x16xf32>
    %c0_158 = arith.constant 0 : index
    %c0_159 = arith.constant 0 : index
    %309 = vector.load %arg21[%c0_158, %c0_159] : memref<8x64xf32, #tpu.memory_space<vmem>>, vector<8x16xf32>
    tpu.vector_store %arg21[%c0_158, %c0_159], %308 {strides = array<i32>} : memref<8x64xf32, #tpu.memory_space<vmem>>, vector<8x16xf32>,
    %310 = vector.extract_strided_slice %288 {offsets = [0, 16], sizes = [8, 16], strides = [1, 1]} : vector<8x64xbf16> to vector<8x16xbf16>
    %311 = vector.extract_strided_slice %290 {offsets = [0, 16], sizes = [6, 16], strides = [1, 1]} : vector<6x64xbf16> to vector<6x16xbf16>
    %312 = vector.extract_strided_slice %292 {offsets = [0, 16], sizes = [6, 16], strides = [1, 1]} : vector<6x64xbf16> to vector<6x16xbf16>
    %cst_160 = arith.constant dense<0.000000e+00> : vector<8x6xf32>
    %313 = tpu.matmul %310, %311, %cst_160 {dimension_numbers = #tpu.dot_dimension_numbers<[1], [1], [0], [0], [0, 0, 1, 0], [], []>} : vector<8x16xbf16>, vector<6x16xbf16>, vector<8x6xf32> -> vector<8x6xf32>
    %cst_161 = arith.constant dense<0xFF800000> : vector<8xf32>
    %314 = vector.multi_reduction <maximumf>, %313, %cst_161 [1] : vector<8x6xf32> to vector<8xf32>
    %315 = vector.shape_cast %314 : vector<8xf32> to vector<8x1xf32>
    %316 = vector.broadcast %315 : vector<8x1xf32> to vector<8x6xf32>
    %317 = arith.subf %313, %316 : vector<8x6xf32>
    %318 = math.exp %317 : vector<8x6xf32>
    %cst_162 = arith.constant dense<0.000000e+00> : vector<8xf32>
    %319 = vector.multi_reduction <add>, %318, %cst_162 [1] : vector<8x6xf32> to vector<8xf32>
    %320 = vector.shape_cast %319 : vector<8xf32> to vector<8x1xf32>
    %321 = tpu.reciprocal %320 {approx = true} : vector<8x1xf32> -> vector<8x1xf32>
    %322 = vector.broadcast %321 : vector<8x1xf32> to vector<8x6xf32>
    %323 = arith.mulf %318, %322 : vector<8x6xf32>
    %324 = arith.truncf %323 : vector<8x6xf32> to vector<8x6xbf16>
    %cst_163 = arith.constant dense<0.000000e+00> : vector<8x16xf32>
    %325 = tpu.matmul %324, %312, %cst_163 {dimension_numbers = #tpu.dot_dimension_numbers<[1], [0], [0], [1], [0, 0, 1, 1], [], []>} : vector<8x6xbf16>, vector<6x16xbf16>, vector<8x16xf32> -> vector<8x16xf32>
    %c0_164 = arith.constant 0 : index
    %c16_165 = arith.constant 16 : index
    %326 = vector.load %arg21[%c0_164, %c16_165] : memref<8x64xf32, #tpu.memory_space<vmem>>, vector<8x16xf32>
    tpu.vector_store %arg21[%c0_164, %c16_165], %325 {strides = array<i32>} : memref<8x64xf32, #tpu.memory_space<vmem>>, vector<8x16xf32>,
    %327 = vector.extract_strided_slice %288 {offsets = [0, 32], sizes = [8, 16], strides = [1, 1]} : vector<8x64xbf16> to vector<8x16xbf16>
    %328 = vector.extract_strided_slice %290 {offsets = [0, 32], sizes = [6, 16], strides = [1, 1]} : vector<6x64xbf16> to vector<6x16xbf16>
    %329 = vector.extract_strided_slice %292 {offsets = [0, 32], sizes = [6, 16], strides = [1, 1]} : vector<6x64xbf16> to vector<6x16xbf16>
    %cst_166 = arith.constant dense<0.000000e+00> : vector<8x6xf32>
    %330 = tpu.matmul %327, %328, %cst_166 {dimension_numbers = #tpu.dot_dimension_numbers<[1], [1], [0], [0], [0, 0, 1, 0], [], []>} : vector<8x16xbf16>, vector<6x16xbf16>, vector<8x6xf32> -> vector<8x6xf32>
    %cst_167 = arith.constant dense<0xFF800000> : vector<8xf32>
    %331 = vector.multi_reduction <maximumf>, %330, %cst_167 [1] : vector<8x6xf32> to vector<8xf32>
    %332 = vector.shape_cast %331 : vector<8xf32> to vector<8x1xf32>
    %333 = vector.broadcast %332 : vector<8x1xf32> to vector<8x6xf32>
    %334 = arith.subf %330, %333 : vector<8x6xf32>
    %335 = math.exp %334 : vector<8x6xf32>
    %cst_168 = arith.constant dense<0.000000e+00> : vector<8xf32>
    %336 = vector.multi_reduction <add>, %335, %cst_168 [1] : vector<8x6xf32> to vector<8xf32>
    %337 = vector.shape_cast %336 : vector<8xf32> to vector<8x1xf32>
    %338 = tpu.reciprocal %337 {approx = true} : vector<8x1xf32> -> vector<8x1xf32>
    %339 = vector.broadcast %338 : vector<8x1xf32> to vector<8x6xf32>
    %340 = arith.mulf %335, %339 : vector<8x6xf32>
    %341 = arith.truncf %340 : vector<8x6xf32> to vector<8x6xbf16>
    %cst_169 = arith.constant dense<0.000000e+00> : vector<8x16xf32>
    %342 = tpu.matmul %341, %329, %cst_169 {dimension_numbers = #tpu.dot_dimension_numbers<[1], [0], [0], [1], [0, 0, 1, 1], [], []>} : vector<8x6xbf16>, vector<6x16xbf16>, vector<8x16xf32> -> vector<8x16xf32>
    %c0_170 = arith.constant 0 : index
    %c32_171 = arith.constant 32 : index
    %343 = vector.load %arg21[%c0_170, %c32_171] : memref<8x64xf32, #tpu.memory_space<vmem>>, vector<8x16xf32>
    tpu.vector_store %arg21[%c0_170, %c32_171], %342 {strides = array<i32>} : memref<8x64xf32, #tpu.memory_space<vmem>>, vector<8x16xf32>,
    %344 = vector.extract_strided_slice %288 {offsets = [0, 48], sizes = [8, 16], strides = [1, 1]} : vector<8x64xbf16> to vector<8x16xbf16>
    %345 = vector.extract_strided_slice %290 {offsets = [0, 48], sizes = [6, 16], strides = [1, 1]} : vector<6x64xbf16> to vector<6x16xbf16>
    %346 = vector.extract_strided_slice %292 {offsets = [0, 48], sizes = [6, 16], strides = [1, 1]} : vector<6x64xbf16> to vector<6x16xbf16>
    %cst_172 = arith.constant dense<0.000000e+00> : vector<8x6xf32>
    %347 = tpu.matmul %344, %345, %cst_172 {dimension_numbers = #tpu.dot_dimension_numbers<[1], [1], [0], [0], [0, 0, 1, 0], [], []>} : vector<8x16xbf16>, vector<6x16xbf16>, vector<8x6xf32> -> vector<8x6xf32>
    %cst_173 = arith.constant dense<0xFF800000> : vector<8xf32>
    %348 = vector.multi_reduction <maximumf>, %347, %cst_173 [1] : vector<8x6xf32> to vector<8xf32>
    %349 = vector.shape_cast %348 : vector<8xf32> to vector<8x1xf32>
    %350 = vector.broadcast %349 : vector<8x1xf32> to vector<8x6xf32>
    %351 = arith.subf %347, %350 : vector<8x6xf32>
    %352 = math.exp %351 : vector<8x6xf32>
    %cst_174 = arith.constant dense<0.000000e+00> : vector<8xf32>
    %353 = vector.multi_reduction <add>, %352, %cst_174 [1] : vector<8x6xf32> to vector<8xf32>
    %354 = vector.shape_cast %353 : vector<8xf32> to vector<8x1xf32>
    %355 = tpu.reciprocal %354 {approx = true} : vector<8x1xf32> -> vector<8x1xf32>
    %356 = vector.broadcast %355 : vector<8x1xf32> to vector<8x6xf32>
    %357 = arith.mulf %352, %356 : vector<8x6xf32>
    %358 = arith.truncf %357 : vector<8x6xf32> to vector<8x6xbf16>
    %cst_175 = arith.constant dense<0.000000e+00> : vector<8x16xf32>
    %359 = tpu.matmul %358, %346, %cst_175 {dimension_numbers = #tpu.dot_dimension_numbers<[1], [0], [0], [1], [0, 0, 1, 1], [], []>} : vector<8x6xbf16>, vector<6x16xbf16>, vector<8x16xf32> -> vector<8x16xf32>
    %c0_176 = arith.constant 0 : index
    %c48_177 = arith.constant 48 : index
    %360 = vector.load %arg21[%c0_176, %c48_177] : memref<8x64xf32, #tpu.memory_space<vmem>>, vector<8x16xf32>
    tpu.vector_store %arg21[%c0_176, %c48_177], %359 {strides = array<i32>} : memref<8x64xf32, #tpu.memory_space<vmem>>, vector<8x16xf32>,
    %c0_178 = arith.constant 0 : index
    %c0_179 = arith.constant 0 : index
    %361 = vector.load %arg21[%c0_178, %c0_179] : memref<8x64xf32, #tpu.memory_space<vmem>>, vector<8x64xf32>
    %362 = arith.truncf %361 : vector<8x64xf32> to vector<8x64xbf16>
    %cst_180 = arith.constant dense<0.000000e+00> : vector<8x64xf32>
    %363 = tpu.matmul %362, %284, %cst_180 {dimension_numbers = #tpu.dot_dimension_numbers<[1], [0], [0], [1], [0, 0, 1, 1], [], []>} : vector<8x64xbf16>, vector<64x64xbf16>, vector<8x64xf32> -> vector<8x64xf32>
    %364 = arith.addf %251, %363 : vector<8x64xf32>
    %c0_181 = arith.constant 0 : index
    %c3 = arith.constant 3 : index
    %c0_182 = arith.constant 0 : index
    %c0_183 = arith.constant 0 : index
    %365 = vector.load %arg7[%c0_181, %c3, %c0_182, %c0_183] : memref<1x4x1x64xf32, #tpu.memory_space<vmem>>, vector<1x1x1x64xf32>
    %366 = vector.shape_cast %365 : vector<1x1x1x64xf32> to vector<1x64xf32>
    %c0_184 = arith.constant 0 : index
    %c3_185 = arith.constant 3 : index
    %c0_186 = arith.constant 0 : index
    %c0_187 = arith.constant 0 : index
    %367 = vector.load %arg8[%c0_184, %c3_185, %c0_186, %c0_187] : memref<1x4x1x64xf32, #tpu.memory_space<vmem>>, vector<1x1x1x64xf32>
    %368 = vector.shape_cast %367 : vector<1x1x1x64xf32> to vector<1x64xf32>
    %cst_188 = arith.constant dense<0.000000e+00> : vector<8xf32>
    %369 = vector.multi_reduction <add>, %364, %cst_188 [1] : vector<8x64xf32> to vector<8xf32>
    %370 = vector.shape_cast %369 : vector<8xf32> to vector<8x1xf32>
    %cst_189 = arith.constant 6.400000e+01 : f32
    %371 = vector.broadcast %cst_189 : f32 to vector<8x1xf32>
    %372 = arith.divf %370, %371 : vector<8x1xf32>
    %373 = vector.broadcast %372 : vector<8x1xf32> to vector<8x64xf32>
    %374 = arith.subf %364, %373 : vector<8x64xf32>
    %375 = arith.mulf %374, %374 : vector<8x64xf32>
    %cst_190 = arith.constant dense<0.000000e+00> : vector<8xf32>
    %376 = vector.multi_reduction <add>, %375, %cst_190 [1] : vector<8x64xf32> to vector<8xf32>
    %377 = vector.shape_cast %376 : vector<8xf32> to vector<8x1xf32>
    %cst_191 = arith.constant 0.0158730168 : f32
    %378 = vector.broadcast %cst_191 : f32 to vector<8x1xf32>
    %379 = arith.mulf %377, %378 : vector<8x1xf32>
    %380 = math.sqrt %379 : vector<8x1xf32>
    %cst_192 = arith.constant 9.99999997E-7 : f32
    %381 = vector.broadcast %cst_192 : f32 to vector<8x1xf32>
    %382 = arith.addf %380, %381 : vector<8x1xf32>
    %383 = tpu.reciprocal %382 {approx = true} : vector<8x1xf32> -> vector<8x1xf32>
    %384 = vector.broadcast %383 : vector<8x1xf32> to vector<8x64xf32>
    %385 = arith.mulf %374, %384 : vector<8x64xf32>
    %386 = vector.broadcast %366 : vector<1x64xf32> to vector<8x64xf32>
    %387 = arith.mulf %386, %385 : vector<8x64xf32>
    %388 = vector.broadcast %368 : vector<1x64xf32> to vector<8x64xf32>
    %389 = arith.addf %387, %388 : vector<8x64xf32>
    %c0_193 = arith.constant 0 : index
    %c0_194 = arith.constant 0 : index
    %c0_195 = arith.constant 0 : index
    %390 = vector.load %arg13[%c0_193, %c0_194, %c0_195] : memref<1x192x128xbf16, #tpu.memory_space<vmem>>, vector<1x192x128xbf16>
    %391 = vector.shape_cast %390 : vector<1x192x128xbf16> to vector<192x128xbf16>
    %c0_196 = arith.constant 0 : index
    %c0_197 = arith.constant 0 : index
    %c0_198 = arith.constant 0 : index
    %392 = vector.load %arg14[%c0_196, %c0_197, %c0_198] : memref<1x1x128xf32, #tpu.memory_space<vmem>>, vector<1x1x128xf32>
    %393 = vector.shape_cast %392 : vector<1x1x128xf32> to vector<1x128xf32>
    %c0_199 = arith.constant 0 : index
    %c0_200 = arith.constant 0 : index
    %394 = vector.load %arg22[%c0_199, %c0_200] : memref<8x192xf32, #tpu.memory_space<vmem>>, vector<8x64xf32>
    tpu.vector_store %arg22[%c0_199, %c0_200], %389 {strides = array<i32>} : memref<8x192xf32, #tpu.memory_space<vmem>>, vector<8x64xf32>,
    %c1_i32_201 = arith.constant 1 : i32
    %395 = tpu.dynamic_rotate %389 by %c1_i32_201 dim 0 : vector<8x64xf32>, i32 -> vector<8x64xf32>
    %396 = vector.broadcast %10 : vector<8x1xf32> to vector<8x64xf32>
    %397 = arith.mulf %395, %396 : vector<8x64xf32>
    %c0_202 = arith.constant 0 : index
    %c64 = arith.constant 64 : index
    %398 = vector.load %arg22[%c0_202, %c64] : memref<8x192xf32, #tpu.memory_space<vmem>>, vector<8x64xf32>
    tpu.vector_store %arg22[%c0_202, %c64], %397 {strides = array<i32>} : memref<8x192xf32, #tpu.memory_space<vmem>>, vector<8x64xf32>,
    %c2_i32_203 = arith.constant 2 : i32
    %399 = tpu.dynamic_rotate %389 by %c2_i32_203 dim 0 : vector<8x64xf32>, i32 -> vector<8x64xf32>
    %400 = vector.broadcast %14 : vector<8x1xf32> to vector<8x64xf32>
    %401 = arith.mulf %399, %400 : vector<8x64xf32>
    %c0_204 = arith.constant 0 : index
    %c128 = arith.constant 128 : index
    %402 = vector.load %arg22[%c0_204, %c128] : memref<8x192xf32, #tpu.memory_space<vmem>>, vector<8x64xf32>
    tpu.vector_store %arg22[%c0_204, %c128], %401 {strides = array<i32>} : memref<8x192xf32, #tpu.memory_space<vmem>>, vector<8x64xf32>,
    %c0_205 = arith.constant 0 : index
    %c0_206 = arith.constant 0 : index
    %403 = vector.load %arg22[%c0_205, %c0_206] : memref<8x192xf32, #tpu.memory_space<vmem>>, vector<8x192xf32>
    %404 = arith.truncf %403 : vector<8x192xf32> to vector<8x192xbf16>
    %cst_207 = arith.constant dense<0.000000e+00> : vector<8x128xf32>
    %405 = tpu.matmul %404, %391, %cst_207 {dimension_numbers = #tpu.dot_dimension_numbers<[1], [0], [0], [1], [0, 0, 1, 1], [], []>} : vector<8x192xbf16>, vector<192x128xbf16>, vector<8x128xf32> -> vector<8x128xf32>
    %406 = vector.broadcast %393 : vector<1x128xf32> to vector<8x128xf32>
    %407 = arith.addf %405, %406 : vector<8x128xf32>
    %cst_208 = arith.constant 0.000000e+00 : f32
    %408 = vector.broadcast %cst_208 : f32 to vector<8x128xf32>
    %409 = arith.maximumf %407, %408 : vector<8x128xf32>
    %c0_209 = arith.constant 0 : index
    %c0_210 = arith.constant 0 : index
    %c0_211 = arith.constant 0 : index
    %410 = vector.load %arg15[%c0_209, %c0_210, %c0_211] : memref<1x384x64xbf16, #tpu.memory_space<vmem>>, vector<1x384x64xbf16>
    %411 = vector.shape_cast %410 : vector<1x384x64xbf16> to vector<384x64xbf16>
    %c0_212 = arith.constant 0 : index
    %c0_213 = arith.constant 0 : index
    %c0_214 = arith.constant 0 : index
    %412 = vector.load %arg16[%c0_212, %c0_213, %c0_214] : memref<1x1x64xf32, #tpu.memory_space<vmem>>, vector<1x1x64xf32>
    %413 = vector.shape_cast %412 : vector<1x1x64xf32> to vector<1x64xf32>
    %c0_215 = arith.constant 0 : index
    %c0_216 = arith.constant 0 : index
    %414 = vector.load %arg23[%c0_215, %c0_216] : memref<8x384xf32, #tpu.memory_space<vmem>>, vector<8x128xf32>
    tpu.vector_store %arg23[%c0_215, %c0_216], %409 {strides = array<i32>} : memref<8x384xf32, #tpu.memory_space<vmem>>, vector<8x128xf32>,
    %c1_i32_217 = arith.constant 1 : i32
    %415 = tpu.dynamic_rotate %409 by %c1_i32_217 dim 0 : vector<8x128xf32>, i32 -> vector<8x128xf32>
    %416 = vector.broadcast %10 : vector<8x1xf32> to vector<8x128xf32>
    %417 = arith.mulf %415, %416 : vector<8x128xf32>
    %c0_218 = arith.constant 0 : index
    %c128_219 = arith.constant 128 : index
    %418 = vector.load %arg23[%c0_218, %c128_219] : memref<8x384xf32, #tpu.memory_space<vmem>>, vector<8x128xf32>
    tpu.vector_store %arg23[%c0_218, %c128_219], %417 {strides = array<i32>} : memref<8x384xf32, #tpu.memory_space<vmem>>, vector<8x128xf32>,
    %c2_i32_220 = arith.constant 2 : i32
    %419 = tpu.dynamic_rotate %409 by %c2_i32_220 dim 0 : vector<8x128xf32>, i32 -> vector<8x128xf32>
    %420 = vector.broadcast %14 : vector<8x1xf32> to vector<8x128xf32>
    %421 = arith.mulf %419, %420 : vector<8x128xf32>
    %c0_221 = arith.constant 0 : index
    %c256 = arith.constant 256 : index
    %422 = vector.load %arg23[%c0_221, %c256] : memref<8x384xf32, #tpu.memory_space<vmem>>, vector<8x128xf32>
    tpu.vector_store %arg23[%c0_221, %c256], %421 {strides = array<i32>} : memref<8x384xf32, #tpu.memory_space<vmem>>, vector<8x128xf32>,
    %c0_222 = arith.constant 0 : index
    %c0_223 = arith.constant 0 : index
    %423 = vector.load %arg23[%c0_222, %c0_223] : memref<8x384xf32, #tpu.memory_space<vmem>>, vector<8x384xf32>
    %424 = arith.truncf %423 : vector<8x384xf32> to vector<8x384xbf16>
    %cst_224 = arith.constant dense<0.000000e+00> : vector<8x64xf32>
    %425 = tpu.matmul %424, %411, %cst_224 {dimension_numbers = #tpu.dot_dimension_numbers<[1], [0], [0], [1], [0, 0, 1, 1], [], []>} : vector<8x384xbf16>, vector<384x64xbf16>, vector<8x64xf32> -> vector<8x64xf32>
    %426 = vector.broadcast %413 : vector<1x64xf32> to vector<8x64xf32>
    %427 = arith.addf %425, %426 : vector<8x64xf32>
    %cst_225 = arith.constant 0.000000e+00 : f32
    %428 = vector.broadcast %cst_225 : f32 to vector<8x64xf32>
    %429 = arith.maximumf %427, %428 : vector<8x64xf32>
    %430 = arith.addf %364, %429 : vector<8x64xf32>
    %c0_226 = arith.constant 0 : index
    %c0_227 = arith.constant 0 : index
    %431 = vector.load %arg20[%c0_226, %c0_227] : memref<8x64xf32, #tpu.memory_space<vmem>>, vector<8x64xf32>
    tpu.vector_store %arg20[%c0_226, %c0_227], %430 {strides = array<i32>} : memref<8x64xf32, #tpu.memory_space<vmem>>, vector<8x64xf32>,
    %c1_i32_228 = arith.constant 1 : i32
    %432 = arith.cmpi eq, %arg1, %c1_i32_228 : i32
    %433 = arith.extui %432 : i1 to i32
    %c0_i32_229 = arith.constant 0 : i32
    %434 = arith.cmpi ne, %433, %c0_i32_229 : i32
    scf.if %434 {
      %c0_230 = arith.constant 0 : index
      %c0_231 = arith.constant 0 : index
      %435 = vector.load %arg17[%c0_230, %c0_231] : memref<1x64xf32, #tpu.memory_space<vmem>>, vector<1x64xf32>
      %c0_232 = arith.constant 0 : index
      %c0_233 = arith.constant 0 : index
      %436 = vector.load %arg18[%c0_232, %c0_233] : memref<1x64xf32, #tpu.memory_space<vmem>>, vector<1x64xf32>
      %cst_234 = arith.constant dense<0.000000e+00> : vector<8xf32>
      %437 = vector.multi_reduction <add>, %430, %cst_234 [1] : vector<8x64xf32> to vector<8xf32>
      %438 = vector.shape_cast %437 : vector<8xf32> to vector<8x1xf32>
      %cst_235 = arith.constant 6.400000e+01 : f32
      %439 = vector.broadcast %cst_235 : f32 to vector<8x1xf32>
      %440 = arith.divf %438, %439 : vector<8x1xf32>
      %441 = vector.broadcast %440 : vector<8x1xf32> to vector<8x64xf32>
      %442 = arith.subf %430, %441 : vector<8x64xf32>
      %443 = arith.mulf %442, %442 : vector<8x64xf32>
      %cst_236 = arith.constant dense<0.000000e+00> : vector<8xf32>
      %444 = vector.multi_reduction <add>, %443, %cst_236 [1] : vector<8x64xf32> to vector<8xf32>
      %445 = vector.shape_cast %444 : vector<8xf32> to vector<8x1xf32>
      %cst_237 = arith.constant 0.0158730168 : f32
      %446 = vector.broadcast %cst_237 : f32 to vector<8x1xf32>
      %447 = arith.mulf %445, %446 : vector<8x1xf32>
      %448 = math.sqrt %447 : vector<8x1xf32>
      %cst_238 = arith.constant 9.99999997E-7 : f32
      %449 = vector.broadcast %cst_238 : f32 to vector<8x1xf32>
      %450 = arith.addf %448, %449 : vector<8x1xf32>
      %451 = tpu.reciprocal %450 {approx = true} : vector<8x1xf32> -> vector<8x1xf32>
      %452 = vector.broadcast %451 : vector<8x1xf32> to vector<8x64xf32>
      %453 = arith.mulf %442, %452 : vector<8x64xf32>
      %454 = vector.broadcast %435 : vector<1x64xf32> to vector<8x64xf32>
      %455 = arith.mulf %454, %453 : vector<8x64xf32>
      %456 = vector.broadcast %436 : vector<1x64xf32> to vector<8x64xf32>
      %457 = arith.addf %455, %456 : vector<8x64xf32>
      %c0_239 = arith.constant 0 : index
      %c0_240 = arith.constant 0 : index
      %c0_241 = arith.constant 0 : index
      %458 = vector.load %arg19[%c0_239, %c0_240, %c0_241] : memref<1x8x64xf32, #tpu.memory_space<vmem>>, vector<1x8x64xf32>
      %459 = vector.shape_cast %458 : vector<1x8x64xf32> to vector<8x64xf32>
      %460 = vector.shape_cast %457 : vector<8x64xf32> to vector<1x8x64xf32>
      tpu.vector_store %arg19[%c0_239, %c0_240, %c0_241], %460 {strides = array<i32>} : memref<1x8x64xf32, #tpu.memory_space<vmem>>, vector<1x8x64xf32>,
    } else {
    }
    return
  }
  func.func @transform_0(%arg0: i32, %arg1: i32) -> (i32, i32, i32) {
    %c0_i32 = arith.constant 0 : i32
    %c0_i32_0 = arith.constant 0 : i32
    %c0_i32_1 = arith.constant 0 : i32
    return %arg0, %c0_i32, %c0_i32_0 : i32, i32, i32
  }
  func.func @transform_1(%arg0: i32, %arg1: i32) -> (i32, i32, i32) {
    %c0_i32 = arith.constant 0 : i32
    %c0_i32_0 = arith.constant 0 : i32
    %c0_i32_1 = arith.constant 0 : i32
    return %arg0, %c0_i32, %c0_i32_0 : i32, i32, i32
  }
  func.func @transform_2(%arg0: i32, %arg1: i32) -> (i32, i32, i32) {
    %c0_i32 = arith.constant 0 : i32
    %c0_i32_0 = arith.constant 0 : i32
    %c0_i32_1 = arith.constant 0 : i32
    return %arg0, %c0_i32, %c0_i32_0 : i32, i32, i32
  }
  func.func @transform_3(%arg0: i32, %arg1: i32) -> (i32, i32) {
    %c0_i32 = arith.constant 0 : i32
    %c0_i32_0 = arith.constant 0 : i32
    %c0_i32_1 = arith.constant 0 : i32
    return %c0_i32, %c0_i32_0 : i32, i32
  }
  func.func @transform_4(%arg0: i32, %arg1: i32) -> (i32, i32) {
    %c0_i32 = arith.constant 0 : i32
    %c0_i32_0 = arith.constant 0 : i32
    %c0_i32_1 = arith.constant 0 : i32
    return %c0_i32, %c0_i32_0 : i32, i32
  }
  func.func @transform_5(%arg0: i32, %arg1: i32) -> (i32, i32, i32, i32) {
    %c0_i32 = arith.constant 0 : i32
    %c0_i32_0 = arith.constant 0 : i32
    %c0_i32_1 = arith.constant 0 : i32
    %c0_i32_2 = arith.constant 0 : i32
    return %arg1, %c0_i32, %c0_i32_0, %c0_i32_1 : i32, i32, i32, i32
  }
  func.func @transform_6(%arg0: i32, %arg1: i32) -> (i32, i32, i32, i32) {
    %c0_i32 = arith.constant 0 : i32
    %c0_i32_0 = arith.constant 0 : i32
    %c0_i32_1 = arith.constant 0 : i32
    %c0_i32_2 = arith.constant 0 : i32
    return %arg1, %c0_i32, %c0_i32_0, %c0_i32_1 : i32, i32, i32, i32
  }
  func.func @transform_7(%arg0: i32, %arg1: i32) -> (i32, i32, i32, i32) {
    %c0_i32 = arith.constant 0 : i32
    %c0_i32_0 = arith.constant 0 : i32
    %c0_i32_1 = arith.constant 0 : i32
    %c0_i32_2 = arith.constant 0 : i32
    return %arg1, %c0_i32, %c0_i32_0, %c0_i32_1 : i32, i32, i32, i32
  }
  func.func @transform_8(%arg0: i32, %arg1: i32) -> (i32, i32, i32, i32) {
    %c0_i32 = arith.constant 0 : i32
    %c0_i32_0 = arith.constant 0 : i32
    %c0_i32_1 = arith.constant 0 : i32
    %c0_i32_2 = arith.constant 0 : i32
    return %arg1, %c0_i32, %c0_i32_0, %c0_i32_1 : i32, i32, i32, i32
  }
  func.func @transform_9(%arg0: i32, %arg1: i32) -> (i32, i32, i32, i32) {
    %c0_i32 = arith.constant 0 : i32
    %c0_i32_0 = arith.constant 0 : i32
    %c0_i32_1 = arith.constant 0 : i32
    %c0_i32_2 = arith.constant 0 : i32
    return %arg1, %c0_i32, %c0_i32_0, %c0_i32_1 : i32, i32, i32, i32
  }
  func.func @transform_10(%arg0: i32, %arg1: i32) -> (i32, i32, i32, i32) {
    %c0_i32 = arith.constant 0 : i32
    %c0_i32_0 = arith.constant 0 : i32
    %c0_i32_1 = arith.constant 0 : i32
    %c0_i32_2 = arith.constant 0 : i32
    return %arg1, %c0_i32, %c0_i32_0, %c0_i32_1 : i32, i32, i32, i32
  }
  func.func @transform_11(%arg0: i32, %arg1: i32) -> (i32, i32, i32) {
    %c0_i32 = arith.constant 0 : i32
    %c0_i32_0 = arith.constant 0 : i32
    %c0_i32_1 = arith.constant 0 : i32
    return %arg1, %c0_i32, %c0_i32_0 : i32, i32, i32
  }
  func.func @transform_12(%arg0: i32, %arg1: i32) -> (i32, i32, i32) {
    %c0_i32 = arith.constant 0 : i32
    %c0_i32_0 = arith.constant 0 : i32
    %c0_i32_1 = arith.constant 0 : i32
    return %arg1, %c0_i32, %c0_i32_0 : i32, i32, i32
  }
  func.func @transform_13(%arg0: i32, %arg1: i32) -> (i32, i32, i32) {
    %c0_i32 = arith.constant 0 : i32
    %c0_i32_0 = arith.constant 0 : i32
    %c0_i32_1 = arith.constant 0 : i32
    return %arg1, %c0_i32, %c0_i32_0 : i32, i32, i32
  }
  func.func @transform_14(%arg0: i32, %arg1: i32) -> (i32, i32, i32) {
    %c0_i32 = arith.constant 0 : i32
    %c0_i32_0 = arith.constant 0 : i32
    %c0_i32_1 = arith.constant 0 : i32
    return %arg1, %c0_i32, %c0_i32_0 : i32, i32, i32
  }
  func.func @transform_15(%arg0: i32, %arg1: i32) -> (i32, i32) {
    %c0_i32 = arith.constant 0 : i32
    %c0_i32_0 = arith.constant 0 : i32
    %c0_i32_1 = arith.constant 0 : i32
    return %c0_i32, %c0_i32_0 : i32, i32
  }
  func.func @transform_16(%arg0: i32, %arg1: i32) -> (i32, i32) {
    %c0_i32 = arith.constant 0 : i32
    %c0_i32_0 = arith.constant 0 : i32
    %c0_i32_1 = arith.constant 0 : i32
    return %c0_i32, %c0_i32_0 : i32, i32
  }
  func.func @transform_17(%arg0: i32, %arg1: i32) -> (i32, i32, i32) {
    %c0_i32 = arith.constant 0 : i32
    %c0_i32_0 = arith.constant 0 : i32
    %c0_i32_1 = arith.constant 0 : i32
    return %arg0, %c0_i32, %c0_i32_0 : i32, i32, i32
  }
}

</mosaic_0001>

<bundles_post_ra>
// kernel: tpu_custom_call.1
= control target key start
LH: loop header
LB: loop body
LE: loop exit
PB: predicated region body
PF: predicated region fallthrough
CT: control target
= control target key end

     0   :  { %s6189_s0 = inlined_call_operand.vmem [shape: f32[2,8,48], index: 0, kind: input, shape index: {}]   ;;  %s6190_s1 = inlined_call_operand.vmem [shape: f32[2,12,64], index: 1, kind: input, shape index: {}]   ;;  %s6191_s2 = inlined_call_operand.vmem [shape: f32[2,6,64], index: 2, kind: input, shape index: {}]   ;;  %s6192_s3 = inlined_call_operand.vmem [shape: bf16[48,64], index: 3, kind: input, shape index: {}]   ;;  %s6193_s4 = inlined_call_operand.vmem [shape: f32[8,64], index: 4, kind: input, shape index: {}]   ;;  %s6194_s5 = inlined_call_operand.vmem [shape: f32[2,4,1,64], index: 5, kind: input, shape index: {}]   ;;  %s6195_s6 = inlined_call_operand.vmem [shape: f32[2,4,1,64], index: 6, kind: input, shape index: {}]   ;;  %s6196_s7 = inlined_call_operand.vmem [shape: bf16[2,3,64,64], index: 7, kind: input, shape index: {}]   ;;  %s6197_s8 = inlined_call_operand.vmem [shape: bf16[2,3,64,64], index: 8, kind: input, shape index: {}]   ;;  %s6198_s9 = inlined_call_operand.vmem [shape: bf16[2,3,64,64], index: 9, kind: input, shape index: {}]   ;;  %s6199_s10 = inlined_call_operand.hbm [shape: bf16[2,3,64,64], index: 10, kind: input, shape index: {}]   ;;  %s6200_s11 = inlined_call_operand.hbm [shape: bf16[2,192,128], index: 11, kind: input, shape index: {}]   ;;  %s6201_s12 = inlined_call_operand.vmem [shape: f32[2,1,128], index: 12, kind: input, shape index: {}]   ;;  %s6202_s13 = inlined_call_operand.vmem [shape: bf16[2,384,64], index: 13, kind: input, shape index: {}]   ;;  %s6203_s14 = inlined_call_operand.vmem [shape: f32[2,1,64], index: 14, kind: input, shape index: {}]   ;;  %s6204_s15 = inlined_call_operand.vmem [shape: f32[1,64], index: 15, kind: input, shape index: {}]   ;;  %s6205_s16 = inlined_call_operand.vmem [shape: f32[1,64], index: 16, kind: input, shape index: {}]   ;;  %s6206_s17 = inlined_call_operand.hbm [shape: f32[2,8,64], index: 17, kind: output, shape index: {}]  }
   0x1   :  { %6230 = sst [smem:[#allocation31_spill]] %s6189_s0 }
   0x2   :  { %6231 = sst [smem:[#allocation32_spill]] %s6190_s1 }
   0x3   :  { %6232 = sst [smem:[#allocation33_spill]] %s6191_s2 }
   0x4   :  { %6233 = sst [smem:[#allocation34_spill]] %s6192_s3 }
   0x5   :  { %6234 = sst [smem:[#allocation35_spill]] %s6193_s4 }
   0x6   :  { %6235 = sst [smem:[#allocation36_spill]] %s6194_s5 }
   0x7   :  { %6236 = sst [smem:[#allocation37_spill]] %s6195_s6 }
   0x8   :  { %6237 = sst [smem:[#allocation38_spill]] %s6199_s10 }
   0x9   :  { %6238 = sst [smem:[#allocation39_spill]] %s6200_s11 }
   0xa   :  { %6239 = sst [smem:[#allocation40_spill]] %s6202_s13 }
   0xb   :  { %6240 = sst [smem:[#allocation41_spill]] %s6204_s15 }
   0xc   :  { %6241 = sst [smem:[#allocation42_spill]] %s6205_s16 }
   0xd   :  { %6242 = sst [smem:[#allocation43_spill]] %s6206_s17 }
   0xe   :  { %22 = vsyncpa [#allocation7], 0 }
   0xf   :  { %24 = vsyncpa [#allocation7 + $0x1], 0 }
  0x10   :  { %25 = vsyncpa [#allocation10], 0 }
  0x11   :  { %27 = vsyncpa [#allocation10 + $0x1], 0 }
  0x12   :  { %28 = vsyncpa [#allocation8], 0 }
  0x13   :  { %30 = vsyncpa [#allocation8 + $0x1], 0  ;;  %s5367_s24 = smov 0   ;;  %s5369_s25 = smov 0  }
  0x14   :  { %s5371_s26 = smov 0   ;;  %s5373_s27 = smov 0  }
  0x15   :  { %s5375_s28 = smov 0   ;;  %s5377_s29 = smov 0  }
  0x16   :  { %s5379_s0 = smov 0   ;;  %s5381_s30 = smov 0  }
  0x17   :  { %s5383_s18 = smov 0   ;;  %s5385_s19 = smov 0  }
  0x18   :  { %s5387_s1 = smov 0  }
  0x19 LB: > { %6243 = sst [smem:[#allocation15_spill]] %s5218_s24  ;;  %s4094_s20 = sadd.s32 4294967295, %s5258_s1   ;;  %s5258_s1 = sphi %s5387_s1, %s36_s1   ;;  %s5254_s19 = sphi %s5385_s19, %s6302_s19   ;;  %s5250_s18 = sphi %s5383_s18, %s6301_s18   ;;  %s5246_s30 = sphi %s5381_s30, %s6300_s30   ;;  %s5242_s0 = sphi %s5379_s0, %s6299_s0   ;;  %s5238_s29 = sphi %s5377_s29, %s6298_s29   ;;  %s5234_s28 = sphi %s5375_s28, %s6297_s28   ;;  %s5230_s27 = sphi %s5373_s27, %s6296_s27   ;;  %s5226_s26 = sphi %s5371_s26, %s6295_s26   ;;  %s5222_s25 = sphi %s5369_s25, %s6294_s25   ;;  %s5218_s24 = sphi %s5367_s24, %s6293_s24  }
  0x1a   : > { %6244 = sst [smem:[#allocation16_spill]] %s5222_s25  ;;  %s4095_s21 = sadd.s32 4294967294, %s5258_s1  }
  0x1b   : > { %6245 = sst [smem:[#allocation17_spill]] %s5226_s26  ;;  %s45_s22 = sadd.s32 1, %s5250_s18 }
  0x1c   : > { %6246 = sst [smem:[#allocation18_spill]] %s5234_s28  ;;  %s48_s23 = sadd.s32 1, %s5254_s19 }
  0x1d   : > { %6247 = sst [smem:[#allocation19_spill]] %s5238_s29  ;;  %p46_p0 = scmp.ge.s32.totalorder %s45_s22, 2 }
  0x1e   : > { %6248 = sst [smem:[#allocation20_spill]] %s5246_s30  ;;  %s305_s17 = sadd.s32 1, %s5238_s29 }
  0x1f   : > { %6249 = sst [smem:[#allocation21_spill]] %s5250_s18  ;;  %p312_p1 = scmp.ne.s32.totalorder %s5238_s29, %s5234_s28 }
  0x20   : > { %6250 = sst [smem:[#allocation22_spill]] %s5254_s19  ;;  %p313_p2 = scmp.eq.s32.totalorder %s5258_s1, 0 }
  0x21   : > { %6251 = sst [smem:[#allocation23_spill]] %s5258_s1  ;;  %s6304_s22 = smov (%p46_p0, %s45_s22), 0 }
  0x22   : > { %6252 = sst [smem:[#allocation24_spill]] %s6304_s22  ;;  %s6306_s23 = smov (!%p46_p0, %s48_s23), %s5254_s19 }
  0x23   : > { %s302_s16 = ssub.s32 %s5250_s18, %s6304_s22  ;;  %p5433_p3 = por %p313_p2, %p312_p1 }
  0x24   : > { %p50_p4 = scmp.ge.s32.totalorder %s6306_s23, 2  ;;  %p303_p5 = scmp.eq.s32.totalorder %s302_s16, 0 }
  0x25   : > { %p318_p6 = scmp.ne.s32.totalorder %s5234_s28, %s5230_s27  ;;  %p319_p7 = scmp.eq.s32.totalorder %s4094_s20, 0 }
  0x26   : > { %s6308_s23 = smov (%p50_p4, %s6306_s23), 0  ;;  %s477_s13 = sadd.s32 1, %s5226_s26 }
  0x27   : > { %6254 = sst [smem:[#allocation25_spill]] %s6308_s23  ;;  %p5443_p8 = por %p319_p7, %p318_p6 }
  0x28   : > { %s5441_s4 = scalar_select %p303_p5, %s5238_s29, %s305_s17  }
  0x29   : > { %s6256_s22 = scalar_select %p5443_p8, 1, 0 }
  0x2a   : > { %6255 = sst [smem:[#allocation26_spill]] %s5441_s4  ;;  %s474_s3 = ssub.s32 %s5254_s19, %s6308_s23 }
  0x2b   : > { %p475_p9 = scmp.eq.s32.totalorder %s474_s3, 0  ;;  %p487_p10 = scmp.ne.s32.totalorder %s5226_s26, %s5222_s25 }
  0x2c   : > { %p488_p11 = scmp.eq.s32.totalorder %s4094_s20, 3  ;;  %p493_p13 = scmp.ne.s32.totalorder %s5222_s25, %s5218_s24 }
  0x2d   : > { %s5453_s16 = scalar_select %p475_p9, %s5226_s26, %s477_s13  }
  0x2e   : > { %p5455_p12 = por %p488_p11, %p487_p10  ;;  %p494_p0 = scmp.eq.s32.totalorder %s4095_s21, 3 }
  0x2f   : > { %6257 = sst [smem:[#allocation27_spill]] %s5453_s16  ;;  %p4813_p1 = scmp.lt.s32.totalorder %s5258_s1, 4 }
  0x30   : > { %s6258_s27 = scalar_select %p5455_p12, 1, 0 }
  0x31   : > { %s5463_s17 = sand.u32 1, %s5238_s29   ;;  %p5465_p2 = por %p494_p0, %p493_p13 }
  0x32   : > { %6259 = sst [smem:[#allocation28_spill]] %s6258_s27  ;;  %s4789_s3 = smul.u32 96, %s5463_s17 }
  0x33   : > { %s6260_s23 = scalar_select %p5465_p2, 1, 0 }
  0x34   : > { %p5472_p4 = pnand %p4813_p1, %p5433_p3  ;;  %s6214_s20 = smul.u32 1536, %s5250_s18 }
  0x35   : > { %6261 = sst [smem:[#allocation29_spill]] %s6260_s23  ;;  %s6263_s10 = sld [smem:[#allocation38_spill]] }
  0x36   : > { %s590_s29 = scalar_lea.vmem [#allocation6], %s4789_s3  ;;  %s587_s16 = scalar_lea.sflag [#allocation7], %s5463_s17 }
  0x37   : > { %s597_s15 = sshll.u32 %s590_s29, 4  ;;  %p5074_p5 = pneg %p5472_p4  ;;  %s5486_s15 = int_to_ptr.vmem [resolvable:$true] %s597_s15 }
  0x3b   : > { %s5482_s4 = scalar_lea.hbm %s6263_s10, %s6214_s20  ;;  %s5077_s20 = scalar_lea.hbm %s6263_s10, 3072 }
  0x3c   : > { %s5072_s26 = scalar_lea.hbm %s5482_s4, 1536  ;;  %p5078_p9 = scmp.lt.u32.totalorder %s5482_s4, %s6263_s10 }
  0x3d   : > { %p5073_p3 = scmp.ne.s32.totalorder %s5482_s4, %s5072_s26  ;;  %p5079_p10 = scmp.lt.u32.totalorder %s5077_s20, %s5072_s26 }
  0x3e   : > { %p5081_p13 = scmp.lt.u32.totalorder %s5072_s26, %s5482_s4 }
  0x3f   : > { %p5075_p6 = pnand %p5074_p5, %p5073_p3  ;;  %p5080_p11 = por %p5079_p10, %p5078_p9 }
  0x41   : > { %p5076_p7 = pneg %p5075_p6  ;;  %p5082_p0 = por %p5081_p13, %p5080_p11 }
  0x43   : > { %p5083_p1 = pnand %p5082_p0, %p5076_p7 }
  0x45   : > { %5086 = shalt.err (!%p5083_p1)
}
  0x46   : > { %s5087_s29 = scalar_lea.vmem %s5486_s15, 1536  ;;  %s5260_s19 = smov [#allocation6]  }
  0x47   : > { %p5088_p3 = scmp.ne.s32.totalorder %s5486_s15, %s5087_s29  ;;  %s5092_s21 = sshll.u32 %s5260_s19, 4  ;;  %s5093_s21 = int_to_ptr.vmem [resolvable:$false] %s5092_s21 }
  0x48   : > { %s5094_s24 = scalar_lea.vmem %s5093_s21, 3072  ;;  %p5095_p12 = scmp.lt.s32.totalorder %s5486_s15, %s5093_s21 }
  0x49   : > { %p5090_p6 = pnand %p5088_p3, %p5074_p5  ;;  %p5096_p9 = scmp.lt.s32.totalorder %s5094_s24, %s5087_s29 }
  0x4b   : > { %p5091_p2 = pneg %p5090_p6  ;;  %p5097_p10 = por %p5096_p9, %p5095_p12 }
  0x4d   : > { %p5098_p11 = pnand %p5097_p10, %p5091_p2 }
  0x4f   : > { %5101 = shalt.err (!%p5098_p11)
}
  0x50   : > { %s6220_s26 = smov 64   ;;  %s5262_s23 = smov 4  }
  0x51   : > { %4805 = dma.hbm_to_vmem [thread:$0]  (!%p5472_p4), %s5482_s4, 1536, %s5486_s15, %s587_s16, %s6220_s26, %s6220_s26, %s5262_s23  }
  0x52   : > { %p4100_p12 = scmp.ge.s32.totalorder %s5258_s1, 1  ;;  %p646_p2 = scmp.lt.s32.totalorder %s5258_s1, 5 }
  0x53   : > { %s6265_s29 = smul.u32 1536, %s5250_s18  ;;  %s6266_s11 = sld [smem:[#allocation39_spill]] }
  0x54   : > { %p5521_p7 = pnand %p4100_p12, %p646_p2  ;;  %s611_s10 = scalar_lea.vmem [#allocation9], %s4789_s3 }
  0x55   : > { %s618_s27 = sshll.u32 %s611_s10, 4  ;;  %s608_s4 = scalar_lea.sflag [#allocation10], %s5463_s17  ;;  %s5534_s27 = int_to_ptr.vmem [resolvable:$true] %s618_s27 }
  0x59   : > { %s5530_s24 = scalar_lea.hbm %s6266_s11, %s6265_s29  ;;  %s5107_s29 = scalar_lea.hbm %s6266_s11, 3072 }
  0x5a   : > { %s5102_s16 = scalar_lea.hbm %s5530_s24, 1536  ;;  %p5108_p3 = scmp.lt.u32.totalorder %s5530_s24, %s6266_s11 }
  0x5b   : > { %p5103_p13 = scmp.ne.s32.totalorder %s5530_s24, %s5102_s16  ;;  %p5109_p6 = scmp.lt.u32.totalorder %s5107_s29, %s5102_s16 }
  0x5c   : > { %p5111_p10 = scmp.lt.u32.totalorder %s5102_s16, %s5530_s24 }
  0x5d   : > { %p5105_p0 = pnand %p5103_p13, %p5074_p5  ;;  %p5110_p9 = por %p5109_p6, %p5108_p3 }
  0x5f   : > { %p5106_p1 = pneg %p5105_p0  ;;  %p5112_p11 = por %p5111_p10, %p5110_p9 }
  0x61   : > { %p5113_p12 = pnand %p5112_p11, %p5106_p1 }
  0x63   : > { %5116 = shalt.err (!%p5113_p12)
}
  0x64   : > { %s5117_s10 = scalar_lea.vmem %s5534_s27, 1536  ;;  %s5263_s3 = smov [#allocation9]  }
  0x65   : > { %p5118_p2 = scmp.ne.s32.totalorder %s5534_s27, %s5117_s10  ;;  %s5122_s15 = sshll.u32 %s5263_s3, 4  ;;  %s5123_s15 = int_to_ptr.vmem [resolvable:$false] %s5122_s15 }
  0x66   : > { %s5124_s26 = scalar_lea.vmem %s5123_s15, 3072  ;;  %p5125_p8 = scmp.lt.s32.totalorder %s5534_s27, %s5123_s15 }
  0x67   : > { %p5120_p13 = pnand %p5118_p2, %p5074_p5  ;;  %p5126_p3 = scmp.lt.s32.totalorder %s5124_s26, %s5117_s10 }
  0x69   : > { %p5121_p0 = pneg %p5120_p13  ;;  %p5127_p6 = por %p5126_p3, %p5125_p8 }
  0x6b   : > { %p5128_p9 = pnand %p5127_p6, %p5121_p0 }
  0x6d   : > { %5131 = shalt.err (!%p5128_p9)
}
  0x6e   : > { %s6267_s16 = smov 64   ;;  %650 = sbr.rel (%p5521_p7) target bundleno = 7067 (0x1b9b), region = 88 }
  0x6f   : > { %4808 = dma.hbm_to_vmem [thread:$0]  (!%p5472_p4), %s5530_s24, 1536, %s5534_s27, %s608_s4, %s6267_s16, %s6267_s16, %s5262_s23  }
  0x75   : > { %s652_s19 = sand.u32 1, %s5234_s28   ;;  %p6268_p8 = scmp.ne.s32.totalorder %s6256_s22, 0 }
  0x76   : > { %s4793_s29 = smul.u32 96, %s652_s19  ;;  %s653_s21 = scalar_lea.sflag [#allocation7], %s652_s19 }
  0x78   : > { %s5568_s10 = scalar_lea.vmem [#allocation6], %s4793_s29 }
  0x79   : > { %5205 = dma.done.wait (%p6268_p8), %s653_s21, 1536  }
  0x7a   : > { %5207 = vsyncadd (%p6268_p8), %s653_s21, 4294965760  ;;  %s662_s17 = scalar_lea.sflag [#allocation10], %s652_s19  ;;  %s5574_s13 = scalar_lea.vmem [#allocation9], %s4793_s29 }
  0x7b   : > { %6269 = sst [smem:[#allocation30_spill]] %s5574_s13 }
  0x7c   : > { %5209 = dma.done.wait (%p6268_p8), %s662_s17, 1536  }
  0x7d   : > { %5211 = vsyncadd (%p6268_p8), %s662_s17, 4294965760  ;;  %s6222_s27 = sand.u32 1, %s5222_s25   ;;  %p768_p4 = scmp.lt.s32.totalorder %s5246_s30, 1  ;;  %v816_v0 = vlaneseq  ;;  %v5264_v3 = vmov 0.0  }
  0x7e   : > { %s5584_s23 = sshll.u32 %s6222_s27, 3  ;;  %p781_p5 = scmp.lt.s32.totalorder %s5242_s0, 1 }
  0x7f   : > { %v817_v1 = vshrl.u32 %v816_v0, 7  ;;  %v819_v2 = vand.u32 127, %v816_v0  ;;  %s769_s20 = scalar_select %p768_p4, %s5246_s30, 1 }
  0x80   : > { %s5589_s24 = scalar_select %p781_p5, %s5242_s0, 1 }
  0x81   : > { %vm820_vm0 = vcmp.gt.s32.totalorder %v819_v2, %v817_v1  ;;  %vm822_vm1 = vcmp.ge.s32.totalorder %v817_v1, 1  ;;  %vm825_vm2 = vcmp.ge.s32.totalorder %v817_v1, 2  ;;  %s4102_s22 = sshll.u32 %s769_s20, 3  ;;  %s4327_s4 = sshll.u32 %s769_s20, 4 }
  0x82   : > { %v5592_v4 = vsel %vm820_vm0, -1e+30, %v5264_v3  ;;  %v5595_v5 = vsel %vm822_vm1, 1.0, %v5264_v3  ;;  %v5598_v6 = vsel %vm825_vm2, 1.0, %v5264_v3  ;;  %s6270_s26 = sld [smem:[#allocation31_spill]]  ;;  %s6271_s21 = sld [smem:[#allocation32_spill]] }
  0x83   : > { %s6272_s2 = sld [smem:[#allocation33_spill]]  ;;  %s4106_s18 = sshll.u32 %s5589_s24, 2 }
  0x84   : > { %s6273_s5 = sld [smem:[#allocation36_spill]]  ;;  %s6274_s6 = sld [smem:[#allocation37_spill]] }
  0x85   : > { %s4794_s15 = smul.u32 96, %s5589_s24  ;;  %p4114_p7 = scmp.ne.s32.totalorder %s5242_s0, 0 }
  0x86   : > { %s4795_s29 = smul.u32 192, %s5589_s24  ;;  %v5265_v8 = vmov (!%p4114_p7), 0.0   ;;  %vm5266_vm3 = vmmov (!%p4114_p7), 0   ;;  %vm859_vm4 = vcmask (!%p4114_p7), 392192   ;;  %vm903_vm5 = vcmask (!%p4114_p7), 523264  }
  0x87   : > { %s5637_s28 = scalar_lea.vmem %s6196_s7, %s4794_s15  ;;  %s5642_s30 = scalar_lea.vmem %s6197_s8, %s4794_s15  ;;  %4471 = vmatprep.subr.bf16.mxu0 (!%p4114_p7), %v5265_v8  ;;  %4477 = vmatprep.mubr.msk.bf16.mxu0 (!%p4114_p7), %vm5266_vm3, %v5265_v8 }
  0x88   : > { %s771_s16 = scalar_lea.vmem %s6270_s26, %s4102_s22  ;;  %s5606_s17 = scalar_lea.vmem %s6271_s21, %s4327_s4 }
  0x89   : > { %s5611_s11 = scalar_lea.vmem %s6272_s2, %s4102_s22  ;;  %s5647_s26 = scalar_lea.vmem %s6198_s9, %s4794_s15  ;;  %v832_v11 = vld [vmem:[%s771_s16] sm:$0xff] (!%p4114_p7) }
  0x8a   : > { %s5617_s25 = scalar_lea.vmem %s6273_s5, %s4106_s18  ;;  %s5622_s3 = scalar_lea.vmem %s6274_s6, %s4106_s18  ;;  %v833_v12 = vpack.c.bf16 (!%p4114_p7), %v832_v11, %v832_v11 }
  0x8b   : > { %s6275_s6 = sld [smem:[#allocation40_spill]]  ;;  %s767_s22 = scalar_lea.vmem [#allocation11], %s5584_s23 }
  0x8c   : > { %831 = sbr.rel (%p4114_p7) target bundleno = 373 (0x175), region = 100  ;;  %s6276_s21 = sld [smem:[#allocation34_spill]] (!%p4114_p7) }
  0x8d   : > { %s6277_s18 = sld [smem:[#allocation35_spill]] (!%p4114_p7) }
  0x91   : > { %s5652_s27 = scalar_lea.vmem %s6275_s6, %s4795_s29 }
  0x92   : > { %v4917_v7 = vld [vmem:[%s6276_s21] sm:$0xff] (!%p4114_p7)   ;;  %v4918_v9 = vld [vmem:[%s6276_s21 + $0x8] sm:$0xff] (!%p4114_p7)   ;;  %v4919_v10 = vld [vmem:[%s6276_s21 + $0x10] sm:$0xff] (!%p4114_p7)  }
  0x93   : > { %4472 = vmatpush3.bf16.msra.mxu0 %v4917_v7  ;;  %v840_v13 = vld [vmem:[%s6277_s18] sm:$0xff] }
  0x94   : > { %4473 = vmatprep.subr.bf16.mxu0 %v5265_v8 }
  0x97   : > { %4474 = vmatpush3.bf16.msra.mxu0 %v4918_v9 }
  0x98   : > { %4475 = vmatprep.subr.bf16.mxu0 %v5265_v8 }
  0x9b   : > { %4476 = vmatpush3.bf16.msra.mxu0 %v4919_v10 }
  0x9e   : > { %4478 = vmatmul.mubr.msk.bf16.vlgmr.msra.gmra.mrb[0].mxu0 %vm859_vm4, %v833_v12 }
 0x171   : > { %v897_v14 = vpop.f32.mrb[0].mxu0 }
 0x172   : > { %v898_v15 = vadd.f32 %v897_v14, %v840_v13  ;;  %v4479_v16 = vpop.f32.mrb[1].mxu0 }
 0x173   : > { %v900_v17 = vpop.f32.mrb[2].mxu0 }
 0x174   : > { %904 = vst.msk [vmem:[#allocation2] sm:$0xff] %vm903_vm5, %v898_v15  ;;  %v4480_v18 = vpop.f32.mrb[3].mxu0 }
 0x175 PF: > { %vm911_vm6 = vcmask 523264   ;;  %4481 = vmatprep.subr.bf16.mxu1 %v5264_v3  ;;  %4505 = vmatprep.subr.bf16.mxu0 %v5264_v3  ;;  %v4920_v26 = vld [vmem:[%s5637_s28] sm:$0xff]   ;;  %vm5267_vm7 = vmmov 0   ;;  %v4922_v28 = vld [vmem:[%s5637_s28 + $0x8] sm:$0xff]   ;;  %v4924_v30 = vld [vmem:[%s5637_s28 + $0x10] sm:$0xff]   ;;  %vm1178_vm10 = vcmask 130048  }
 0x176   : > { %v4921_v27 = vld [vmem:[%s5647_s26] sm:$0xff]   ;;  %4489 = vmatprep.mubr.msk.bf16.mxu1 %vm5267_vm7, %v5264_v3  ;;  %4513 = vmatprep.mubr.msk.bf16.mxu0 %vm5267_vm7, %v5264_v3  ;;  %v4923_v29 = vld [vmem:[%s5647_s26 + $0x8] sm:$0xff]   ;;  %v4925_v31 = vld [vmem:[%s5647_s26 + $0x10] sm:$0xff]   ;;  %s5268_s16 = smov 96   ;;  %s5269_s13 = smov 112   ;;  %vm1241_vm11 = vcmask 1043456  }
 0x177   : > { %4482 = vmatpush3.bf16.msra.mxu1 %v4920_v26  ;;  %4506 = vmatpush3.bf16.msra.mxu0 %v4921_v27  ;;  %v4926_v32 = vld [vmem:[%s5637_s28 + $0x18] sm:$0xff]   ;;  %v4119_v43 = vld [vmem:[%s5617_s25] ss:$0 sm:$0xff]  ;;  %v4929_v50 = vld [vmem:[%s5642_s30 + $0x8] sm:$0xff]   ;;  %s5270_s4 = smov 80   ;;  %vm1225_vm12 = vcmask 64512  }
 0x178   : > { %4483 = vmatprep.subr.bf16.mxu1 %v5264_v3  ;;  %4507 = vmatprep.subr.bf16.mxu0 %v5264_v3  ;;  %v4927_v33 = vld [vmem:[%s5647_s26 + $0x18] sm:$0xff]   ;;  %v4120_v45 = vld [vmem:[%s5622_s3] ss:$0 sm:$0xff]  ;;  %v4930_v51 = vld [vmem:[%s5642_s30 + $0x10] sm:$0xff]   ;;  %s5271_s2 = smov 16   ;;  %s5272_s20 = smov 32  }
 0x179   : > { %v4928_v48 = vld [vmem:[%s5642_s30] sm:$0xff]   ;;  %v4931_v52 = vld [vmem:[%s5642_s30 + $0x18] sm:$0xff]   ;;  %s5273_s5 = smov 48   ;;  %vm1403_vm13 = vcmask 261248   ;;  %vm1519_vm14 = vcmask 392448   ;;  %vm1635_vm15 = vcmask 523648  }
 0x17a   : > { %vm2032_vm2 = vcmask 97280   ;;  %vm2048_vm3 = vcmask 1045504   ;;  %p4320_p1 = scmp.ne.s32.totalorder %s5242_s0, 1 }
 0x17b   : > { %v5668_v19 = vld [vmem:[#allocation2] sm:$0xff]  ;;  %4484 = vmatpush3.bf16.msra.mxu1 %v4922_v28  ;;  %4508 = vmatpush3.bf16.msra.mxu0 %v4923_v29  ;;  %s6282_s15 = sld [smem:[#allocation42_spill]] (!%p4320_p1) }
 0x17c   : > { %v912_v20 = vsel %vm911_vm6, %v5668_v19, 0.0  ;;  %4485 = vmatprep.subr.bf16.mxu1 %v5264_v3  ;;  %4509 = vmatprep.subr.bf16.mxu0 %v5264_v3 }
 0x17d   : > { %913 = vadd.xlane.f32.xlu0 %v912_v20 }
 0x17f   : > { %4486 = vmatpush3.bf16.msra.mxu1 %v4924_v30  ;;  %4510 = vmatpush3.bf16.msra.mxu0 %v4925_v31 }
 0x180   : > { %4487 = vmatprep.subr.bf16.mxu1 %v5264_v3  ;;  %4511 = vmatprep.subr.bf16.mxu0 %v5264_v3 }
 0x183   : > { %4488 = vmatpush3.bf16.msra.mxu1 %v4926_v32  ;;  %4512 = vmatpush3.bf16.msra.mxu0 %v4927_v33 }
 0x184   : > { %4493 = vmatprep.subr.bf16.mxu1 %v5264_v3  ;;  %4529 = vmatprep.subr.bf16.mxu0 %v5264_v3 }
 0x20a   : > { %v914_v21 = vpop.xlane.xlu0 %913 }
 0x20b   : > { %v916_v22 = vmul.f32 0.015625, %v914_v21 }
 0x20d   : > { %v917_v23 = vsub.f32 %v5668_v19, %v916_v22 }
 0x20f   : > { %v918_v24 = vmul.f32 %v917_v23, %v917_v23 }
 0x211   : > { %v919_v25 = vsel %vm911_vm6, %v918_v24, 0.0 }
 0x212   : > { %920 = vadd.xlane.f32.xlu0 %v919_v25 }
 0x29f   : > { %v921_v34 = vpop.xlane.xlu0 %920 }
 0x2a0   : > { %v922_v35 = vmul.f32 0.015873017, %v921_v34 }
 0x2a2   : > { %5004 = vrsqrt.f32 %v922_v35  ;;  %vm925_vm8 = vcmp.eq.f32.partialorder %v922_v35, inf  ;;  %v928_v38 = vand.u32 2147483648, %v922_v35  ;;  %vm927_vm9 = vcmp.eq.f32.partialorder %v922_v35, 0.0 }
 0x2ac   : > { %v5005_v36 = vpop.eup %5004 }
 0x2ad   : > { %v924_v37 = vmul.f32 %v5005_v36, %v922_v35 }
 0x2af   : > { %v926_v39 = vsel %vm925_vm8, %v922_v35, %v924_v37  ;;  %vm2834_vm8 = vcmask 48128  }
 0x2b0   : > { %v929_v40 = vsel %vm927_vm9, %v928_v38, %v926_v39  ;;  %vm2850_vm9 = vcmask 1042432  }
 0x2b1   : > { %v930_v41 = vadd.f32 1e-06, %v929_v40 }
 0x2b3   : > { %5006 = vrcp.f32 %v930_v41 }
 0x2bd   : > { %v5007_v42 = vpop.eup %5006 }
 0x2be   : > { %v932_v44 = vmul.f32 %v5007_v42, %v917_v23 }
 0x2c0   : > { %v939_v46 = vmul.f32 %v4119_v43, %v932_v44 }
 0x2c2   : > { %v946_v47 = vadd.f32 %v4120_v45, %v939_v46 }
 0x2c4   : > { %v979_v49 = vpack.c.bf16 %v946_v47, %v946_v47 }
 0x2c6   : > { %4490 = vmatmul.mubr.msk.bf16.vlgmr.msra.gmra.mrb[0].mxu1 %vm911_vm6, %v979_v49  ;;  %4514 = vmatmul.mubr.msk.bf16.vlgmr.msra.gmra.mrb[0].mxu0 %vm911_vm6, %v979_v49 }
 0x2c7   : > { %4494 = vmatpush3.bf16.msra.mxu1 %v4928_v48  ;;  %4501 = vmatprep.mubr.msk.bf16.mxu1 %vm5267_vm7, %v5264_v3 }
 0x2c8   : > { %4495 = vmatprep.subr.bf16.mxu1 %v5264_v3  ;;  %4531 = vmatprep.mubr.msk.bf16.mxu0 %vm5267_vm7, %v5264_v3 }
 0x2cb   : > { %4496 = vmatpush3.bf16.msra.mxu1 %v4929_v50 }
 0x2cc   : > { %4497 = vmatprep.subr.bf16.mxu1 %v5264_v3 }
 0x2cf   : > { %4498 = vmatpush3.bf16.msra.mxu1 %v4930_v51 }
 0x2d0   : > { %4499 = vmatprep.subr.bf16.mxu1 %v5264_v3 }
 0x2d3   : > { %4500 = vmatpush3.bf16.msra.mxu1 %v4931_v52 }
 0x2d4   : > { %4517 = vmatprep.subr.bf16.mxu1 %v5264_v3 }
 0x2d6   : > { %4502 = vmatmul.mubr.msk.bf16.vlgmr.msra.gmra.mrb[4].mxu1 %vm911_vm6, %v979_v49 }
 0x2d7   : > { %4519 = vmatprep.mubr.msk.bf16.mxu1 %vm5267_vm7, %v5264_v3 }
 0x399   : > { %v1041_v53 = vpop.f32.mrb[0].mxu1  ;;  %v1171_v54 = vpop.f32.mrb[0].mxu0 }
 0x39a   : > { %v4491_v55 = vpop.f32.mrb[1].mxu1  ;;  %v4515_v56 = vpop.f32.mrb[1].mxu0  ;;  %v1047_v7 = vpack.c.bf16 %v1041_v53, %v1041_v53  ;;  %v5719_v8 = vpack.c.bf16 %v1171_v54, %v1171_v54 }
 0x39b   : > { %v1044_v57 = vpop.f32.mrb[2].mxu1  ;;  %v1174_v58 = vpop.f32.mrb[2].mxu0 }
 0x39c   : > { %v4492_v59 = vpop.f32.mrb[3].mxu1  ;;  %v4516_v60 = vpop.f32.mrb[3].mxu0  ;;  %v1243_v9 = vsel %vm1241_vm11, %v5719_v8, 0 }
 0x3a9   : > { %v1106_v61 = vpop.f32.mrb[4].mxu1 }
 0x3aa   : > { %v1112_v62 = vpack.c.bf16 %v1106_v61, %v1106_v61  ;;  %v4503_v63 = vpop.f32.mrb[5].mxu1 }
 0x3ab   : > { %v1109_v0 = vpop.f32.mrb[6].mxu1 }
 0x3ac   : > { %1407 = vrot.lane.b32.xlu0 %v1112_v62, %s5268_s16  ;;  %1290 = vrot.lane.b32.xlu1 %v1112_v62, %s5269_s13  ;;  %v4504_v1 = vpop.f32.mrb[7].mxu1  ;;  %v1183_v2 = vsel %vm1178_vm10, %v1112_v62, 0 }
 0x3ad   : > { %4518 = vmatpush3.bf16.xpose.msra.mxu1 %v1183_v2 }
 0x3ae   : > { %4523 = vmatprep.subr.bf16.mxu1 %v5264_v3 }
 0x3b0   : > { %1287 = vrot.lane.b32.xlu1 %v1047_v7, %s5269_s13 }
 0x3b4   : > { %1405 = vrot.lane.b32.xlu1 %v1047_v7, %s5268_s16  ;;  %4520 = vmatmul.mubr.msk.bf16.vlgmr.msra.gmra.mrb[8].mxu1 %vm1178_vm10, %v1047_v7 }
 0x3b5   : > { %4524 = vmatpush3.bf16.msra.mxu1 %v1243_v9  ;;  %4525 = vmatprep.mubr.msk.bf16.mxu1 %vm5267_vm7, %v5264_v3 }
 0x3b6   : > { %4535 = vmatprep.subr.bf16.mxu1 %v5264_v3 }
 0x3b8   : > { %1523 = vrot.lane.b32.xlu1 %v1112_v62, %s5270_s4 }
 0x3bc   : > { %1521 = vrot.lane.b32.xlu1 %v1047_v7, %s5270_s4 }
 0x41e   : > { %v1291_v10 = vpop.permute.xlu1 %1290  ;;  %v1408_v13 = vpop.permute.xlu0 %1407 }
 0x41f   : > { %v1296_v11 = vsel %vm1178_vm10, %v1291_v10, 0  ;;  %v1413_v15 = vsel %vm1178_vm10, %v1408_v13, 0 }
 0x420   : > { %4530 = vmatpush3.bf16.xpose.msra.mxu0 %v1296_v11 }
 0x421   : > { %4541 = vmatprep.subr.bf16.mxu0 %v5264_v3 }
 0x422   : > { %v1288_v12 = vpop.permute.xlu1 %1287 }
 0x426   : > { %v1406_v14 = vpop.permute.xlu1 %1405 }
 0x427   : > { %4532 = vmatmul.mubr.msk.bf16.vlgmr.msra.gmra.mrb[4].mxu0 %vm1178_vm10, %v1288_v12 }
 0x428   : > { %4542 = vmatpush3.bf16.xpose.msra.mxu0 %v1413_v15  ;;  %4543 = vmatprep.mubr.msk.bf16.mxu0 %vm5267_vm7, %v5264_v3 }
 0x429   : > { %4553 = vmatprep.subr.bf16.mxu0 %v5264_v3 }
 0x42a   : > { %v1524_v16 = vpop.permute.xlu1 %1523 }
 0x42b   : > { %v1529_v17 = vsel %vm1178_vm10, %v1524_v16, 0 }
 0x42e   : > { %v1522_v18 = vpop.permute.xlu1 %1521 }
 0x42f   : > { %4544 = vmatmul.mubr.msk.bf16.vlgmr.msra.gmra.mrb[8].mxu0 %vm1178_vm10, %v1406_v14 }
 0x430   : > { %4554 = vmatpush3.bf16.xpose.msra.mxu0 %v1529_v17  ;;  %4555 = vmatprep.mubr.msk.bf16.mxu0 %vm5267_vm7, %v5264_v3 }
 0x431   : > { %4565 = vmatprep.subr.bf16.mxu0 %v5264_v3 }
 0x437   : > { %4556 = vmatmul.mubr.msk.bf16.vlgmr.msra.gmra.mrb[12].mxu0 %vm1178_vm10, %v1522_v18 }
 0x438   : > { %4573 = vmatprep.mubr.msk.bf16.mxu0 %vm5267_vm7, %v5264_v3 }
 0x487   : > { %v1219_v20 = vpop.f32.mrb[8].mxu1 }
 0x488   : > { %v1220_v21 = vadd.f32 %v1219_v20, %v5592_v4  ;;  %v4521_v22 = vpop.f32.mrb[9].mxu1 }
 0x489   : > { %v1222_v23 = vpop.f32.mrb[10].mxu1 }
 0x48a   : > { %v4522_v24 = vpop.f32.mrb[11].mxu1  ;;  %v1226_v25 = vsel %vm1225_vm12, %v1220_v21, -inf }
 0x48b   : > { %1227 = vmax.xlane.f32.xlu1 %v1226_v25 }
 0x4fa   : > { %v1332_v26 = vpop.f32.mrb[4].mxu0 }
 0x4fb   : > { %v1333_v27 = vadd.f32 %v1332_v26, %v5592_v4  ;;  %v4533_v28 = vpop.f32.mrb[5].mxu0 }
 0x4fc   : > { %v1335_v29 = vpop.f32.mrb[6].mxu0 }
 0x4fd   : > { %v4534_v30 = vpop.f32.mrb[7].mxu0  ;;  %v1338_v31 = vsel %vm1225_vm12, %v1333_v27, -inf }
 0x4fe   : > { %1339 = vmax.xlane.f32.xlu0 %v1338_v31  ;;  %v4932_v30 = vld [vmem:[%s5568_s10] sm:$0xff]   ;;  %v4933_v31 = vld [vmem:[%s5568_s10 + $0x8] sm:$0xff]  }
 0x4ff   : > { %4566 = vmatpush3.bf16.msra.mxu0 %v4932_v30 }
 0x500   : > { %4567 = vmatprep.subr.bf16.mxu0 %v5264_v3 }
 0x502   : > { %v1449_v32 = vpop.f32.mrb[8].mxu0 }
 0x503   : > { %v1450_v33 = vadd.f32 %v1449_v32, %v5592_v4  ;;  %v4545_v34 = vpop.f32.mrb[9].mxu0  ;;  %4568 = vmatpush3.bf16.msra.mxu0 %v4933_v31 }
 0x504   : > { %v1452_v35 = vpop.f32.mrb[10].mxu0  ;;  %4569 = vmatprep.subr.bf16.mxu0 %v5264_v3 }
 0x505   : > { %v4546_v36 = vpop.f32.mrb[11].mxu0  ;;  %v1455_v37 = vsel %vm1225_vm12, %v1450_v33, -inf }
 0x506   : > { %1456 = vmax.xlane.f32.xlu1 %v1455_v37 }
 0x50a   : > { %v1565_v38 = vpop.f32.mrb[12].mxu0 }
 0x50b   : > { %v1566_v39 = vadd.f32 %v1565_v38, %v5592_v4  ;;  %v4557_v40 = vpop.f32.mrb[13].mxu0 }
 0x50c   : > { %v1568_v41 = vpop.f32.mrb[14].mxu0  ;;  %v4934_v40 = vld [vmem:[%s5568_s10 + $0x10] sm:$0xff]  }
 0x50d   : > { %v4558_v42 = vpop.f32.mrb[15].mxu0  ;;  %v1571_v43 = vsel %vm1225_vm12, %v1566_v39, -inf  ;;  %4570 = vmatpush3.bf16.msra.mxu0 %v4934_v40  ;;  %v4935_v41 = vld [vmem:[%s5568_s10 + $0x18] sm:$0xff]   ;;  %v4944_v40 = vld [vmem:[%s5647_s26 + $0x20] sm:$0xff]  }
 0x50e   : > { %1572 = vmax.xlane.f32.xlu1 %v1571_v43  ;;  %4571 = vmatprep.subr.bf16.mxu0 %v5264_v3 }
 0x511   : > { %4572 = vmatpush3.bf16.msra.mxu0 %v4935_v41  ;;  %v4945_v41 = vld [vmem:[%s5647_s26 + $0x28] sm:$0xff]  }
 0x512   : > { %4589 = vmatprep.subr.bf16.mxu0 %v5264_v3 }
 0x518   : > { %v1228_v44 = vpop.xlane.xlu1 %1227 }
 0x519   : > { %v1229_v45 = vsub.f32 %v1220_v21, %v1228_v44 }
 0x51b   : > { %v1230_v46 = vmul.f32 1.442695, %v1229_v45 }
 0x51d   : > { %5008 = vpow2.f32 %v1230_v46 }
 0x527   : > { %v5009_v47 = vpop.eup %5008 }
 0x528   : > { %v1232_v48 = vsel %vm1225_vm12, %v5009_v47, 0.0 }
 0x529   : > { %1233 = vadd.xlane.f32.xlu0 %v1232_v48 }
 0x58b   : > { %v1340_v49 = vpop.xlane.xlu0 %1339 }
 0x58c   : > { %v1341_v50 = vsub.f32 %v1333_v27, %v1340_v49 }
 0x58e   : > { %v1342_v51 = vmul.f32 1.442695, %v1341_v50 }
 0x590   : > { %5010 = vpow2.f32 %v1342_v51 }
 0x593   : > { %v1457_v52 = vpop.xlane.xlu1 %1456 }
 0x594   : > { %v1458_v4 = vsub.f32 %v1450_v33, %v1457_v52 }
 0x596   : > { %v1459_v53 = vmul.f32 1.442695, %v1458_v4 }
 0x598   : > { %5012 = vpow2.f32 %v1459_v53 }
 0x59a   : > { %v5011_v54 = vpop.eup %5010 }
 0x59b   : > { %v1344_v55 = vsel %vm1225_vm12, %v5011_v54, 0.0  ;;  %v1573_v59 = vpop.xlane.xlu1 %1572 }
 0x59c   : > { %1345 = vadd.xlane.f32.xlu1 %v1344_v55  ;;  %v1574_v60 = vsub.f32 %v1566_v39, %v1573_v59 }
 0x59e   : > { %v1575_v61 = vmul.f32 1.442695, %v1574_v60  ;;  %v4936_v60 = vld [vmem:[%s5642_s30 + $0x20] sm:$0xff]  }
 0x5a2   : > { %v5013_v56 = vpop.eup %5012 }
 0x5a3   : > { %v1461_v57 = vsel %vm1225_vm12, %v5013_v56, 0.0 }
 0x5a4   : > { %1462 = vadd.xlane.f32.xlu0 %v1461_v57 }
 0x5ad   : > { %1467 = vrot.lane.b32.xlu1 %v5719_v8, %s5268_s16 }
 0x5b6   : > { %v1234_v58 = vpop.xlane.xlu0 %1233 }
 0x5b7   : > { %5014 = vrcp.f32 %v1234_v58 }
 0x5b8   : > { %5016 = vpow2.f32 %v1575_v61  ;;  %v4937_v61 = vld [vmem:[%s5642_s30 + $0x28] sm:$0xff]  }
 0x5ba   : > { %1351 = vrot.lane.b32.xlu0 %v5719_v8, %s5269_s13 }
 0x5c1   : > { %v5015_v62 = vpop.eup %5014 }
 0x5c2   : > { %v1236_v63 = vmul.f32 %v5015_v62, %v5009_v47  ;;  %v5017_v1 = vpop.eup %5016  ;;  %v4938_v62 = vld [vmem:[%s5642_s30 + $0x30] sm:$0xff]  }
 0x5c3   : > { %v1577_v2 = vsel %vm1225_vm12, %v5017_v1, 0.0 }
 0x5c4   : > { %v1237_v0 = vpack.c.bf16 %v1236_v63, %v1236_v63  ;;  %v4939_v63 = vld [vmem:[%s5642_s30 + $0x38] sm:$0xff]  }
 0x5c6   : > { %4526 = vmatmul.mubr.msk.bf16.vlgmr.msra.gmra.mrb[12].mxu1 %vm1225_vm12, %v1237_v0  ;;  %v4940_v0 = vld [vmem:[%s5637_s28 + $0x20] sm:$0xff]  }
 0x5c7   : > { %4537 = vmatprep.mubr.msk.bf16.mxu1 %vm5267_vm7, %v5264_v3 }
 0x5d1   : > { %1578 = vadd.xlane.f32.xlu1 %v1577_v2  ;;  %v907_v2 = vld [vmem:[%s5606_s17 + $0x8] sm:$0xf] }
 0x5e2   : > { %1583 = vrot.lane.b32.xlu1 %v5719_v8, %s5270_s4 }
 0x629   : > { %v1346_v7 = vpop.xlane.xlu1 %1345 }
 0x62a   : > { %5018 = vrcp.f32 %v1346_v7 }
 0x62d   : > { %v1468_v14 = vpop.permute.xlu1 %1467 }
 0x62e   : > { %v1473_v16 = vsel %vm1241_vm11, %v1468_v14, 0 }
 0x631   : > { %v1463_v9 = vpop.xlane.xlu0 %1462 }
 0x632   : > { %5020 = vrcp.f32 %v1463_v9  ;;  %v4941_v9 = vld [vmem:[%s5637_s28 + $0x28] sm:$0xff]  }
 0x634   : > { %v5019_v10 = vpop.eup %5018 }
 0x635   : > { %v1348_v11 = vmul.f32 %v5019_v10, %v5011_v54  ;;  %v1352_v12 = vpop.permute.xlu0 %1351  ;;  %v4942_v10 = vld [vmem:[%s5637_s28 + $0x30] sm:$0xff]  }
 0x636   : > { %v1357_v13 = vsel %vm1241_vm11, %v1352_v12, 0 }
 0x637   : > { %4536 = vmatpush3.bf16.msra.mxu1 %v1357_v13  ;;  %v1349_v15 = vpack.c.bf16 %v1348_v11, %v1348_v11  ;;  %v4943_v11 = vld [vmem:[%s5637_s28 + $0x38] sm:$0xff]  }
 0x638   : > { %4547 = vmatprep.subr.bf16.mxu1 %v5264_v3 }
 0x63a   : > { %4538 = vmatmul.mubr.msk.bf16.vlgmr.msra.gmra.mrb[16].mxu1 %vm1225_vm12, %v1349_v15 }
 0x63b   : > { %4548 = vmatpush3.bf16.msra.mxu1 %v1473_v16  ;;  %4549 = vmatprep.mubr.msk.bf16.mxu1 %vm5267_vm7, %v5264_v3 }
 0x63c   : > { %v5021_v8 = vpop.eup %5020  ;;  %4559 = vmatprep.subr.bf16.mxu1 %v5264_v3 }
 0x63d   : > { %v1465_v17 = vmul.f32 %v5021_v8, %v5013_v56 }
 0x63f   : > { %v1466_v18 = vpack.c.bf16 %v1465_v17, %v1465_v17 }
 0x642   : > { %4550 = vmatmul.mubr.msk.bf16.vlgmr.msra.gmra.mrb[20].mxu1 %vm1225_vm12, %v1466_v18 }
 0x643   : > { %4561 = vmatprep.mubr.msk.bf16.mxu1 %vm5267_vm7, %v5264_v3 }
 0x65e   : > { %v1579_v20 = vpop.xlane.xlu1 %1578 }
 0x65f   : > { %5022 = vrcp.f32 %v1579_v20 }
 0x662   : > { %v1584_v21 = vpop.permute.xlu1 %1583 }
 0x663   : > { %v1589_v22 = vsel %vm1241_vm11, %v1584_v21, 0  ;;  %v4151_v21 = vld [vmem:[%s5617_s25 + $0x1] ss:$0 sm:$0xff] }
 0x664   : > { %4560 = vmatpush3.bf16.msra.mxu1 %v1589_v22 }
 0x665   : > { %4577 = vmatprep.subr.bf16.mxu1 %v5264_v3 }
 0x669   : > { %v5023_v23 = vpop.eup %5022 }
 0x66a   : > { %v1581_v24 = vmul.f32 %v5023_v23, %v5017_v1  ;;  %v906_v1 = vld [vmem:[%s5606_s17] sm:$0xff] }
 0x66b   : > { %v5817_v7 = vpack.c.bf16 %v907_v2, %v906_v1  ;;  %v4152_v23 = vld [vmem:[%s5622_s3 + $0x1] ss:$0 sm:$0xff] }
 0x66c   : > { %v1582_v25 = vpack.c.bf16 %v1581_v24, %v1581_v24 }
 0x66e   : > { %4562 = vmatmul.mubr.msk.bf16.vlgmr.msra.gmra.mrb[24].mxu1 %vm1225_vm12, %v1582_v25  ;;  %vm3383_vm12 = vcmask 1048064  }
 0x66f   : > { %4585 = vmatprep.mubr.msk.bf16.mxu1 %vm5267_vm7, %v5264_v3  ;;  %4578 = vmatpush3.bf16.msra.mxu1 %v4940_v0 }
 0x670   : > { %4579 = vmatprep.subr.bf16.mxu1 %v5264_v3 }
 0x673   : > { %4580 = vmatpush3.bf16.msra.mxu1 %v4941_v9 }
 0x674   : > { %4581 = vmatprep.subr.bf16.mxu1 %v5264_v3 }
 0x677   : > { %4582 = vmatpush3.bf16.msra.mxu1 %v4942_v10 }
 0x678   : > { %4583 = vmatprep.subr.bf16.mxu1 %v5264_v3 }
 0x67b   : > { %4584 = vmatpush3.bf16.msra.mxu1 %v4943_v11 }
 0x67c   : > { %4601 = vmatprep.subr.bf16.mxu1 %v5264_v3 }
 0x699   : > { %v1279_v26 = vpop.f32.mrb[12].mxu1 }
 0x69a   : > { %1285 = vst.msk [vmem:[#allocation3] sm:$0xff] %vm1178_vm10, %v1279_v26  ;;  %v4527_v27 = vpop.f32.mrb[13].mxu1 }
 0x69b   : > { %v1282_v28 = vpop.f32.mrb[14].mxu1 }
 0x69c   : > { %v4528_v29 = vpop.f32.mrb[15].mxu1 }
 0x70d   : > { %v1393_v32 = vpop.f32.mrb[16].mxu1 }
 0x70e   : > { %1400 = vrot.lane.b32.xlu0 %v1393_v32, %s5271_s2  ;;  %v4539_v33 = vpop.f32.mrb[17].mxu1 }
 0x70f   : > { %v1396_v34 = vpop.f32.mrb[18].mxu1 }
 0x710   : > { %v4540_v35 = vpop.f32.mrb[19].mxu1 }
 0x715   : > { %v1509_v36 = vpop.f32.mrb[20].mxu1 }
 0x716   : > { %1516 = vrot.lane.b32.xlu1 %v1509_v36, %s5272_s20  ;;  %v4551_v37 = vpop.f32.mrb[21].mxu1 }
 0x717   : > { %v1512_v38 = vpop.f32.mrb[22].mxu1 }
 0x718   : > { %v4552_v39 = vpop.f32.mrb[23].mxu1 }
 0x741   : > { %v1625_v42 = vpop.f32.mrb[24].mxu1 }
 0x742   : > { %1632 = vrot.lane.b32.xlu0 %v1625_v42, %s5273_s5  ;;  %v4563_v43 = vpop.f32.mrb[25].mxu1  ;;  %v4946_v42 = vld [vmem:[%s5647_s26 + $0x30] sm:$0xff]  }
 0x743   : > { %v1628_v44 = vpop.f32.mrb[26].mxu1  ;;  %v4947_v43 = vld [vmem:[%s5647_s26 + $0x38] sm:$0xff]  }
 0x744   : > { %v4564_v45 = vpop.f32.mrb[27].mxu1 }
 0x780   : > { %v1401_v46 = vpop.permute.xlu0 %1400 }
 0x781   : > { %1404 = vst.msk [vmem:[#allocation3] sm:$0xff] %vm1403_vm13, %v1401_v46 }
 0x788   : > { %v1517_v47 = vpop.permute.xlu1 %1516 }
 0x789   : > { %1520 = vst.msk [vmem:[#allocation3] sm:$0xff] %vm1519_vm14, %v1517_v47 }
 0x7b4   : > { %v1633_v48 = vpop.permute.xlu0 %1632 }
 0x7b5   : > { %1636 = vst.msk [vmem:[#allocation3] sm:$0xff] %vm1635_vm15, %v1633_v48 }
 0x7bc   : > { %v1637_v49 = vld [vmem:[#allocation3] sm:$0xff] }
 0x7bd   : > { %v1638_v50 = vpack.c.bf16 %v1637_v49, %v1637_v49 }
 0x7bf   : > { %4574 = vmatmul.mubr.msk.bf16.vlgmr.msra.gmra.mrb[16].mxu0 %vm911_vm6, %v1638_v50 }
 0x7c0   : > { %4597 = vmatprep.mubr.msk.bf16.mxu0 %vm5267_vm7, %v5264_v3  ;;  %4590 = vmatpush3.bf16.msra.mxu0 %v4936_v60 }
 0x7c1   : > { %4591 = vmatprep.subr.bf16.mxu0 %v5264_v3 }
 0x7c4   : > { %4592 = vmatpush3.bf16.msra.mxu0 %v4937_v61 }
 0x7c5   : > { %4593 = vmatprep.subr.bf16.mxu0 %v5264_v3 }
 0x7c8   : > { %4594 = vmatpush3.bf16.msra.mxu0 %v4938_v62 }
 0x7c9   : > { %4595 = vmatprep.subr.bf16.mxu0 %v5264_v3 }
 0x7cc   : > { %4596 = vmatpush3.bf16.msra.mxu0 %v4939_v63 }
 0x7cd   : > { %4613 = vmatprep.subr.bf16.mxu0 %v5264_v3 }
 0x7cf   : > { %4598 = vmatmul.mubr.msk.bf16.vlgmr.msra.gmra.mrb[20].mxu0 %vm911_vm6, %v5817_v7 }
 0x7d0   : > { %4615 = vmatprep.mubr.msk.bf16.mxu0 %vm5267_vm7, %v5264_v3 }
 0x892   : > { %v1700_v51 = vpop.f32.mrb[16].mxu0 }
 0x893   : > { %v5801_v52 = vadd.f32 %v1700_v51, %v5668_v19  ;;  %v4575_v4 = vpop.f32.mrb[17].mxu0 }
 0x894   : > { %v1703_v53 = vpop.f32.mrb[18].mxu0 }
 0x895   : > { %v4576_v54 = vpop.f32.mrb[19].mxu0  ;;  %v1711_v55 = vsel %vm911_vm6, %v5801_v52, 0.0 }
 0x896   : > { %1712 = vadd.xlane.f32.xlu1 %v1711_v55 }
 0x8a2   : > { %v1912_v27 = vpop.f32.mrb[20].mxu0 }
 0x8a3   : > { %v4599_v28 = vpop.f32.mrb[21].mxu0 }
 0x8a4   : > { %v1915_v29 = vpop.f32.mrb[22].mxu0 }
 0x8a5   : > { %v1919_v30 = vpack.c.bf16 %v1915_v29, %v1912_v27  ;;  %v4600_v31 = vpop.f32.mrb[23].mxu0 }
 0x8a7   : > { %v1990_v32 = vsel %vm1178_vm10, %v1919_v30, 0 }
 0x8a8   : > { %4614 = vmatpush3.bf16.xpose.msra.mxu0 %v1990_v32 }
 0x8a9   : > { %4625 = vmatprep.subr.bf16.mxu0 %v5264_v3 }
 0x923   : > { %v1713_v56 = vpop.xlane.xlu1 %1712 }
 0x924   : > { %v1714_v57 = vmul.f32 0.015625, %v1713_v56 }
 0x926   : > { %v1715_v58 = vsub.f32 %v5801_v52, %v1714_v57 }
 0x928   : > { %v1716_v59 = vmul.f32 %v1715_v58, %v1715_v58 }
 0x92a   : > { %v1717_v19 = vsel %vm911_vm6, %v1716_v59, 0.0 }
 0x92b   : > { %1718 = vadd.xlane.f32.xlu0 %v1717_v19 }
 0x941   : > { %2097 = vrot.lane.b32.xlu0 %v1919_v30, %s5269_s13 }
 0x9b8   : > { %v1719_v12 = vpop.xlane.xlu0 %1718 }
 0x9b9   : > { %v1720_v13 = vmul.f32 0.015873017, %v1719_v12 }
 0x9bb   : > { %5024 = vrsqrt.f32 %v1720_v13  ;;  %vm1723_vm0 = vcmp.eq.f32.partialorder %v1720_v13, inf  ;;  %v1726_v16 = vand.u32 2147483648, %v1720_v13  ;;  %vm1725_vm1 = vcmp.eq.f32.partialorder %v1720_v13, 0.0 }
 0x9bc   : > { %v2098_v33 = vpop.permute.xlu0 %2097 }
 0x9bd   : > { %v2103_v38 = vsel %vm1178_vm10, %v2098_v33, 0 }
 0x9c5   : > { %v5025_v14 = vpop.eup %5024 }
 0x9c6   : > { %v1722_v15 = vmul.f32 %v5025_v14, %v1720_v13 }
 0x9c8   : > { %v1724_v8 = vsel %vm1723_vm0, %v1720_v13, %v1722_v15 }
 0x9c9   : > { %v1727_v17 = vsel %vm1725_vm1, %v1726_v16, %v1724_v8 }
 0x9ca   : > { %v1728_v18 = vadd.f32 1e-06, %v1727_v17 }
 0x9cc   : > { %5026 = vrcp.f32 %v1728_v18 }
 0x9d6   : > { %v5027_v20 = vpop.eup %5026 }
 0x9d7   : > { %v1730_v22 = vmul.f32 %v5027_v20, %v1715_v58 }
 0x9d9   : > { %v1737_v24 = vmul.f32 %v4151_v21, %v1730_v22 }
 0x9db   : > { %v1744_v25 = vadd.f32 %v4152_v23, %v1737_v24 }
 0x9dd   : > { %v1781_v26 = vpack.c.bf16 %v1744_v25, %v1744_v25 }
 0x9df   : > { %4586 = vmatmul.mubr.msk.bf16.vlgmr.msra.gmra.mrb[28].mxu1 %vm911_vm6, %v1781_v26 }
 0x9e0   : > { %4609 = vmatprep.mubr.msk.bf16.mxu1 %vm5267_vm7, %v5264_v3  ;;  %4602 = vmatpush3.bf16.msra.mxu1 %v4944_v40 }
 0x9e1   : > { %4603 = vmatprep.subr.bf16.mxu1 %v5264_v3 }
 0x9e4   : > { %4604 = vmatpush3.bf16.msra.mxu1 %v4945_v41 }
 0x9e5   : > { %4605 = vmatprep.subr.bf16.mxu1 %v5264_v3 }
 0x9e8   : > { %4606 = vmatpush3.bf16.msra.mxu1 %v4946_v42 }
 0x9e9   : > { %4607 = vmatprep.subr.bf16.mxu1 %v5264_v3 }
 0x9ec   : > { %4608 = vmatpush3.bf16.msra.mxu1 %v4947_v43 }
 0x9ed   : > { %4619 = vmatprep.subr.bf16.mxu1 %v5264_v3 }
 0x9ef   : > { %4610 = vmatmul.mubr.msk.bf16.vlgmr.msra.gmra.mrb[32].mxu1 %vm911_vm6, %v5817_v7 }
 0x9f0   : > { %4621 = vmatprep.mubr.msk.bf16.mxu1 %vm5267_vm7, %v5264_v3 }
 0xab2   : > { %v1844_v34 = vpop.f32.mrb[28].mxu1 }
 0xab3   : > { %v1850_v35 = vpack.c.bf16 %v1844_v34, %v1844_v34  ;;  %v4587_v36 = vpop.f32.mrb[29].mxu1 }
 0xab4   : > { %v1847_v37 = vpop.f32.mrb[30].mxu1 }
 0xab5   : > { %2211 = vrot.lane.b32.xlu0 %v1850_v35, %s5268_s16  ;;  %2094 = vrot.lane.b32.xlu1 %v1850_v35, %s5269_s13  ;;  %v4588_v39 = vpop.f32.mrb[31].mxu1 }
 0xab6   : > { %4616 = vmatmul.mubr.msk.bf16.vlgmr.msra.gmra.mrb[24].mxu0 %vm1178_vm10, %v1850_v35 }
 0xab7   : > { %4626 = vmatpush3.bf16.xpose.msra.mxu0 %v2103_v38  ;;  %4627 = vmatprep.mubr.msk.bf16.mxu0 %vm5267_vm7, %v5264_v3 }
 0xab8   : > { %4637 = vmatprep.subr.bf16.mxu0 %v5264_v3 }
 0xab9   : > { %2326 = vrot.lane.b32.xlu0 %v1850_v35, %s5270_s4  ;;  %2213 = vrot.lane.b32.xlu1 %v1919_v30, %s5268_s16 }
 0xabd   : > { %2328 = vrot.lane.b32.xlu1 %v1919_v30, %s5270_s4 }
 0xac2   : > { %v1978_v14 = vpop.f32.mrb[32].mxu1 }
 0xac3   : > { %v4611_v15 = vpop.f32.mrb[33].mxu1 }
 0xac4   : > { %v1981_v8 = vpop.f32.mrb[34].mxu1 }
 0xac5   : > { %v1985_v18 = vpack.c.bf16 %v1981_v8, %v1978_v14  ;;  %v4612_v20 = vpop.f32.mrb[35].mxu1  ;;  %v4951_v14 = vld [vmem:[%s5568_s10 + $0x38] sm:$0xff]  }
 0xac7   : > { %v2050_v21 = vsel %vm2048_vm3, %v1985_v18, 0 }
 0xac8   : > { %4620 = vmatpush3.bf16.msra.mxu1 %v2050_v21 }
 0xac9   : > { %4631 = vmatprep.subr.bf16.mxu1 %v5264_v3 }
 0xb27   : > { %v2095_v44 = vpop.permute.xlu1 %2094  ;;  %v2212_v48 = vpop.permute.xlu0 %2211 }
 0xb28   : > { %4628 = vmatmul.mubr.msk.bf16.vlgmr.msra.gmra.mrb[28].mxu0 %vm1178_vm10, %v2095_v44 }
 0xb29   : > { %4639 = vmatprep.mubr.msk.bf16.mxu0 %vm5267_vm7, %v5264_v3 }
 0xb2b   : > { %v2214_v45 = vpop.permute.xlu1 %2213  ;;  %v2327_v50 = vpop.permute.xlu0 %2326 }
 0xb2c   : > { %v2219_v46 = vsel %vm1178_vm10, %v2214_v45, 0 }
 0xb2d   : > { %4638 = vmatpush3.bf16.xpose.msra.mxu0 %v2219_v46 }
 0xb2e   : > { %4649 = vmatprep.subr.bf16.mxu0 %v5264_v3 }
 0xb2f   : > { %v2329_v47 = vpop.permute.xlu1 %2328 }
 0xb30   : > { %v2334_v49 = vsel %vm1178_vm10, %v2329_v47, 0 }
 0xb34   : > { %4640 = vmatmul.mubr.msk.bf16.vlgmr.msra.gmra.mrb[32].mxu0 %vm1178_vm10, %v2212_v48 }
 0xb35   : > { %4650 = vmatpush3.bf16.xpose.msra.mxu0 %v2334_v49  ;;  %4651 = vmatprep.mubr.msk.bf16.mxu0 %vm5267_vm7, %v5264_v3 }
 0xb36   : > { %4661 = vmatprep.subr.bf16.mxu0 %v5264_v3 }
 0xb3c   : > { %4652 = vmatmul.mubr.msk.bf16.vlgmr.msra.gmra.mrb[36].mxu0 %vm1178_vm10, %v2327_v50 }
 0xb3d   : > { %4669 = vmatprep.mubr.msk.bf16.mxu0 %vm5267_vm7, %v5264_v3 }
 0xb89   : > { %v2026_v51 = vpop.f32.mrb[24].mxu0 }
 0xb8a   : > { %v4617_v4 = vpop.f32.mrb[25].mxu0  ;;  %v2033_v53 = vsel %vm2032_vm2, %v2026_v51, -inf }
 0xb8b   : > { %2034 = vmax.xlane.f32.xlu1 %v2033_v53  ;;  %v2029_v54 = vpop.f32.mrb[26].mxu0 }
 0xb8c   : > { %v4618_v55 = vpop.f32.mrb[27].mxu0 }
 0xbfb   : > { %v2139_v56 = vpop.f32.mrb[28].mxu0 }
 0xbfc   : > { %v4629_v57 = vpop.f32.mrb[29].mxu0  ;;  %v2145_v58 = vsel %vm2032_vm2, %v2139_v56, -inf }
 0xbfd   : > { %2146 = vmax.xlane.f32.xlu0 %v2145_v58  ;;  %v2142_v59 = vpop.f32.mrb[30].mxu0 }
 0xbfe   : > { %v4630_v19 = vpop.f32.mrb[31].mxu0 }
 0xc07   : > { %v2255_v60 = vpop.f32.mrb[32].mxu0 }
 0xc08   : > { %v4641_v61 = vpop.f32.mrb[33].mxu0  ;;  %v2261_v62 = vsel %vm2032_vm2, %v2255_v60, -inf }
 0xc09   : > { %2262 = vmax.xlane.f32.xlu0 %v2261_v62  ;;  %v2258_v63 = vpop.f32.mrb[34].mxu0  ;;  %v4948_v62 = vld [vmem:[%s5568_s10 + $0x20] sm:$0xff]  }
 0xc0a   : > { %v4642_v0 = vpop.f32.mrb[35].mxu0  ;;  %4662 = vmatpush3.bf16.msra.mxu0 %v4948_v62  ;;  %v4949_v63 = vld [vmem:[%s5568_s10 + $0x28] sm:$0xff]  }
 0xc0b   : > { %4663 = vmatprep.subr.bf16.mxu0 %v5264_v3 }
 0xc0e   : > { %4664 = vmatpush3.bf16.msra.mxu0 %v4949_v63 }
 0xc0f   : > { %v2370_v1 = vpop.f32.mrb[36].mxu0  ;;  %4665 = vmatprep.subr.bf16.mxu0 %v5264_v3 }
 0xc10   : > { %v4653_v2 = vpop.f32.mrb[37].mxu0  ;;  %v2376_v7 = vsel %vm2032_vm2, %v2370_v1, -inf }
 0xc11   : > { %2377 = vmax.xlane.f32.xlu1 %v2376_v7  ;;  %v2373_v9 = vpop.f32.mrb[38].mxu0 }
 0xc12   : > { %v4654_v10 = vpop.f32.mrb[39].mxu0 }
 0xc18   : > { %v2035_v11 = vpop.xlane.xlu1 %2034 }
 0xc19   : > { %v2036_v12 = vsub.f32 %v2026_v51, %v2035_v11 }
 0xc1b   : > { %v2037_v13 = vmul.f32 1.442695, %v2036_v12 }
 0xc1d   : > { %5028 = vpow2.f32 %v2037_v13  ;;  %v4950_v13 = vld [vmem:[%s5568_s10 + $0x30] sm:$0xff]  }
 0xc1e   : > { %4666 = vmatpush3.bf16.msra.mxu0 %v4950_v13  ;;  %v4961_v13 = vld [vmem:[%s5647_s26 + $0x48] sm:$0xff]  }
 0xc1f   : > { %4667 = vmatprep.subr.bf16.mxu0 %v5264_v3 }
 0xc22   : > { %4668 = vmatpush3.bf16.msra.mxu0 %v4951_v14  ;;  %v4962_v14 = vld [vmem:[%s5647_s26 + $0x50] sm:$0xff]  }
 0xc23   : > { %4685 = vmatprep.subr.bf16.mxu0 %v5264_v3 }
 0xc27   : > { %v5029_v16 = vpop.eup %5028 }
 0xc28   : > { %v2039_v17 = vsel %vm2032_vm2, %v5029_v16, 0.0 }
 0xc29   : > { %2040 = vadd.xlane.f32.xlu0 %v2039_v17 }
 0xc8a   : > { %v2147_v22 = vpop.xlane.xlu0 %2146 }
 0xc8b   : > { %v2148_v23 = vsub.f32 %v2139_v56, %v2147_v22 }
 0xc8d   : > { %v2149_v24 = vmul.f32 1.442695, %v2148_v23 }
 0xc8f   : > { %5030 = vpow2.f32 %v2149_v24 }
 0xc96   : > { %v2263_v25 = vpop.xlane.xlu0 %2262 }
 0xc97   : > { %v2264_v26 = vsub.f32 %v2255_v60, %v2263_v25 }
 0xc99   : > { %v5031_v27 = vpop.eup %5030  ;;  %v2265_v28 = vmul.f32 1.442695, %v2264_v26 }
 0xc9a   : > { %v2151_v29 = vsel %vm2032_vm2, %v5031_v27, 0.0 }
 0xc9b   : > { %5032 = vpow2.f32 %v2265_v28  ;;  %2152 = vadd.xlane.f32.xlu1 %v2151_v29 }
 0xc9e   : > { %v2378_v33 = vpop.xlane.xlu1 %2377 }
 0xc9f   : > { %v2379_v34 = vsub.f32 %v2370_v1, %v2378_v33 }
 0xca1   : > { %v2380_v35 = vmul.f32 1.442695, %v2379_v34  ;;  %v4952_v34 = vld [vmem:[%s5642_s30 + $0x40] sm:$0xff]  }
 0xca5   : > { %v5033_v30 = vpop.eup %5032 }
 0xca6   : > { %v2267_v31 = vsel %vm2032_vm2, %v5033_v30, 0.0 }
 0xca7   : > { %2268 = vadd.xlane.f32.xlu0 %v2267_v31 }
 0xcac   : > { %2273 = vrot.lane.b32.xlu1 %v1985_v18, %s5268_s16 }
 0xcb6   : > { %v2041_v32 = vpop.xlane.xlu0 %2040 }
 0xcb7   : > { %5034 = vrcp.f32 %v2041_v32 }
 0xcb8   : > { %5036 = vpow2.f32 %v2380_v35  ;;  %v4953_v35 = vld [vmem:[%s5642_s30 + $0x48] sm:$0xff]  }
 0xcbd   : > { %2158 = vrot.lane.b32.xlu0 %v1985_v18, %s5269_s13 }
 0xcc1   : > { %v5035_v36 = vpop.eup %5034 }
 0xcc2   : > { %v2043_v37 = vmul.f32 %v5035_v36, %v5029_v16  ;;  %v5037_v39 = vpop.eup %5036  ;;  %v4954_v36 = vld [vmem:[%s5642_s30 + $0x50] sm:$0xff]  }
 0xcc3   : > { %v2382_v40 = vsel %vm2032_vm2, %v5037_v39, 0.0 }
 0xcc4   : > { %v2044_v38 = vpack.c.bf16 %v2043_v37, %v2043_v37  ;;  %v4955_v37 = vld [vmem:[%s5637_s28 + $0x40] sm:$0xff]  }
 0xcc6   : > { %4622 = vmatmul.mubr.msk.bf16.vlgmr.msra.gmra.mrb[36].mxu1 %vm2032_vm2, %v2044_v38  ;;  %v4956_v38 = vld [vmem:[%s5642_s30 + $0x58] sm:$0xff]  }
 0xcc7   : > { %4633 = vmatprep.mubr.msk.bf16.mxu1 %vm5267_vm7, %v5264_v3 }
 0xcd0   : > { %2383 = vadd.xlane.f32.xlu1 %v2382_v40  ;;  %v908_v40 = vld [vmem:[%s5611_s11] sm:$0x3f]  ;;  %s6278_s11 = sld [smem:[#allocation30_spill]] }
 0xce1   : > { %2388 = vrot.lane.b32.xlu1 %v1985_v18, %s5270_s4 }
 0xd28   : > { %v2153_v41 = vpop.xlane.xlu1 %2152 }
 0xd29   : > { %5038 = vrcp.f32 %v2153_v41  ;;  %v5941_v41 = vpack.c.bf16 %v908_v40, %v908_v40 }
 0xd2c   : > { %v2274_v47 = vpop.permute.xlu1 %2273 }
 0xd2d   : > { %v2279_v49 = vsel %vm2048_vm3, %v2274_v47, 0 }
 0xd33   : > { %v5039_v42 = vpop.eup %5038 }
 0xd34   : > { %v2269_v43 = vpop.xlane.xlu0 %2268  ;;  %v2155_v44 = vmul.f32 %v5039_v42, %v5031_v27  ;;  %v4958_v42 = vld [vmem:[%s5637_s28 + $0x50] sm:$0xff]  }
 0xd35   : > { %5040 = vrcp.f32 %v2269_v43  ;;  %v4959_v43 = vld [vmem:[%s5637_s28 + $0x58] sm:$0xff]  }
 0xd36   : > { %v2156_v48 = vpack.c.bf16 %v2155_v44, %v2155_v44 }
 0xd38   : > { %v2159_v45 = vpop.permute.xlu0 %2158 }
 0xd39   : > { %v2164_v46 = vsel %vm2048_vm3, %v2159_v45, 0 }
 0xd3a   : > { %4632 = vmatpush3.bf16.msra.mxu1 %v2164_v46 }
 0xd3b   : > { %4643 = vmatprep.subr.bf16.mxu1 %v5264_v3 }
 0xd3d   : > { %4634 = vmatmul.mubr.msk.bf16.vlgmr.msra.gmra.mrb[40].mxu1 %vm2032_vm2, %v2156_v48 }
 0xd3e   : > { %4644 = vmatpush3.bf16.msra.mxu1 %v2279_v49  ;;  %4645 = vmatprep.mubr.msk.bf16.mxu1 %vm5267_vm7, %v5264_v3 }
 0xd3f   : > { %v5041_v50 = vpop.eup %5040  ;;  %4655 = vmatprep.subr.bf16.mxu1 %v5264_v3 }
 0xd40   : > { %v2271_v51 = vmul.f32 %v5041_v50, %v5033_v30 }
 0xd42   : > { %v2272_v4 = vpack.c.bf16 %v2271_v51, %v2271_v51 }
 0xd45   : > { %4646 = vmatmul.mubr.msk.bf16.vlgmr.msra.gmra.mrb[44].mxu1 %vm2032_vm2, %v2272_v4 }
 0xd46   : > { %4657 = vmatprep.mubr.msk.bf16.mxu1 %vm5267_vm7, %v5264_v3 }
 0xd5d   : > { %v2384_v53 = vpop.xlane.xlu1 %2383 }
 0xd5e   : > { %5042 = vrcp.f32 %v2384_v53  ;;  %v4215_v53 = vld [vmem:[%s5617_s25 + $0x2] ss:$0 sm:$0xff] }
 0xd61   : > { %v2389_v54 = vpop.permute.xlu1 %2388 }
 0xd62   : > { %v2394_v55 = vsel %vm2048_vm3, %v2389_v54, 0 }
 0xd63   : > { %4656 = vmatpush3.bf16.msra.mxu1 %v2394_v55  ;;  %v4216_v55 = vld [vmem:[%s5622_s3 + $0x2] ss:$0 sm:$0xff] }
 0xd64   : > { %4673 = vmatprep.subr.bf16.mxu1 %v5264_v3 }
 0xd68   : > { %v5043_v56 = vpop.eup %5042 }
 0xd69   : > { %v2386_v57 = vmul.f32 %v5043_v56, %v5037_v39  ;;  %v4957_v39 = vld [vmem:[%s5637_s28 + $0x48] sm:$0xff]  }
 0xd6b   : > { %v2387_v58 = vpack.c.bf16 %v2386_v57, %v2386_v57 }
 0xd6d   : > { %4658 = vmatmul.mubr.msk.bf16.vlgmr.msra.gmra.mrb[48].mxu1 %vm2032_vm2, %v2387_v58 }
 0xd6e   : > { %4681 = vmatprep.mubr.msk.bf16.mxu1 %vm5267_vm7, %v5264_v3  ;;  %4674 = vmatpush3.bf16.msra.mxu1 %v4955_v37 }
 0xd6f   : > { %4675 = vmatprep.subr.bf16.mxu1 %v5264_v3 }
 0xd72   : > { %4676 = vmatpush3.bf16.msra.mxu1 %v4957_v39 }
 0xd73   : > { %4677 = vmatprep.subr.bf16.mxu1 %v5264_v3 }
 0xd76   : > { %4678 = vmatpush3.bf16.msra.mxu1 %v4958_v42 }
 0xd77   : > { %4679 = vmatprep.subr.bf16.mxu1 %v5264_v3 }
 0xd7a   : > { %4680 = vmatpush3.bf16.msra.mxu1 %v4959_v43 }
 0xd7b   : > { %4697 = vmatprep.subr.bf16.mxu1 %v5264_v3 }
 0xd99   : > { %v2086_v59 = vpop.f32.mrb[36].mxu1 }
 0xd9a   : > { %2092 = vst.msk [vmem:[#allocation3] sm:$0xff] %vm1178_vm10, %v2086_v59  ;;  %v4623_v19 = vpop.f32.mrb[37].mxu1 }
 0xd9b   : > { %v2089_v60 = vpop.f32.mrb[38].mxu1 }
 0xd9c   : > { %v4624_v61 = vpop.f32.mrb[39].mxu1 }
 0xe10   : > { %v2200_v0 = vpop.f32.mrb[40].mxu1 }
 0xe11   : > { %2207 = vrot.lane.b32.xlu0 %v2200_v0, %s5271_s2  ;;  %v4635_v1 = vpop.f32.mrb[41].mxu1 }
 0xe12   : > { %v2203_v2 = vpop.f32.mrb[42].mxu1 }
 0xe13   : > { %v4636_v7 = vpop.f32.mrb[43].mxu1 }
 0xe18   : > { %v2315_v9 = vpop.f32.mrb[44].mxu1 }
 0xe19   : > { %2322 = vrot.lane.b32.xlu1 %v2315_v9, %s5272_s20  ;;  %v4647_v10 = vpop.f32.mrb[45].mxu1 }
 0xe1a   : > { %v2318_v11 = vpop.f32.mrb[46].mxu1 }
 0xe1b   : > { %v4648_v12 = vpop.f32.mrb[47].mxu1 }
 0xe1c   : > { %v4960_v12 = vld [vmem:[%s5647_s26 + $0x40] sm:$0xff]  }
 0xe40   : > { %v2430_v15 = vpop.f32.mrb[48].mxu1 }
 0xe41   : > { %2437 = vrot.lane.b32.xlu0 %v2430_v15, %s5273_s5  ;;  %v4659_v16 = vpop.f32.mrb[49].mxu1  ;;  %v4963_v15 = vld [vmem:[%s5647_s26 + $0x58] sm:$0xff]   ;;  %s6280_s26 = scalar_lea.vmem %s6203_s14, %s5589_s24 }
 0xe42   : > { %v2433_v8 = vpop.f32.mrb[50].mxu1 }
 0xe43   : > { %v4660_v17 = vpop.f32.mrb[51].mxu1 }
 0xe83   : > { %v2208_v18 = vpop.permute.xlu0 %2207 }
 0xe84   : > { %2210 = vst.msk [vmem:[#allocation3] sm:$0xff] %vm1403_vm13, %v2208_v18 }
 0xe8b   : > { %v2323_v20 = vpop.permute.xlu1 %2322 }
 0xe8c   : > { %2325 = vst.msk [vmem:[#allocation3] sm:$0xff] %vm1519_vm14, %v2323_v20 }
 0xeb3   : > { %v2438_v21 = vpop.permute.xlu0 %2437 }
 0xeb4   : > { %2440 = vst.msk [vmem:[#allocation3] sm:$0xff] %vm1635_vm15, %v2438_v21 }
 0xebb   : > { %v2441_v22 = vld [vmem:[#allocation3] sm:$0xff] }
 0xebc   : > { %v2442_v23 = vpack.c.bf16 %v2441_v22, %v2441_v22 }
 0xebe   : > { %4670 = vmatmul.mubr.msk.bf16.vlgmr.msra.gmra.mrb[40].mxu0 %vm911_vm6, %v2442_v23 }
 0xebf   : > { %4693 = vmatprep.mubr.msk.bf16.mxu0 %vm5267_vm7, %v5264_v3  ;;  %4686 = vmatpush3.bf16.msra.mxu0 %v4952_v34 }
 0xec0   : > { %4687 = vmatprep.subr.bf16.mxu0 %v5264_v3 }
 0xec3   : > { %4688 = vmatpush3.bf16.msra.mxu0 %v4953_v35 }
 0xec4   : > { %4689 = vmatprep.subr.bf16.mxu0 %v5264_v3 }
 0xec7   : > { %4690 = vmatpush3.bf16.msra.mxu0 %v4954_v36 }
 0xec8   : > { %4691 = vmatprep.subr.bf16.mxu0 %v5264_v3 }
 0xecb   : > { %4692 = vmatpush3.bf16.msra.mxu0 %v4956_v38 }
 0xecc   : > { %4709 = vmatprep.subr.bf16.mxu0 %v5264_v3 }
 0xece   : > { %4694 = vmatmul.mubr.msk.bf16.vlgmr.msra.gmra.mrb[44].mxu0 %vm911_vm6, %v5941_v41 }
 0xecf   : > { %4711 = vmatprep.mubr.msk.bf16.mxu0 %vm5267_vm7, %v5264_v3 }
 0xf91   : > { %v2504_v24 = vpop.f32.mrb[40].mxu0 }
 0xf92   : > { %v5924_v25 = vadd.f32 %v2504_v24, %v5801_v52  ;;  %v4671_v26 = vpop.f32.mrb[41].mxu0 }
 0xf93   : > { %v2507_v27 = vpop.f32.mrb[42].mxu0 }
 0xf94   : > { %v4672_v28 = vpop.f32.mrb[43].mxu0  ;;  %v2515_v29 = vsel %vm911_vm6, %v5924_v25, 0.0 }
 0xf95   : > { %2516 = vadd.xlane.f32.xlu1 %v2515_v29 }
 0xfa1   : > { %v2716_v59 = vpop.f32.mrb[44].mxu0 }
 0xfa2   : > { %v2722_v19 = vpack.c.bf16 %v2716_v59, %v2716_v59  ;;  %v4695_v60 = vpop.f32.mrb[45].mxu0 }
 0xfa3   : > { %v2719_v61 = vpop.f32.mrb[46].mxu0 }
 0xfa4   : > { %v4696_v62 = vpop.f32.mrb[47].mxu0  ;;  %v2792_v63 = vsel %vm1178_vm10, %v2722_v19, 0 }
 0xfa5   : > { %4710 = vmatpush3.bf16.xpose.msra.mxu0 %v2792_v63 }
 0xfa6   : > { %4721 = vmatprep.subr.bf16.mxu0 %v5264_v3 }
0x1022   : > { %v2517_v30 = vpop.xlane.xlu1 %2516 }
0x1023   : > { %v2518_v31 = vmul.f32 0.015625, %v2517_v30 }
0x1025   : > { %v2519_v32 = vsub.f32 %v5924_v25, %v2518_v31 }
0x1027   : > { %v2520_v33 = vmul.f32 %v2519_v32, %v2519_v32 }
0x1029   : > { %v2521_v52 = vsel %vm911_vm6, %v2520_v33, 0.0 }
0x102a   : > { %2522 = vadd.xlane.f32.xlu0 %v2521_v52 }
0x1040   : > { %2899 = vrot.lane.b32.xlu0 %v2722_v19, %s5269_s13 }
0x10b7   : > { %v2523_v44 = vpop.xlane.xlu0 %2522 }
0x10b8   : > { %v2524_v45 = vmul.f32 0.015873017, %v2523_v44 }
0x10ba   : > { %5044 = vrsqrt.f32 %v2524_v45  ;;  %vm2527_vm4 = vcmp.eq.f32.partialorder %v2524_v45, inf  ;;  %v2530_v48 = vand.u32 2147483648, %v2524_v45  ;;  %vm2529_vm5 = vcmp.eq.f32.partialorder %v2524_v45, 0.0 }
0x10bb   : > { %v2900_v0 = vpop.permute.xlu0 %2899 }
0x10bc   : > { %v2905_v10 = vsel %vm1178_vm10, %v2900_v0, 0 }
0x10c4   : > { %v5045_v46 = vpop.eup %5044 }
0x10c5   : > { %v2526_v47 = vmul.f32 %v5045_v46, %v2524_v45 }
0x10c7   : > { %v2528_v49 = vsel %vm2527_vm4, %v2524_v45, %v2526_v47 }
0x10c8   : > { %v2531_v50 = vsel %vm2529_vm5, %v2530_v48, %v2528_v49 }
0x10c9   : > { %v2532_v51 = vadd.f32 1e-06, %v2531_v50 }
0x10cb   : > { %5046 = vrcp.f32 %v2532_v51 }
0x10d5   : > { %v5047_v4 = vpop.eup %5046 }
0x10d6   : > { %v2534_v54 = vmul.f32 %v5047_v4, %v2519_v32 }
0x10d8   : > { %v2541_v56 = vmul.f32 %v4215_v53, %v2534_v54 }
0x10da   : > { %v2548_v57 = vadd.f32 %v4216_v55, %v2541_v56 }
0x10dc   : > { %v2585_v58 = vpack.c.bf16 %v2548_v57, %v2548_v57 }
0x10de   : > { %4682 = vmatmul.mubr.msk.bf16.vlgmr.msra.gmra.mrb[52].mxu1 %vm911_vm6, %v2585_v58 }
0x10df   : > { %4705 = vmatprep.mubr.msk.bf16.mxu1 %vm5267_vm7, %v5264_v3  ;;  %4698 = vmatpush3.bf16.msra.mxu1 %v4960_v12 }
0x10e0   : > { %4699 = vmatprep.subr.bf16.mxu1 %v5264_v3 }
0x10e3   : > { %4700 = vmatpush3.bf16.msra.mxu1 %v4961_v13 }
0x10e4   : > { %4701 = vmatprep.subr.bf16.mxu1 %v5264_v3 }
0x10e7   : > { %4702 = vmatpush3.bf16.msra.mxu1 %v4962_v14 }
0x10e8   : > { %4703 = vmatprep.subr.bf16.mxu1 %v5264_v3 }
0x10eb   : > { %4704 = vmatpush3.bf16.msra.mxu1 %v4963_v15 }
0x10ec   : > { %4715 = vmatprep.subr.bf16.mxu1 %v5264_v3 }
0x10ee   : > { %4706 = vmatmul.mubr.msk.bf16.vlgmr.msra.gmra.mrb[56].mxu1 %vm911_vm6, %v5941_v41 }
0x10ef   : > { %4717 = vmatprep.mubr.msk.bf16.mxu1 %vm5267_vm7, %v5264_v3 }
0x11b1   : > { %v2648_v1 = vpop.f32.mrb[52].mxu1 }
0x11b2   : > { %v2654_v2 = vpack.c.bf16 %v2648_v1, %v2648_v1  ;;  %v4683_v7 = vpop.f32.mrb[53].mxu1 }
0x11b3   : > { %v2651_v9 = vpop.f32.mrb[54].mxu1 }
0x11b4   : > { %3013 = vrot.lane.b32.xlu0 %v2654_v2, %s5268_s16  ;;  %2896 = vrot.lane.b32.xlu1 %v2654_v2, %s5269_s13  ;;  %v4684_v11 = vpop.f32.mrb[55].mxu1 }
0x11b5   : > { %4712 = vmatmul.mubr.msk.bf16.vlgmr.msra.gmra.mrb[48].mxu0 %vm1178_vm10, %v2654_v2 }
0x11b6   : > { %4722 = vmatpush3.bf16.xpose.msra.mxu0 %v2905_v10  ;;  %4723 = vmatprep.mubr.msk.bf16.mxu0 %vm5267_vm7, %v5264_v3 }
0x11b7   : > { %4733 = vmatprep.subr.bf16.mxu0 %v5264_v3 }
0x11b8   : > { %3128 = vrot.lane.b32.xlu0 %v2654_v2, %s5270_s4  ;;  %3015 = vrot.lane.b32.xlu1 %v2722_v19, %s5268_s16 }
0x11bc   : > { %3130 = vrot.lane.b32.xlu1 %v2722_v19, %s5270_s4 }
0x11c1   : > { %v2781_v47 = vpop.f32.mrb[56].mxu1 }
0x11c2   : > { %v4707_v49 = vpop.f32.mrb[57].mxu1  ;;  %v2787_v50 = vpack.c.bf16 %v2781_v47, %v2781_v47 }
0x11c3   : > { %v2784_v51 = vpop.f32.mrb[58].mxu1 }
0x11c4   : > { %v4708_v4 = vpop.f32.mrb[59].mxu1  ;;  %v2852_v53 = vsel %vm2850_vm9, %v2787_v50, 0 }
0x11c5   : > { %4716 = vmatpush3.bf16.msra.mxu1 %v2852_v53 }
0x11c6   : > { %4727 = vmatprep.subr.bf16.mxu1 %v5264_v3 }
0x1226   : > { %v2897_v16 = vpop.permute.xlu1 %2896  ;;  %v3014_v20 = vpop.permute.xlu0 %3013 }
0x1227   : > { %4724 = vmatmul.mubr.msk.bf16.vlgmr.msra.gmra.mrb[52].mxu0 %vm1178_vm10, %v2897_v16 }
0x1228   : > { %4735 = vmatprep.mubr.msk.bf16.mxu0 %vm5267_vm7, %v5264_v3 }
0x122a   : > { %v3016_v8 = vpop.permute.xlu1 %3015  ;;  %v3129_v22 = vpop.permute.xlu0 %3128 }
0x122b   : > { %v3021_v17 = vsel %vm1178_vm10, %v3016_v8, 0 }
0x122c   : > { %4734 = vmatpush3.bf16.xpose.msra.mxu0 %v3021_v17 }
0x122d   : > { %4745 = vmatprep.subr.bf16.mxu0 %v5264_v3 }
0x122e   : > { %v3131_v18 = vpop.permute.xlu1 %3130 }
0x122f   : > { %v3136_v21 = vsel %vm1178_vm10, %v3131_v18, 0 }
0x1233   : > { %4736 = vmatmul.mubr.msk.bf16.vlgmr.msra.gmra.mrb[56].mxu0 %vm1178_vm10, %v3014_v20 }
0x1234   : > { %4746 = vmatpush3.bf16.xpose.msra.mxu0 %v3136_v21  ;;  %4747 = vmatprep.mubr.msk.bf16.mxu0 %vm5267_vm7, %v5264_v3 }
0x1235   : > { %4757 = vmatprep.subr.bf16.mxu0 %v5264_v3 }
0x123b   : > { %4748 = vmatmul.mubr.msk.bf16.vlgmr.msra.gmra.mrb[60].mxu0 %vm1178_vm10, %v3129_v22 }
0x123c   : > { %4765 = vmatprep.mubr.msk.bf16.mxu0 %vm5267_vm7, %v5264_v3 }
0x1288   : > { %v2828_v23 = vpop.f32.mrb[48].mxu0 }
0x1289   : > { %v4713_v24 = vpop.f32.mrb[49].mxu0  ;;  %v2835_v26 = vsel %vm2834_vm8, %v2828_v23, -inf }
0x128a   : > { %2836 = vmax.xlane.f32.xlu1 %v2835_v26  ;;  %v2831_v27 = vpop.f32.mrb[50].mxu0 }
0x128b   : > { %v4714_v28 = vpop.f32.mrb[51].mxu0 }
0x12fa   : > { %v2941_v29 = vpop.f32.mrb[52].mxu0 }
0x12fb   : > { %v4725_v30 = vpop.f32.mrb[53].mxu0  ;;  %v2947_v31 = vsel %vm2834_vm8, %v2941_v29, -inf }
0x12fc   : > { %2948 = vmax.xlane.f32.xlu0 %v2947_v31  ;;  %v2944_v32 = vpop.f32.mrb[54].mxu0 }
0x12fd   : > { %v4726_v33 = vpop.f32.mrb[55].mxu0 }
0x1306   : > { %v3057_v52 = vpop.f32.mrb[56].mxu0 }
0x1307   : > { %v4737_v34 = vpop.f32.mrb[57].mxu0  ;;  %v3063_v35 = vsel %vm2834_vm8, %v3057_v52, -inf }
0x1308   : > { %3064 = vmax.xlane.f32.xlu0 %v3063_v35  ;;  %v3060_v36 = vpop.f32.mrb[58].mxu0  ;;  %v4964_v35 = vld [vmem:[%s5568_s10 + $0x40] sm:$0xff]  }
0x1309   : > { %v4738_v37 = vpop.f32.mrb[59].mxu0  ;;  %4758 = vmatpush3.bf16.msra.mxu0 %v4964_v35  ;;  %v4965_v36 = vld [vmem:[%s5568_s10 + $0x48] sm:$0xff]   ;;  %v4980_v35 = vld [vmem:[%s5652_s27 + $0x40] sm:$0xff]  }
0x130a   : > { %4759 = vmatprep.subr.bf16.mxu0 %v5264_v3 }
0x130d   : > { %4760 = vmatpush3.bf16.msra.mxu0 %v4965_v36  ;;  %v4981_v36 = vld [vmem:[%s5652_s27] sm:$0xff]  }
0x130e   : > { %v3172_v38 = vpop.f32.mrb[60].mxu0  ;;  %4761 = vmatprep.subr.bf16.mxu0 %v5264_v3 }
0x130f   : > { %v4749_v39 = vpop.f32.mrb[61].mxu0  ;;  %v3178_v40 = vsel %vm2834_vm8, %v3172_v38, -inf }
0x1310   : > { %3179 = vmax.xlane.f32.xlu1 %v3178_v40  ;;  %v3175_v41 = vpop.f32.mrb[62].mxu0 }
0x1311   : > { %v4750_v42 = vpop.f32.mrb[63].mxu0 }
0x1317   : > { %v2837_v43 = vpop.xlane.xlu1 %2836 }
0x1318   : > { %v2838_v44 = vsub.f32 %v2828_v23, %v2837_v43 }
0x131a   : > { %v2839_v45 = vmul.f32 1.442695, %v2838_v44 }
0x131c   : > { %5048 = vpow2.f32 %v2839_v45  ;;  %v4966_v45 = vld [vmem:[%s5568_s10 + $0x50] sm:$0xff]  }
0x131d   : > { %4762 = vmatpush3.bf16.msra.mxu0 %v4966_v45 }
0x131e   : > { %4763 = vmatprep.subr.bf16.mxu0 %v5264_v3 }
0x1326   : > { %v5049_v46 = vpop.eup %5048 }
0x1327   : > { %v2841_v48 = vsel %vm2834_vm8, %v5049_v46, 0.0 }
0x1328   : > { %2842 = vadd.xlane.f32.xlu0 %v2841_v48 }
0x1389   : > { %v2949_v54 = vpop.xlane.xlu0 %2948 }
0x138a   : > { %v2950_v55 = vsub.f32 %v2941_v29, %v2949_v54 }
0x138c   : > { %v2951_v56 = vmul.f32 1.442695, %v2950_v55 }
0x138e   : > { %5050 = vpow2.f32 %v2951_v56 }
0x1395   : > { %v3065_v57 = vpop.xlane.xlu0 %3064 }
0x1396   : > { %v3066_v58 = vsub.f32 %v3057_v52, %v3065_v57 }
0x1398   : > { %v5051_v59 = vpop.eup %5050  ;;  %v3067_v19 = vmul.f32 1.442695, %v3066_v58 }
0x1399   : > { %v2953_v60 = vsel %vm2834_vm8, %v5051_v59, 0.0 }
0x139a   : > { %5052 = vpow2.f32 %v3067_v19  ;;  %2954 = vadd.xlane.f32.xlu1 %v2953_v60 }
0x139d   : > { %v3180_v0 = vpop.xlane.xlu1 %3179 }
0x139e   : > { %v3181_v1 = vsub.f32 %v3172_v38, %v3180_v0 }
0x13a0   : > { %v3182_v2 = vmul.f32 1.442695, %v3181_v1 }
0x13a4   : > { %v5053_v61 = vpop.eup %5052 }
0x13a5   : > { %v3069_v62 = vsel %vm2834_vm8, %v5053_v61, 0.0 }
0x13a6   : > { %3070 = vadd.xlane.f32.xlu0 %v3069_v62 }
0x13ab   : > { %3075 = vrot.lane.b32.xlu1 %v2787_v50, %s5268_s16 }
0x13b5   : > { %v2843_v63 = vpop.xlane.xlu0 %2842 }
0x13b6   : > { %5054 = vrcp.f32 %v2843_v63 }
0x13b7   : > { %5056 = vpow2.f32 %v3182_v2  ;;  %v5274_v2 = vmov 0  }
0x13bc   : > { %2960 = vrot.lane.b32.xlu0 %v2787_v50, %s5269_s13 }
0x13c0   : > { %v5055_v7 = vpop.eup %5054 }
0x13c1   : > { %v2845_v9 = vmul.f32 %v5055_v7, %v5049_v46  ;;  %v5057_v11 = vpop.eup %5056  ;;  %v4967_v46 = vld [vmem:[%s5568_s10 + $0x58] sm:$0xff]   ;;  %v4969_v7 = vld [vmem:[%s6278_s11 + $0x8] sm:$0xff]  }
0x13c2   : > { %v3184_v12 = vsel %vm2834_vm8, %v5057_v11, 0.0  ;;  %4764 = vmatpush3.bf16.msra.mxu0 %v4967_v46  ;;  %v4987_v46 = vld [vmem:[%s5652_s27 + $0x18] sm:$0xff]  }
0x13c3   : > { %v2846_v10 = vpack.c.bf16 %v2845_v9, %v2845_v9  ;;  %v4970_v9 = vld [vmem:[%s6278_s11 + $0x10] sm:$0xff]   ;;  %4440 = vmatprep.subr.bf16.mxu0 %v4980_v35 }
0x13c5   : > { %4718 = vmatmul.mubr.msk.bf16.vlgmr.msra.gmra.mrb[60].mxu1 %vm2834_vm8, %v2846_v10  ;;  %v4971_v10 = vld [vmem:[%s6278_s11 + $0x18] sm:$0xff]  }
0x13c6   : > { %4729 = vmatprep.mubr.msk.bf16.mxu1 %vm5267_vm7, %v5264_v3 }
0x13cf   : > { %3185 = vadd.xlane.f32.xlu1 %v3184_v12  ;;  %v4973_v12 = vld [vmem:[%s6278_s11 + $0x28] sm:$0xff]  }
0x13e0   : > { %3190 = vrot.lane.b32.xlu1 %v2787_v50, %s5270_s4 }
0x1427   : > { %v2955_v13 = vpop.xlane.xlu1 %2954 }
0x1428   : > { %5058 = vrcp.f32 %v2955_v13  ;;  %v4974_v13 = vld [vmem:[%s6278_s11 + $0x30] sm:$0xff]  }
0x142b   : > { %v3076_v18 = vpop.permute.xlu1 %3075 }
0x142c   : > { %v3081_v21 = vsel %vm2850_vm9, %v3076_v18, 0 }
0x1432   : > { %v5059_v14 = vpop.eup %5058 }
0x1433   : > { %v3071_v15 = vpop.xlane.xlu0 %3070  ;;  %v2957_v16 = vmul.f32 %v5059_v14, %v5051_v59  ;;  %v4975_v14 = vld [vmem:[%s6278_s11 + $0x38] sm:$0xff]  }
0x1434   : > { %5060 = vrcp.f32 %v3071_v15  ;;  %v4976_v15 = vld [vmem:[%s6278_s11 + $0x40] sm:$0xff]  }
0x1435   : > { %v2958_v20 = vpack.c.bf16 %v2957_v16, %v2957_v16  ;;  %v4977_v16 = vld [vmem:[%s6278_s11 + $0x48] sm:$0xff]  }
0x1437   : > { %v2961_v8 = vpop.permute.xlu0 %2960 }
0x1438   : > { %v2966_v17 = vsel %vm2850_vm9, %v2961_v8, 0 }
0x1439   : > { %4728 = vmatpush3.bf16.msra.mxu1 %v2966_v17 }
0x143a   : > { %4739 = vmatprep.subr.bf16.mxu1 %v5264_v3 }
0x143c   : > { %4730 = vmatmul.mubr.msk.bf16.vlgmr.msra.gmra.mrb[64].mxu1 %vm2834_vm8, %v2958_v20 }
0x143d   : > { %4740 = vmatpush3.bf16.msra.mxu1 %v3081_v21  ;;  %4741 = vmatprep.mubr.msk.bf16.mxu1 %vm5267_vm7, %v5264_v3 }
0x143e   : > { %v5061_v22 = vpop.eup %5060  ;;  %4751 = vmatprep.subr.bf16.mxu1 %v5264_v3 }
0x143f   : > { %v3073_v23 = vmul.f32 %v5061_v22, %v5053_v61 }
0x1441   : > { %v3074_v24 = vpack.c.bf16 %v3073_v23, %v3073_v23 }
0x1444   : > { %4742 = vmatmul.mubr.msk.bf16.vlgmr.msra.gmra.mrb[68].mxu1 %vm2834_vm8, %v3074_v24 }
0x1445   : > { %4753 = vmatprep.mubr.msk.bf16.mxu1 %vm5267_vm7, %v5264_v3 }
0x145c   : > { %v3186_v26 = vpop.xlane.xlu1 %3185 }
0x145d   : > { %5062 = vrcp.f32 %v3186_v26  ;;  %v4978_v26 = vld [vmem:[%s6278_s11 + $0x50] sm:$0xff]  }
0x1460   : > { %v3191_v27 = vpop.permute.xlu1 %3190 }
0x1461   : > { %v3196_v28 = vsel %vm2850_vm9, %v3191_v27, 0 }
0x1462   : > { %4752 = vmatpush3.bf16.msra.mxu1 %v3196_v28  ;;  %v4279_v28 = vld [vmem:[%s5617_s25 + $0x3] ss:$0 sm:$0xff]  ;;  %s5275_s25 = smov 64  }
0x1463   : > { %3473 = vmatprep.subr.bf16.mxu1 %v5274_v2 }
0x1467   : > { %v5063_v29 = vpop.eup %5062 }
0x1468   : > { %v3188_v30 = vmul.f32 %v5063_v29, %v5057_v11  ;;  %v4972_v11 = vld [vmem:[%s6278_s11 + $0x20] sm:$0xff]   ;;  %v4979_v29 = vld [vmem:[%s6278_s11 + $0x58] sm:$0xff]  }
0x146a   : > { %v3189_v31 = vpack.c.bf16 %v3188_v30, %v3188_v30 }
0x146c   : > { %4754 = vmatmul.mubr.msk.bf16.vlgmr.msra.gmra.mrb[72].mxu1 %vm2834_vm8, %v3189_v31  ;;  %v4280_v31 = vld [vmem:[%s5622_s3 + $0x3] ss:$0 sm:$0xff]  ;;  %s6279_s3 = scalar_lea.vmem %s6201_s12, %s5589_s24 }
0x1498   : > { %v2888_v32 = vpop.f32.mrb[60].mxu1 }
0x1499   : > { %2894 = vst.msk [vmem:[#allocation3] sm:$0xff] %vm1178_vm10, %v2888_v32  ;;  %v4719_v33 = vpop.f32.mrb[61].mxu1 }
0x149a   : > { %v2891_v52 = vpop.f32.mrb[62].mxu1 }
0x149b   : > { %v4720_v34 = vpop.f32.mrb[63].mxu1 }
0x150f   : > { %v3002_v37 = vpop.f32.mrb[64].mxu1 }
0x1510   : > { %3009 = vrot.lane.b32.xlu0 %v3002_v37, %s5271_s2  ;;  %v4731_v38 = vpop.f32.mrb[65].mxu1  ;;  %v4982_v37 = vld [vmem:[%s5652_s27 + $0x48] sm:$0xff]  }
0x1511   : > { %v3005_v39 = vpop.f32.mrb[66].mxu1 }
0x1512   : > { %v4732_v40 = vpop.f32.mrb[67].mxu1 }
0x1513   : > { %v4983_v40 = vld [vmem:[%s5652_s27 + $0x8] sm:$0xff]  }
0x1517   : > { %v3117_v41 = vpop.f32.mrb[68].mxu1 }
0x1518   : > { %3124 = vrot.lane.b32.xlu1 %v3117_v41, %s5272_s20  ;;  %v4743_v42 = vpop.f32.mrb[69].mxu1  ;;  %v4984_v41 = vld [vmem:[%s5652_s27 + $0x50] sm:$0xff]  }
0x1519   : > { %v3120_v43 = vpop.f32.mrb[70].mxu1  ;;  %v4985_v42 = vld [vmem:[%s5652_s27 + $0x10] sm:$0xff]  }
0x151a   : > { %v4744_v44 = vpop.f32.mrb[71].mxu1  ;;  %v4986_v43 = vld [vmem:[%s5652_s27 + $0x58] sm:$0xff]  }
0x153f   : > { %v3232_v47 = vpop.f32.mrb[72].mxu1 }
0x1540   : > { %3239 = vrot.lane.b32.xlu0 %v3232_v47, %s5273_s5  ;;  %v4755_v48 = vpop.f32.mrb[73].mxu1  ;;  %v4988_v47 = vld [vmem:[%s5652_s27 + $0x60] sm:$0xff]  }
0x1541   : > { %v3235_v49 = vpop.f32.mrb[74].mxu1  ;;  %v4989_v48 = vld [vmem:[%s5652_s27 + $0x20] sm:$0xff]  }
0x1542   : > { %v4756_v50 = vpop.f32.mrb[75].mxu1  ;;  %v4990_v49 = vld [vmem:[%s5652_s27 + $0x68] sm:$0xff]  }
0x1582   : > { %v3010_v51 = vpop.permute.xlu0 %3009 }
0x1583   : > { %3012 = vst.msk [vmem:[#allocation3] sm:$0xff] %vm1403_vm13, %v3010_v51 }
0x158a   : > { %v3125_v4 = vpop.permute.xlu1 %3124 }
0x158b   : > { %3127 = vst.msk [vmem:[#allocation3] sm:$0xff] %vm1519_vm14, %v3125_v4 }
0x15b2   : > { %v3240_v53 = vpop.permute.xlu0 %3239 }
0x15b3   : > { %3242 = vst.msk [vmem:[#allocation3] sm:$0xff] %vm1635_vm15, %v3240_v53  ;;  %v4991_v53 = vld [vmem:[%s5652_s27 + $0x28] sm:$0xff]  }
0x15ba   : > { %v3243_v54 = vld [vmem:[#allocation3] sm:$0xff] }
0x15bb   : > { %v3244_v55 = vpack.c.bf16 %v3243_v54, %v3243_v54  ;;  %v4992_v54 = vld [vmem:[%s5652_s27 + $0x70] sm:$0xff]  }
0x15bd   : > { %4766 = vmatmul.mubr.msk.bf16.vlgmr.msra.gmra.mrb[64].mxu0 %vm911_vm6, %v3244_v55  ;;  %v4993_v55 = vld [vmem:[%s5652_s27 + $0x30] sm:$0xff]  }
0x15be   : > { %4441 = vmatpush3.bf16.msra.mxu0 %v4981_v36 }
0x15bf   : > { %4442 = vmatprep.subr.bf16.mxu0 %v4982_v37 }
0x15c2   : > { %4443 = vmatpush3.bf16.msra.mxu0 %v4983_v40 }
0x15c3   : > { %4444 = vmatprep.subr.bf16.mxu0 %v4984_v41 }
0x15c6   : > { %4445 = vmatpush3.bf16.msra.mxu0 %v4985_v42 }
0x15c7   : > { %4446 = vmatprep.subr.bf16.mxu0 %v4986_v43 }
0x15ca   : > { %4447 = vmatpush3.bf16.msra.mxu0 %v4987_v46 }
0x15cb   : > { %4448 = vmatprep.subr.bf16.mxu0 %v4988_v47  ;;  %v4322_v47 = vld [vmem:[%s6282_s15] ss:$0 sm:$0xff] (!%p4320_p1) }
0x15ce   : > { %4449 = vmatpush3.bf16.msra.mxu0 %v4989_v48 }
0x15cf   : > { %4450 = vmatprep.subr.bf16.mxu0 %v4990_v49 }
0x15d2   : > { %4451 = vmatpush3.bf16.msra.mxu0 %v4991_v53 }
0x15d3   : > { %4452 = vmatprep.subr.bf16.mxu0 %v4992_v54 }
0x15d6   : > { %4453 = vmatpush3.bf16.msra.mxu0 %v4993_v55 }
0x1690   : > { %v3306_v56 = vpop.f32.mrb[64].mxu0 }
0x1691   : > { %v6040_v57 = vadd.f32 %v3306_v56, %v5924_v25  ;;  %v4767_v58 = vpop.f32.mrb[65].mxu0  ;;  %v4968_v25 = vld [vmem:[%s6278_s11] sm:$0xff]   ;;  %v4994_v56 = vld [vmem:[%s5652_s27 + $0x78] sm:$0xff]  }
0x1692   : > { %v3309_v59 = vpop.f32.mrb[66].mxu0  ;;  %3474 = vmatpush1.bf16.msra.mxu1 %v4968_v25  ;;  %v4995_v58 = vld [vmem:[%s5652_s27 + $0x38] sm:$0xff]   ;;  %4454 = vmatprep.subr.bf16.mxu0 %v4994_v56 }
0x1693   : > { %v4768_v19 = vpop.f32.mrb[67].mxu0  ;;  %v3317_v60 = vsel %vm911_vm6, %v6040_v57, 0.0  ;;  %3475 = vmatprep.subr.bf16.mxu1 %v5274_v2  ;;  %4455 = vmatpush3.bf16.msra.mxu0 %v4995_v58  ;;  %v4281_v59 = vld [vmem:[%s6279_s3] ss:$0 sm:$0xff] }
0x1694   : > { %3318 = vadd.xlane.f32.xlu1 %v3317_v60  ;;  %4769 = vmatprep.subr.bf16.mxu0 %v5264_v3 }
0x1696   : > { %3476 = vmatpush1.bf16.msra.mxu1 %v4969_v7  ;;  %v4996_v7 = vld [vmem:[%s5652_s27 + $0x80] sm:$0xff]  }
0x1697   : > { %3477 = vmatprep.subr.bf16.mxu1 %v5274_v2 }
0x169a   : > { %3478 = vmatpush1.bf16.msra.mxu1 %v4970_v9 }
0x169b   : > { %3479 = vmatprep.subr.bf16.mxu1 %v5274_v2 }
0x169e   : > { %3480 = vmatpush1.bf16.msra.mxu1 %v4971_v10  ;;  %v4997_v10 = vld [vmem:[%s5652_s27 + $0x88] sm:$0xff]  }
0x169f   : > { %3481 = vmatprep.subr.bf16.mxu1 %v5274_v2 }
0x16a2   : > { %3482 = vmatpush1.bf16.msra.mxu1 %v4972_v11  ;;  %v4998_v11 = vld [vmem:[%s5652_s27 + $0x90] sm:$0xff]  }
0x16a3   : > { %3483 = vmatprep.subr.bf16.mxu1 %v5274_v2 }
0x16a6   : > { %3484 = vmatpush1.bf16.msra.mxu1 %v4973_v12  ;;  %v5000_v12 = vld [vmem:[%s5652_s27 + $0xa0] sm:$0xff]  }
0x16a7   : > { %3485 = vmatprep.subr.bf16.mxu1 %v5274_v2 }
0x16aa   : > { %3486 = vmatpush1.bf16.msra.mxu1 %v4974_v13  ;;  %v5001_v13 = vld [vmem:[%s5652_s27 + $0xa8] sm:$0xff]  }
0x16ab   : > { %3487 = vmatprep.subr.bf16.mxu1 %v5274_v2 }
0x16ae   : > { %3488 = vmatpush1.bf16.msra.mxu1 %v4975_v14  ;;  %v5002_v14 = vld [vmem:[%s5652_s27 + $0xb0] sm:$0xff]  }
0x16af   : > { %3489 = vmatprep.subr.bf16.mxu1 %v5274_v2 }
0x16b2   : > { %3490 = vmatpush1.bf16.msra.mxu1 %v4976_v15 }
0x16b3   : > { %3491 = vmatprep.subr.bf16.mxu1 %v5274_v2 }
0x16b6   : > { %3492 = vmatpush1.bf16.msra.mxu1 %v4977_v16  ;;  %v5003_v16 = vld [vmem:[%s5652_s27 + $0xb8] sm:$0xff]  }
0x16b7   : > { %3493 = vmatprep.subr.bf16.mxu1 %v5274_v2 }
0x16ba   : > { %3494 = vmatpush1.bf16.msra.mxu1 %v4978_v26 }
0x16bb   : > { %3495 = vmatprep.subr.bf16.mxu1 %v5274_v2 }
0x16be   : > { %3496 = vmatpush1.bf16.msra.mxu1 %v4979_v29 }
0x1721   : > { %v3319_v61 = vpop.xlane.xlu1 %3318 }
0x1722   : > { %v3320_v62 = vmul.f32 0.015625, %v3319_v61 }
0x1724   : > { %v3321_v63 = vsub.f32 %v6040_v57, %v3320_v62 }
0x1726   : > { %v3322_v0 = vmul.f32 %v3321_v63, %v3321_v63 }
0x1728   : > { %v3323_v1 = vsel %vm911_vm6, %v3322_v0, 0.0 }
0x1729   : > { %3324 = vadd.xlane.f32.xlu0 %v3323_v1 }
0x17b6   : > { %v3325_v8 = vpop.xlane.xlu0 %3324 }
0x17b7   : > { %v3326_v17 = vmul.f32 0.015873017, %v3325_v8 }
0x17b9   : > { %5064 = vrsqrt.f32 %v3326_v17  ;;  %vm3329_vm10 = vcmp.eq.f32.partialorder %v3326_v17, inf  ;;  %v3332_v21 = vand.u32 2147483648, %v3326_v17  ;;  %vm3331_vm11 = vcmp.eq.f32.partialorder %v3326_v17, 0.0 }
0x17c3   : > { %v5065_v18 = vpop.eup %5064 }
0x17c4   : > { %v3328_v20 = vmul.f32 %v5065_v18, %v3326_v17 }
0x17c6   : > { %v3330_v22 = vsel %vm3329_vm10, %v3326_v17, %v3328_v20 }
0x17c7   : > { %v3333_v23 = vsel %vm3331_vm11, %v3332_v21, %v3330_v22 }
0x17c8   : > { %v3334_v24 = vadd.f32 1e-06, %v3333_v23 }
0x17ca   : > { %5066 = vrcp.f32 %v3334_v24  ;;  %v4295_v24 = vld [vmem:[%s6280_s26] ss:$0 sm:$0xff] }
0x17d4   : > { %v5067_v27 = vpop.eup %5066 }
0x17d5   : > { %v3336_v30 = vmul.f32 %v5067_v27, %v3321_v63 }
0x17d7   : > { %v3343_v32 = vmul.f32 %v4279_v28, %v3336_v30 }
0x17d9   : > { %v3350_v33 = vadd.f32 %v4280_v31, %v3343_v32 }
0x17db   : > { %v3377_v52 = vrot.slane %v3350_v33, 7  ;;  %v3385_v34 = vrot.slane %v3350_v33, 6  ;;  %3376 = vst.msk [vmem:[#allocation4] sm:$0xff] %vm911_vm6, %v3350_v33 }
0x17dd   : > { %v3378_v38 = vmul.f32 %v5595_v5, %v3377_v52  ;;  %v3386_v39 = vmul.f32 %v5598_v6, %v3385_v34 }
0x17df   : > { %3387 = vst.msk [vmem:[#allocation4 + $0x8] sm:$0xff] %vm911_vm6, %v3386_v39  ;;  %3380 = vrot.lane.b32.xlu0 %v3378_v38, %s5275_s25 }
0x17e6   : > { %v3389_v44 = vld [vmem:[#allocation4 + $0x8] sm:$0xff] }
0x17e7   : > { %v3391_v45 = vpack.c.bf16 %v3389_v44, %v3389_v44 }
0x17e9   : > { %4294 = vmatprep.mubr.msk.bf16.mxu1 %vm911_vm6, %v3391_v45 }
0x1851   : > { %v3381_v50 = vpop.permute.xlu0 %3380 }
0x1852   : > { %3384 = vst.msk [vmem:[#allocation4] sm:$0xff] %vm3383_vm12, %v3381_v50 }
0x1859   : > { %v3388_v51 = vld [vmem:[#allocation4] sm:$0xff] }
0x185a   : > { %v3390_v4 = vpack.c.bf16 %v3388_v51, %v3388_v51 }
0x185c   : > { %3506 = vmatmul.mubr.bf16.vlgmr.msra.gmra.mrb[76].mxu1 %v3390_v4 }
0x192f   : > { %v3507_v19 = vpop.f32.mrb[76].mxu1 }
0x1930   : > { %v3508_v60 = vadd.f32 %v4281_v59, %v3507_v19  ;;  %v3509_v61 = vpop.f32.mrb[77].mxu1 }
0x1931   : > { %v3510_v62 = vpop.f32.mrb[78].mxu1 }
0x1932   : > { %v3513_v63 = vmax.f32 %v3508_v60, 0.0  ;;  %v3511_v0 = vpop.f32.mrb[79].mxu1 }
0x1934   : > { %v3564_v1 = vrot.slane %v3513_v63, 7  ;;  %v3573_v9 = vpack.c.bf16 %v3513_v63, %v3513_v63  ;;  %v3567_v15 = vrot.slane %v3513_v63, 6 }
0x1936   : > { %v3565_v25 = vmul.f32 %v5595_v5, %v3564_v1  ;;  %v4999_v5 = vld [vmem:[%s5652_s27 + $0x98] sm:$0xff]   ;;  %v3568_v8 = vmul.f32 %v5598_v6, %v3567_v15  ;;  %s6281_s27 = sld [smem:[#allocation41_spill]] (!%p4320_p1) }
0x1938   : > { %v3574_v2 = vpack.c.bf16 %v3565_v25, %v3565_v25  ;;  %v3575_v17 = vpack.c.bf16 %v3568_v8, %v3568_v8 }
0x193a   : > { %3758 = vmatprep.mubr.bf16.mxu0 %v3574_v2 }
0x193b   : > { %3759 = vmatmul.mubr.bf16.vlgmr.msra.gmra.mrb[68].mxu0 %v3573_v9 }
0x193c   : > { %4770 = vmatpush3.bf16.msra.mxu0 %v4996_v7  ;;  %4785 = vmatprep.mubr.msk.bf16.mxu0 %vm5267_vm7, %v5264_v3  ;;  %v4321_v45 = vld [vmem:[%s6281_s27] ss:$0 sm:$0xff] (!%p4320_p1) }
0x193d   : > { %4771 = vmatprep.subr.bf16.mxu0 %v5264_v3 }
0x1940   : > { %4772 = vmatpush3.bf16.msra.mxu0 %v4997_v10 }
0x1941   : > { %4773 = vmatprep.subr.bf16.mxu0 %v5264_v3 }
0x1944   : > { %4774 = vmatpush3.bf16.msra.mxu0 %v4998_v11 }
0x1945   : > { %4775 = vmatprep.subr.bf16.mxu0 %v5264_v3 }
0x1948   : > { %4776 = vmatpush3.bf16.msra.mxu0 %v4999_v5 }
0x1949   : > { %4777 = vmatprep.subr.bf16.mxu0 %v5264_v3 }
0x194c   : > { %4778 = vmatpush3.bf16.msra.mxu0 %v5000_v12 }
0x194d   : > { %4779 = vmatprep.subr.bf16.mxu0 %v5264_v3 }
0x1950   : > { %4780 = vmatpush3.bf16.msra.mxu0 %v5001_v13 }
0x1951   : > { %4781 = vmatprep.subr.bf16.mxu0 %v5264_v3 }
0x1954   : > { %4782 = vmatpush3.bf16.msra.mxu0 %v5002_v14 }
0x1955   : > { %4783 = vmatprep.subr.bf16.mxu0 %v5264_v3 }
0x1958   : > { %4784 = vmatpush3.bf16.msra.mxu0 %v5003_v16 }
0x195b   : > { %4786 = vmatmul.mubr.bf16.vlgmr.msra.gmra.mrb[72].mxu0 %v3575_v17 }
0x1a0e   : > { %v4456_v18 = vpop.f32.mrb[68].mxu0 }
0x1a0f   : > { %v4457_v20 = vpop.f32.mrb[69].mxu0 }
0x1a10   : > { %v4458_v21 = vadd.f32 %v4457_v20, %v4456_v18  ;;  %v4459_v22 = vpop.f32.mrb[70].mxu0 }
0x1a11   : > { %v4460_v23 = vpop.f32.mrb[71].mxu0 }
0x1a12   : > { %v3761_v26 = vadd.f32 %v4458_v21, %v4295_v24 }
0x1a2e   : > { %v3800_v27 = vpop.f32.mrb[72].mxu0 }
0x1a2f   : > { %v3801_v28 = vadd.f32 %v3800_v27, %v3761_v26  ;;  %v4787_v29 = vpop.f32.mrb[73].mxu0  ;;  %3812 = sbr.rel (%p4320_p1) target bundleno = 7038 (0x1b7e), region = 104 }
0x1a30   : > { %v3803_v6 = vpop.f32.mrb[74].mxu0 }
0x1a31   : > { %v3806_v30 = vmax.f32 %v3801_v28, 0.0  ;;  %v4788_v3 = vpop.f32.mrb[75].mxu0 }
0x1a33   : > { %v3807_v31 = vadd.f32 %v3806_v30, %v6040_v57 }
0x1a35   : > { %3808 = vst.msk [vmem:[#allocation2] sm:$0xff] %vm911_vm6, %v3807_v31  ;;  %v3815_v32 = vsel (!%p4320_p1), %vm911_vm6, %v3807_v31, 0.0 }
0x1a36   : > { %3816 = vadd.xlane.f32.xlu0 %v3815_v32 }
0x1ac3   : > { %v3817_v33 = vpop.xlane.xlu0 %3816 }
0x1ac4   : > { %v3818_v52 = vmul.f32 0.015625, %v3817_v33 }
0x1ac6   : > { %v3819_v34 = vsub.f32 %v3807_v31, %v3818_v52 }
0x1ac8   : > { %v3820_v35 = vmul.f32 %v3819_v34, %v3819_v34 }
0x1aca   : > { %v3821_v36 = vsel %vm911_vm6, %v3820_v35, 0.0 }
0x1acb   : > { %3822 = vadd.xlane.f32.xlu0 %v3821_v36 }
0x1b58   : > { %v3823_v37 = vpop.xlane.xlu0 %3822 }
0x1b59   : > { %v3824_v38 = vmul.f32 0.015873017, %v3823_v37 }
0x1b5b   : > { %5068 = vrsqrt.f32 %v3824_v38  ;;  %vm3827_vm7 = vcmp.eq.f32.partialorder %v3824_v38, inf  ;;  %v3830_v40 = vand.u32 2147483648, %v3824_v38  ;;  %vm3829_vm13 = vcmp.eq.f32.partialorder %v3824_v38, 0.0 }
0x1b65   : > { %v5069_v57 = vpop.eup %5068 }
0x1b66   : > { %v3826_v39 = vmul.f32 %v5069_v57, %v3824_v38 }
0x1b68   : > { %v3828_v41 = vsel %vm3827_vm7, %v3824_v38, %v3826_v39 }
0x1b69   : > { %v3831_v42 = vsel %vm3829_vm13, %v3830_v40, %v3828_v41 }
0x1b6a   : > { %v3832_v43 = vadd.f32 1e-06, %v3831_v42 }
0x1b6c   : > { %5070 = vrcp.f32 %v3832_v43 }
0x1b76   : > { %v5071_v44 = vpop.eup %5070 }
0x1b77   : > { %v3834_v46 = vmul.f32 %v5071_v44, %v3819_v34 }
0x1b79   : > { %v3841_v48 = vmul.f32 %v4321_v45, %v3834_v46 }
0x1b7b   : > { %v3848_v49 = vadd.f32 %v4322_v47, %v3841_v48 }
0x1b7d   : > { %3849 = vst.msk [vmem:[%s767_s22] sm:$0xff] %vm911_vm6, %v3848_v49 }
0x1b7e PF: > { %s6283_s19 = sld [smem:[#allocation20_spill]]  ;;  %s6284_s29 = sld [smem:[#allocation16_spill]] }
0x1b7f   : > { %s6285_s18 = sld [smem:[#allocation28_spill]]  ;;  %s6286_s2 = sld [smem:[#allocation43_spill]] }
0x1b80   : > { %s3864_s5 = sshll.u32 %s767_s22, 4  ;;  %s5276_s17 = smov [#allocation11]   ;;  %s3865_s5 = int_to_ptr.vmem [resolvable:$true] %s3864_s5 }
0x1b81   : > { %s5132_s10 = scalar_lea.vmem %s3865_s5, 128  ;;  %s5136_s3 = sshll.u32 %s5276_s17, 4  ;;  %s5137_s3 = int_to_ptr.vmem [resolvable:$false] %s5136_s3 }
0x1b82   : > { %p5133_p10 = scmp.ne.s32.totalorder %s3865_s5, %s5132_s10  ;;  %s5138_s28 = scalar_lea.vmem %s5137_s3, 256 }
0x1b83   : > { %p5139_p13 = scmp.lt.s32.totalorder %s3865_s5, %s5137_s3  ;;  %p5140_p0 = scmp.lt.s32.totalorder %s5138_s28, %s5132_s10 }
0x1b84   : > { %s4324_s16 = sshll.u32 %s6283_s19, 7  ;;  %s6287_s11 = sand.u32 1, %s6284_s29  }
0x1b85   : > { %s6129_s20 = scalar_lea.hbm %s6286_s2, %s4324_s16  ;;  %s3851_s25 = scalar_lea.sflag [#allocation8], %s6287_s11 }
0x1b86   : > { %p6288_p11 = scmp.ne.s32.totalorder %s6285_s18, 0  ;;  %p5141_p3 = por %p5140_p0, %p5139_p13 }
0x1b88   : > { %p5134_p12 = pnand %p5133_p10, %p6288_p11 }
0x1b8a   : > { %p5135_p2 = pneg %p5134_p12 }
0x1b8c   : > { %p5142_p6 = pnand %p5141_p3, %p5135_p2 }
0x1b8e   : > { %5145 = shalt.err (!%p5142_p6)
}
0x1b8f   : > { %s5146_s23 = scalar_lea.hbm %s6129_s20, 128  ;;  %s5150_s26 = scalar_lea.hbm %s6286_s2, 256 }
0x1b90   : > { %p5147_p9 = scmp.ne.s32.totalorder %s6129_s20, %s5146_s23  ;;  %p5151_p5 = scmp.lt.u32.totalorder %s6129_s20, %s6286_s2 }
0x1b91   : > { %p5152_p7 = scmp.lt.u32.totalorder %s5150_s26, %s5146_s23  ;;  %p5154_p10 = scmp.lt.u32.totalorder %s5146_s23, %s6129_s20 }
0x1b92   : > { %p5148_p8 = pnand %p5147_p9, %p6288_p11 }
0x1b93   : > { %p5153_p1 = por %p5152_p7, %p5151_p5 }
0x1b94   : > { %p5149_p4 = pneg %p5148_p8 }
0x1b95   : > { %p5155_p12 = por %p5154_p10, %p5153_p1 }
0x1b97   : > { %p5156_p2 = pnand %p5155_p12, %p5149_p4 }
0x1b99   : > { %5159 = shalt.err (!%p5156_p2)
}
0x1b9a   : > { %4800 = dma.vmem_to_hbm [thread:$0]  (%p6288_p11), %s3865_s5, 128, %s6129_s20, %s3851_s25  }
0x1b9b PF: > { %s6289_s27 = sld [smem:[#allocation23_spill]]  ;;  %s6290_s1 = sld [smem:[#allocation15_spill]] }
0x1b9c   : > { %s6291_s6 = sld [smem:[#allocation29_spill]] }
0x1ba1   : > { %p4814_p13 = scmp.ge.s32.totalorder %s6289_s27, 2  ;;  %s3876_s15 = sand.u32 1, %s6290_s1  }
0x1ba2   : > { %p6292_p0 = scmp.ne.s32.totalorder %s6291_s6, 0  ;;  %s3877_s19 = scalar_lea.sflag [#allocation8], %s3876_s15 }
0x1ba4   : > { %p4810_p3 = pnand %p4814_p13, %p6292_p0 }
0x1ba6   : > { %5213 = dma.done.wait (!%p4810_p3), %s3877_s19, 128  }
0x1ba7   : > { %5215 = vsyncadd (!%p4810_p3), %s3877_s19, 4294967168  ;;  %s36_s1 = sadd.s32 1, %s6289_s27   ;;  %s6293_s24 = sld [smem:[#allocation16_spill]] }
0x1ba8   : > { %p33_p6 = scmp.ge.s32.totalorder %s36_s1, 6   ;;  %s6294_s25 = sld [smem:[#allocation17_spill]] }
0x1ba9   : > { %s6295_s26 = sld [smem:[#allocation27_spill]]  ;;  %s6296_s27 = sld [smem:[#allocation18_spill]] }
0x1baa   : > { %s6297_s28 = sld [smem:[#allocation19_spill]]  ;;  %s6298_s29 = sld [smem:[#allocation26_spill]] }
0x1bab   : > { %s6299_s0 = sld [smem:[#allocation21_spill]]  ;;  %s6300_s30 = sld [smem:[#allocation22_spill]] }
0x1bac   : > { %s6301_s18 = sld [smem:[#allocation24_spill]]  ;;  %s6302_s19 = sld [smem:[#allocation25_spill]] }
0x1bad   :  { %35 = sbr.rel (!%p33_p6) target bundleno = 25 (0x19), region = 201 }
0x1bb4   :  { %3882 = vsyncpa [#allocation7], 1 }
0x1bb5   :  { %3884 = vsyncpa [#allocation7 + $0x1], 1 }
0x1bb6   :  { %3885 = vsyncpa [#allocation10], 1 }
0x1bb7   :  { %3887 = vsyncpa [#allocation10 + $0x1], 1 }
0x1bb8   :  { %3888 = vsyncpa [#allocation8], 1 }
0x1bb9   :  { %3890 = vsyncpa [#allocation8 + $0x1], 1 }

</bundles_post_ra>
